<compile_context>
chip_gen: v5e
topology: v5e:2x2
jax: 0.10.0
libtpu: 0.0.40
codegen_flags: <defaults>
</compile_context>

<pallas_src>
import math

import numpy as np
import jax
import jax.numpy as jnp
from jax.experimental import pallas as pl
from jax.experimental.pallas import tpu as pltpu

MAX_LABELS = 16               # dense label capacity (labels 1..MAX_LABELS; 0 = background)
                              # TODO(synk): real StarDist outputs can have 100s of instances;
                              # raise MAX_LABELS (label axis is already chunked in-kernel) and
                              # pad the pairwise outputs' j axis to 128 for lane-dense stores.
AREA_RATIO_MIN = 0.00023      # per-object bbox filter (same constant as the torch module)
PROPOSAL_RATIO_MIN = 0.01555  # proposal area threshold (same constant as the torch module)


def _int_threshold(ratio, img_area):
    """Smallest integer a with a / img_area >= ratio (float64 division, matching numpy)."""
    a = max(int(math.ceil(ratio * img_area)), 0)
    while a > 0 and (a - 1) / img_area >= ratio:
        a -= 1
    while a / img_area < ratio:
        a += 1
    return a


def _exact_floordiv(num, den, steps=4):
    """Exact floor(num / den) for int32 `num` and positive python-int `den`, using only
    mul / cast / compare / select.  The f32 estimate is off by at most a few units for
    |num| < ~2^31, so an iterated +-1 fixup (4 steps) recovers the exact quotient."""
    q = (num.astype(jnp.float32) * jnp.float32(1.0 / den)).astype(jnp.int32)
    for _ in range(steps):
        q = jnp.where(q * den > num, q - 1, q)
        q = jnp.where((q + 1) * den <= num, q + 1, q)
    return q


def _make_kernel(*, L, l_chunk, n_label_chunks, tile_h, sub_h, n_sub, w,
                 img_h, img_w, fm_h, fm_w, area_thr, prop_thr, ragged_rows):
    BIG = img_h + img_w + 1          # sentinel larger than any coordinate

    def process_rows(rows, y0, accs):
        """Fold one (sub_h, w) row block into the per-label min/max accumulators."""
        ymin_acc, xmin_acc, ymax_acc, xmax_acc = accs
        if ragged_rows:
            # last row tile may extend past H: blank out-of-range rows to background
            ry = jax.lax.broadcasted_iota(jnp.int32, (sub_h, w), 0) + y0
            rows = jnp.where(ry < img_h, rows, 0)

        def one_chunk(lab0, sl):
            # label ids as a (Lc,1,1) iota -> the compare broadcasts a per-label splat
            lab_ids = jax.lax.broadcasted_iota(jnp.int32, (l_chunk, 1, 1), 0) + lab0
            mask = rows[None, :, :] == lab_ids                    # (Lc, sub_h, w) bool
            # presence maps: one lane reduce + one (cheap) sublane reduce per chunk
            row_has = jnp.any(mask, axis=2)                       # (Lc, sub_h)
            col_has = jnp.any(mask, axis=1)                       # (Lc, w)
            x_iota = jax.lax.broadcasted_iota(jnp.int32, (l_chunk, w), 1)
            y_iota = jax.lax.broadcasted_iota(jnp.int32, (l_chunk, sub_h), 1) + y0
            c_xmin = jnp.min(jnp.where(col_has, x_iota, BIG), axis=1, keepdims=True)
            c_xmax = jnp.max(jnp.where(col_has, x_iota, -1), axis=1, keepdims=True)
            c_ymin = jnp.min(jnp.where(row_has, y_iota, BIG), axis=1, keepdims=True)
            c_ymax = jnp.max(jnp.where(row_has, y_iota, -1), axis=1, keepdims=True)
            ymin_acc[sl, :] = jnp.minimum(ymin_acc[sl, :], c_ymin)
            xmin_acc[sl, :] = jnp.minimum(xmin_acc[sl, :], c_xmin)
            ymax_acc[sl, :] = jnp.maximum(ymax_acc[sl, :], c_ymax)
            xmax_acc[sl, :] = jnp.maximum(xmax_acc[sl, :], c_xmax)

        if n_label_chunks == 1:
            one_chunk(1, slice(None))
        else:
            def chunk_body(c, carry):
                off = pl.multiple_of(c * l_chunk, l_chunk)
                one_chunk(c * l_chunk + 1, pl.ds(off, l_chunk))
                return carry
            jax.lax.fori_loop(0, n_label_chunks, chunk_body, 0,
                              unroll=min(n_label_chunks, 8))

    def kernel(labels_ref, props_ref, keep_ref,
               ymin_acc, xmin_acc, ymax_acc, xmax_acc):
        t = pl.program_id(0)

        @pl.when(t == 0)
        def _init():
            ymin_acc[...] = jnp.full((L, 1), BIG, jnp.int32)
            xmin_acc[...] = jnp.full((L, 1), BIG, jnp.int32)
            ymax_acc[...] = jnp.full((L, 1), -1, jnp.int32)
            xmax_acc[...] = jnp.full((L, 1), -1, jnp.int32)

        accs = (ymin_acc, xmin_acc, ymax_acc, xmax_acc)
        y_tile0 = t * tile_h
        if n_sub == 1:
            process_rows(labels_ref[...], y_tile0, accs)
        else:
            def sub_body(s, carry):
                row0 = pl.multiple_of(s * sub_h, sub_h)
                process_rows(labels_ref[pl.ds(row0, sub_h), :], y_tile0 + row0, accs)
                return carry
            jax.lax.fori_loop(0, n_sub, sub_body, 0, unroll=min(n_sub, 4))

        @pl.when(t == pl.num_programs(0) - 1)
        def _finalize():
            y_min = ymin_acc[...]                                  # (L, 1)
            x_min = xmin_acc[...]
            y_max = ymax_acc[...]
            x_max = xmax_acc[...]

            exists = y_max >= 0                                    # absent-label gate
            obj_area = (x_max - x_min) * (y_max - y_min)           # (L, 1) int32
            valid_i = exists & (obj_area >= area_thr)              # integer threshold

            i_idx = jax.lax.broadcasted_iota(jnp.int32, (L, L), 0)
            j_idx = jax.lax.broadcasted_iota(jnp.int32, (L, L), 1)
            diag = i_idx == j_idx

            def col_to_row(col):
                # (L,1) -> (1,L) without a reshape/relayout: diagonal select + sublane sum
                full = jnp.broadcast_to(col, (L, L))
                return jnp.sum(jnp.where(diag, full, 0), axis=0, keepdims=True)

            y_max_j = col_to_row(y_max)                            # (1, L)
            x_max_j = col_to_row(x_max)
            valid_j = col_to_row(valid_i.astype(jnp.int32)) > 0    # (1, L)

            parea = (x_max_j - x_min) * (y_max_j - y_min)          # (L, L) int32
            keep = (i_idx < j_idx) & valid_i & valid_j & (parea >= prop_thr)
            keep_ref[...] = keep.astype(jnp.int32)

            # exact floor((v * fm_dim) / img_dim) == int(coord * scale) for coords >= 0
            y_min_fm = _exact_floordiv(y_min * fm_h, img_h)        # (L, 1)
            x_min_fm = _exact_floordiv(x_min * fm_w, img_w)
            y_max_fm = _exact_floordiv(y_max_j * fm_h, img_h)      # (1, L)
            x_max_fm = _exact_floordiv(x_max_j * fm_w, img_w)

            props_ref[0, :, :] = jnp.broadcast_to(y_min_fm, (L, L))
            props_ref[1, :, :] = jnp.broadcast_to(x_min_fm, (L, L))
            props_ref[2, :, :] = jnp.broadcast_to(y_max_fm, (L, L))
            props_ref[3, :, :] = jnp.broadcast_to(x_max_fm, (L, L))

    return kernel


def stardist_proposal_tpu(labels, x, max_labels=MAX_LABELS, *,
                          max_tile_h=256, work_budget_elems=64 * 1024):
    """labels: (H, W) integer label map; x: (Hf, Wf) feature map (only its shape is used)."""
    labels = jnp.asarray(labels, jnp.int32)
    H, W = labels.shape
    Hf, Wf = x.shape

    # Label capacity / chunking: chunks of 8 keep (l_chunk, sub_h, W) intermediates small.
    if max_labels <= 8:
        L = int(max_labels)
        l_chunk = L
    else:
        L = ((int(max_labels) + 7) // 8) * 8
        l_chunk = 8
    n_label_chunks = L // l_chunk

    # Row sub-block: bound the live per-chunk working set to ~work_budget_elems.
    sub_h = (work_budget_elems // max(1, l_chunk * W)) // 8 * 8
    sub_h = int(max(8, min(sub_h, max_tile_h)))
    if sub_h >= H:
        sub_h = H            # whole image in one block (full-dim block shapes are legal)
        tile_h = H
        n_sub = 1
    else:
        n_sub = int(min(max(1, max_tile_h // sub_h), -(-H // sub_h)))
        tile_h = sub_h * n_sub
    num_tiles = int(-(-H // tile_h))
    ragged_rows = (num_tiles * tile_h != H)   # last input block may read past H -> mask

    img_area = H * W
    kernel = _make_kernel(
        L=L, l_chunk=l_chunk, n_label_chunks=n_label_chunks,
        tile_h=tile_h, sub_h=sub_h, n_sub=n_sub, w=W,
        img_h=H, img_w=W, fm_h=Hf, fm_w=Wf,
        area_thr=_int_threshold(AREA_RATIO_MIN, img_area),
        prop_thr=_int_threshold(PROPOSAL_RATIO_MIN, img_area),
        ragged_rows=ragged_rows,
    )

    # Explicit VMEM budget (input tile is double-buffered; working set mostly vreg/VMEM temps).
    bytes_in = tile_h * W * 4 * 2
    bytes_work = l_chunk * sub_h * W * 4 * 4
    bytes_out = 5 * L * L * 4 * 2
    vmem_limit = int(min(48 << 20, max(16 << 20, 2 * (bytes_in + bytes_work + bytes_out))))

    props, keep = pl.pallas_call(
        kernel,
        out_shape=(
            jax.ShapeDtypeStruct((4, L, L), jnp.int32),
            jax.ShapeDtypeStruct((L, L), jnp.int32),
        ),
        grid_spec=pltpu.PrefetchScalarGridSpec(
            num_scalar_prefetch=0,
            grid=(num_tiles,),
            in_specs=[pl.BlockSpec((tile_h, W), lambda t: (t, 0))],
            out_specs=(
                pl.BlockSpec((4, L, L), lambda t: (0, 0, 0)),
                pl.BlockSpec((L, L), lambda t: (0, 0)),
            ),
            scratch_shapes=[pltpu.VMEM((L, 1), jnp.int32)] * 4,
        ),
        compiler_params=pltpu.CompilerParams(
            dimension_semantics=("arbitrary",),
            vmem_limit_bytes=vmem_limit,
        ),
    )(labels)

    # Host-side compaction into the Python list the torch module returns
    # (row-major (i, j) order == the torch double-loop order over filtered bboxes).
    keep_np = np.asarray(keep).astype(bool)
    props_np = np.asarray(props)
    mapped_bboxes = [props_np[:, i, j].tolist() for i, j in np.argwhere(keep_np)]
    return mapped_bboxes, props, keep


def _reference(labels_np, fm_shape):
    """Pure-numpy re-implementation of the torch module's forward (sane shape semantics)."""
    H, W = labels_np.shape
    img_area = H * W
    bboxes = []
    for lab in np.unique(labels_np):
        if lab == 0:
            continue
        coords = np.column_stack(np.where(labels_np == lab))
        y_min, x_min = coords.min(axis=0)
        y_max, x_max = coords.max(axis=0)
        if (x_max - x_min) * (y_max - y_min) / img_area < AREA_RATIO_MIN:
            continue
        bboxes.append([int(y_min), int(x_min), int(y_max), int(x_max)])
    proposals = []
    for i in range(len(bboxes)):
        for j in range(i + 1, len(bboxes)):
            pa = (bboxes[j][3] - bboxes[i][1]) * (bboxes[j][2] - bboxes[i][0])
            if pa / img_area >= PROPOSAL_RATIO_MIN:
                proposals.append((bboxes[i][0], bboxes[i][1], bboxes[j][2], bboxes[j][3]))
    sy = fm_shape[0] / H
    sx = fm_shape[1] / W
    return [[int(p[0] * sy), int(p[1] * sx), int(p[2] * sy), int(p[3] * sx)] for p in proposals]


if __name__ == "__main__":
    key = jax.random.PRNGKey(0)

    # Synthetic "StarDist" instance segmentation output (deterministic), 64x64 image.
    labels_np = np.zeros((64, 64), dtype=np.int32)
    labels_np[4:20, 6:30] = 1     # object 1
    labels_np[28:50, 10:40] = 2   # object 2
    labels_np[8:16, 40:60] = 3    # object 3
    labels_np[60, 60] = 4         # single pixel -> filtered by the area-ratio check
    labels = jnp.asarray(labels_np)

    # Upsampled feature map (values unused by the forward, only its size) — 32x32.
    x = jax.random.normal(key, (32, 32), dtype=jnp.float32)

    mapped_bboxes, props, keep = stardist_proposal_tpu(labels, x)
    jax.block_until_ready(props)
    jax.block_until_ready(keep)

    expected = _reference(labels_np, x.shape)
    assert mapped_bboxes == expected, (mapped_bboxes, expected)

    print("KERNEL_OK")
</pallas_src>

<mosaic_0001>
module attributes {stable_mosaic.version = 11 : i64} {
  func.func @kernel(%arg0: i32, %arg1: memref<64x64xi32, #tpu.memory_space<vmem>>, %arg2: memref<4x16x16xi32, #tpu.memory_space<vmem>>, %arg3: memref<16x16xi32, #tpu.memory_space<vmem>>, %arg4: memref<16x1xi32, #tpu.memory_space<vmem>>, %arg5: memref<16x1xi32, #tpu.memory_space<vmem>>, %arg6: memref<16x1xi32, #tpu.memory_space<vmem>>, %arg7: memref<16x1xi32, #tpu.memory_space<vmem>>) attributes {dimension_semantics = [#tpu.dimension_semantics<arbitrary>], iteration_bounds = array<i64: 1>, scalar_prefetch = 0 : i64, scratch_operands = 4 : i64, tpu.core_type = #tpu.core_type<tc>, window_params = [{transform_indices = @transform_0, window_bounds = array<i64: 64, 64>}, {pipeline_mode = #tpu.pipeline_mode<synchronous>, transform_indices = @transform_1, window_bounds = array<i64: 4, 16, 16>}, {pipeline_mode = #tpu.pipeline_mode<synchronous>, transform_indices = @transform_2, window_bounds = array<i64: 16, 16>}]} {
    %c0_i32 = arith.constant 0 : i32
    %0 = arith.cmpi eq, %arg0, %c0_i32 : i32
    %1 = arith.extui %0 : i1 to i32
    %c0_i32_0 = arith.constant 0 : i32
    %2 = arith.cmpi ne, %1, %c0_i32_0 : i32
    scf.if %2 {
      %c129_i32_55 = arith.constant 129 : i32
      %134 = vector.broadcast %c129_i32_55 : i32 to vector<16x1xi32>
      %c0_56 = arith.constant 0 : index
      %c0_57 = arith.constant 0 : index
      %135 = vector.load %arg4[%c0_56, %c0_57] : memref<16x1xi32, #tpu.memory_space<vmem>>, vector<16x1xi32>
      tpu.vector_store %arg4[%c0_56, %c0_57], %134 {strides = array<i32>} : memref<16x1xi32, #tpu.memory_space<vmem>>, vector<16x1xi32>,
      %c129_i32_58 = arith.constant 129 : i32
      %136 = vector.broadcast %c129_i32_58 : i32 to vector<16x1xi32>
      %c0_59 = arith.constant 0 : index
      %c0_60 = arith.constant 0 : index
      %137 = vector.load %arg5[%c0_59, %c0_60] : memref<16x1xi32, #tpu.memory_space<vmem>>, vector<16x1xi32>
      tpu.vector_store %arg5[%c0_59, %c0_60], %136 {strides = array<i32>} : memref<16x1xi32, #tpu.memory_space<vmem>>, vector<16x1xi32>,
      %c-1_i32_61 = arith.constant -1 : i32
      %138 = vector.broadcast %c-1_i32_61 : i32 to vector<16x1xi32>
      %c0_62 = arith.constant 0 : index
      %c0_63 = arith.constant 0 : index
      %139 = vector.load %arg6[%c0_62, %c0_63] : memref<16x1xi32, #tpu.memory_space<vmem>>, vector<16x1xi32>
      tpu.vector_store %arg6[%c0_62, %c0_63], %138 {strides = array<i32>} : memref<16x1xi32, #tpu.memory_space<vmem>>, vector<16x1xi32>,
      %c-1_i32_64 = arith.constant -1 : i32
      %140 = vector.broadcast %c-1_i32_64 : i32 to vector<16x1xi32>
      %c0_65 = arith.constant 0 : index
      %c0_66 = arith.constant 0 : index
      %141 = vector.load %arg7[%c0_65, %c0_66] : memref<16x1xi32, #tpu.memory_space<vmem>>, vector<16x1xi32>
      tpu.vector_store %arg7[%c0_65, %c0_66], %140 {strides = array<i32>} : memref<16x1xi32, #tpu.memory_space<vmem>>, vector<16x1xi32>,
    } else {
    }
    %c64_i32 = arith.constant 64 : i32
    %3 = arith.muli %arg0, %c64_i32 : i32
    %c0 = arith.constant 0 : index
    %c0_1 = arith.constant 0 : index
    %4 = vector.load %arg1[%c0, %c0_1] : memref<64x64xi32, #tpu.memory_space<vmem>>, vector<64x64xi32>
    %c0_i32_2 = arith.constant 0 : i32
    %c8_i32 = arith.constant 8 : i32
    %5 = arith.muli %c0_i32_2, %c8_i32 : i32
    %6 = tpu.assume_multiple %5, 8 : i32
    %c8_i32_3 = arith.constant 8 : i32
    %7 = arith.muli %c0_i32_2, %c8_i32_3 : i32
    %c1_i32 = arith.constant 1 : i32
    %8 = arith.addi %7, %c1_i32 : i32
    %9 = tpu.iota {dimensions = array<i32: 0>} : vector<8x1x1xi32>
    %10 = vector.broadcast %8 : i32 to vector<8x1x1xi32>
    %11 = arith.addi %9, %10 : vector<8x1x1xi32>
    %12 = vector.shape_cast %4 : vector<64x64xi32> to vector<1x64x64xi32>
    %13 = vector.broadcast %12 : vector<1x64x64xi32> to vector<8x64x64xi32>
    %14 = vector.broadcast %11 : vector<8x1x1xi32> to vector<8x64x64xi32>
    %15 = arith.cmpi eq, %13, %14 : vector<8x64x64xi32>
    %cst = arith.constant 1.000000e+00 : f32
    %cst_4 = arith.constant 0.000000e+00 : f32
    %16 = vector.broadcast %cst : f32 to vector<8x64x64xf32>
    %17 = vector.broadcast %cst_4 : f32 to vector<8x64x64xf32>
    %18 = arith.select %15, %16, %17 : vector<8x64x64xi1>, vector<8x64x64xf32>
    %cst_5 = arith.constant dense<0xFF800000> : vector<8x64xf32>
    %19 = vector.multi_reduction <maximumf>, %18, %cst_5 [2] : vector<8x64x64xf32> to vector<8x64xf32>
    %cst_6 = arith.constant 0.000000e+00 : f32
    %20 = vector.broadcast %cst_6 : f32 to vector<8x64xf32>
    %21 = arith.cmpf ogt, %19, %20 : vector<8x64xf32>
    %cst_7 = arith.constant 1.000000e+00 : f32
    %cst_8 = arith.constant 0.000000e+00 : f32
    %22 = vector.broadcast %cst_7 : f32 to vector<8x64x64xf32>
    %23 = vector.broadcast %cst_8 : f32 to vector<8x64x64xf32>
    %24 = arith.select %15, %22, %23 : vector<8x64x64xi1>, vector<8x64x64xf32>
    %cst_9 = arith.constant dense<0xFF800000> : vector<8x64xf32>
    %25 = vector.multi_reduction <maximumf>, %24, %cst_9 [1] : vector<8x64x64xf32> to vector<8x64xf32>
    %cst_10 = arith.constant 0.000000e+00 : f32
    %26 = vector.broadcast %cst_10 : f32 to vector<8x64xf32>
    %27 = arith.cmpf ogt, %25, %26 : vector<8x64xf32>
    %28 = tpu.iota {dimensions = array<i32: 1>} : vector<8x64xi32>
    %29 = tpu.iota {dimensions = array<i32: 1>} : vector<8x64xi32>
    %30 = vector.broadcast %3 : i32 to vector<8x64xi32>
    %31 = arith.addi %29, %30 : vector<8x64xi32>
    %c129_i32 = arith.constant 129 : i32
    %32 = vector.broadcast %c129_i32 : i32 to vector<8x64xi32>
    %33 = arith.select %27, %28, %32 : vector<8x64xi1>, vector<8x64xi32>
    %cst_11 = arith.constant dense<2147483647> : vector<8xi32>
    %34 = vector.multi_reduction <minsi>, %33, %cst_11 [1] : vector<8x64xi32> to vector<8xi32>
    %35 = vector.shape_cast %34 : vector<8xi32> to vector<8x1xi32>
    %c-1_i32 = arith.constant -1 : i32
    %36 = vector.broadcast %c-1_i32 : i32 to vector<8x64xi32>
    %37 = arith.select %27, %28, %36 : vector<8x64xi1>, vector<8x64xi32>
    %cst_12 = arith.constant dense<-2147483648> : vector<8xi32>
    %38 = vector.multi_reduction <maxsi>, %37, %cst_12 [1] : vector<8x64xi32> to vector<8xi32>
    %39 = vector.shape_cast %38 : vector<8xi32> to vector<8x1xi32>
    %c129_i32_13 = arith.constant 129 : i32
    %40 = vector.broadcast %c129_i32_13 : i32 to vector<8x64xi32>
    %41 = arith.select %21, %31, %40 : vector<8x64xi1>, vector<8x64xi32>
    %cst_14 = arith.constant dense<2147483647> : vector<8xi32>
    %42 = vector.multi_reduction <minsi>, %41, %cst_14 [1] : vector<8x64xi32> to vector<8xi32>
    %43 = vector.shape_cast %42 : vector<8xi32> to vector<8x1xi32>
    %c-1_i32_15 = arith.constant -1 : i32
    %44 = vector.broadcast %c-1_i32_15 : i32 to vector<8x64xi32>
    %45 = arith.select %21, %31, %44 : vector<8x64xi1>, vector<8x64xi32>
    %cst_16 = arith.constant dense<-2147483648> : vector<8xi32>
    %46 = vector.multi_reduction <maxsi>, %45, %cst_16 [1] : vector<8x64xi32> to vector<8xi32>
    %47 = vector.shape_cast %46 : vector<8xi32> to vector<8x1xi32>
    %48 = arith.index_cast %6 : i32 to index
    %c0_17 = arith.constant 0 : index
    %49 = vector.load %arg4[%48, %c0_17] : memref<16x1xi32, #tpu.memory_space<vmem>>, vector<8x1xi32>
    %50 = arith.minsi %49, %43 : vector<8x1xi32>
    %51 = arith.index_cast %6 : i32 to index
    %c0_18 = arith.constant 0 : index
    %52 = vector.load %arg4[%51, %c0_18] : memref<16x1xi32, #tpu.memory_space<vmem>>, vector<8x1xi32>
    tpu.vector_store %arg4[%51, %c0_18], %50 {strides = array<i32>} : memref<16x1xi32, #tpu.memory_space<vmem>>, vector<8x1xi32>,
    %53 = arith.index_cast %6 : i32 to index
    %c0_19 = arith.constant 0 : index
    %54 = vector.load %arg5[%53, %c0_19] : memref<16x1xi32, #tpu.memory_space<vmem>>, vector<8x1xi32>
    %55 = arith.minsi %54, %35 : vector<8x1xi32>
    %56 = arith.index_cast %6 : i32 to index
    %c0_20 = arith.constant 0 : index
    %57 = vector.load %arg5[%56, %c0_20] : memref<16x1xi32, #tpu.memory_space<vmem>>, vector<8x1xi32>
    tpu.vector_store %arg5[%56, %c0_20], %55 {strides = array<i32>} : memref<16x1xi32, #tpu.memory_space<vmem>>, vector<8x1xi32>,
    %58 = arith.index_cast %6 : i32 to index
    %c0_21 = arith.constant 0 : index
    %59 = vector.load %arg6[%58, %c0_21] : memref<16x1xi32, #tpu.memory_space<vmem>>, vector<8x1xi32>
    %60 = arith.maxsi %59, %47 : vector<8x1xi32>
    %61 = arith.index_cast %6 : i32 to index
    %c0_22 = arith.constant 0 : index
    %62 = vector.load %arg6[%61, %c0_22] : memref<16x1xi32, #tpu.memory_space<vmem>>, vector<8x1xi32>
    tpu.vector_store %arg6[%61, %c0_22], %60 {strides = array<i32>} : memref<16x1xi32, #tpu.memory_space<vmem>>, vector<8x1xi32>,
    %63 = arith.index_cast %6 : i32 to index
    %c0_23 = arith.constant 0 : index
    %64 = vector.load %arg7[%63, %c0_23] : memref<16x1xi32, #tpu.memory_space<vmem>>, vector<8x1xi32>
    %65 = arith.maxsi %64, %39 : vector<8x1xi32>
    %66 = arith.index_cast %6 : i32 to index
    %c0_24 = arith.constant 0 : index
    %67 = vector.load %arg7[%66, %c0_24] : memref<16x1xi32, #tpu.memory_space<vmem>>, vector<8x1xi32>
    tpu.vector_store %arg7[%66, %c0_24], %65 {strides = array<i32>} : memref<16x1xi32, #tpu.memory_space<vmem>>, vector<8x1xi32>,
    %c1_i32_25 = arith.constant 1 : i32
    %c8_i32_26 = arith.constant 8 : i32
    %68 = arith.muli %c1_i32_25, %c8_i32_26 : i32
    %69 = tpu.assume_multiple %68, 8 : i32
    %c8_i32_27 = arith.constant 8 : i32
    %70 = arith.muli %c1_i32_25, %c8_i32_27 : i32
    %c1_i32_28 = arith.constant 1 : i32
    %71 = arith.addi %70, %c1_i32_28 : i32
    %72 = tpu.iota {dimensions = array<i32: 0>} : vector<8x1x1xi32>
    %73 = vector.broadcast %71 : i32 to vector<8x1x1xi32>
    %74 = arith.addi %72, %73 : vector<8x1x1xi32>
    %75 = vector.shape_cast %4 : vector<64x64xi32> to vector<1x64x64xi32>
    %76 = vector.broadcast %75 : vector<1x64x64xi32> to vector<8x64x64xi32>
    %77 = vector.broadcast %74 : vector<8x1x1xi32> to vector<8x64x64xi32>
    %78 = arith.cmpi eq, %76, %77 : vector<8x64x64xi32>
    %cst_29 = arith.constant 1.000000e+00 : f32
    %cst_30 = arith.constant 0.000000e+00 : f32
    %79 = vector.broadcast %cst_29 : f32 to vector<8x64x64xf32>
    %80 = vector.broadcast %cst_30 : f32 to vector<8x64x64xf32>
    %81 = arith.select %78, %79, %80 : vector<8x64x64xi1>, vector<8x64x64xf32>
    %cst_31 = arith.constant dense<0xFF800000> : vector<8x64xf32>
    %82 = vector.multi_reduction <maximumf>, %81, %cst_31 [2] : vector<8x64x64xf32> to vector<8x64xf32>
    %cst_32 = arith.constant 0.000000e+00 : f32
    %83 = vector.broadcast %cst_32 : f32 to vector<8x64xf32>
    %84 = arith.cmpf ogt, %82, %83 : vector<8x64xf32>
    %cst_33 = arith.constant 1.000000e+00 : f32
    %cst_34 = arith.constant 0.000000e+00 : f32
    %85 = vector.broadcast %cst_33 : f32 to vector<8x64x64xf32>
    %86 = vector.broadcast %cst_34 : f32 to vector<8x64x64xf32>
    %87 = arith.select %78, %85, %86 : vector<8x64x64xi1>, vector<8x64x64xf32>
    %cst_35 = arith.constant dense<0xFF800000> : vector<8x64xf32>
    %88 = vector.multi_reduction <maximumf>, %87, %cst_35 [1] : vector<8x64x64xf32> to vector<8x64xf32>
    %cst_36 = arith.constant 0.000000e+00 : f32
    %89 = vector.broadcast %cst_36 : f32 to vector<8x64xf32>
    %90 = arith.cmpf ogt, %88, %89 : vector<8x64xf32>
    %91 = tpu.iota {dimensions = array<i32: 1>} : vector<8x64xi32>
    %92 = tpu.iota {dimensions = array<i32: 1>} : vector<8x64xi32>
    %93 = vector.broadcast %3 : i32 to vector<8x64xi32>
    %94 = arith.addi %92, %93 : vector<8x64xi32>
    %c129_i32_37 = arith.constant 129 : i32
    %95 = vector.broadcast %c129_i32_37 : i32 to vector<8x64xi32>
    %96 = arith.select %90, %91, %95 : vector<8x64xi1>, vector<8x64xi32>
    %cst_38 = arith.constant dense<2147483647> : vector<8xi32>
    %97 = vector.multi_reduction <minsi>, %96, %cst_38 [1] : vector<8x64xi32> to vector<8xi32>
    %98 = vector.shape_cast %97 : vector<8xi32> to vector<8x1xi32>
    %c-1_i32_39 = arith.constant -1 : i32
    %99 = vector.broadcast %c-1_i32_39 : i32 to vector<8x64xi32>
    %100 = arith.select %90, %91, %99 : vector<8x64xi1>, vector<8x64xi32>
    %cst_40 = arith.constant dense<-2147483648> : vector<8xi32>
    %101 = vector.multi_reduction <maxsi>, %100, %cst_40 [1] : vector<8x64xi32> to vector<8xi32>
    %102 = vector.shape_cast %101 : vector<8xi32> to vector<8x1xi32>
    %c129_i32_41 = arith.constant 129 : i32
    %103 = vector.broadcast %c129_i32_41 : i32 to vector<8x64xi32>
    %104 = arith.select %84, %94, %103 : vector<8x64xi1>, vector<8x64xi32>
    %cst_42 = arith.constant dense<2147483647> : vector<8xi32>
    %105 = vector.multi_reduction <minsi>, %104, %cst_42 [1] : vector<8x64xi32> to vector<8xi32>
    %106 = vector.shape_cast %105 : vector<8xi32> to vector<8x1xi32>
    %c-1_i32_43 = arith.constant -1 : i32
    %107 = vector.broadcast %c-1_i32_43 : i32 to vector<8x64xi32>
    %108 = arith.select %84, %94, %107 : vector<8x64xi1>, vector<8x64xi32>
    %cst_44 = arith.constant dense<-2147483648> : vector<8xi32>
    %109 = vector.multi_reduction <maxsi>, %108, %cst_44 [1] : vector<8x64xi32> to vector<8xi32>
    %110 = vector.shape_cast %109 : vector<8xi32> to vector<8x1xi32>
    %111 = arith.index_cast %69 : i32 to index
    %c0_45 = arith.constant 0 : index
    %112 = vector.load %arg4[%111, %c0_45] : memref<16x1xi32, #tpu.memory_space<vmem>>, vector<8x1xi32>
    %113 = arith.minsi %112, %106 : vector<8x1xi32>
    %114 = arith.index_cast %69 : i32 to index
    %c0_46 = arith.constant 0 : index
    %115 = vector.load %arg4[%114, %c0_46] : memref<16x1xi32, #tpu.memory_space<vmem>>, vector<8x1xi32>
    tpu.vector_store %arg4[%114, %c0_46], %113 {strides = array<i32>} : memref<16x1xi32, #tpu.memory_space<vmem>>, vector<8x1xi32>,
    %116 = arith.index_cast %69 : i32 to index
    %c0_47 = arith.constant 0 : index
    %117 = vector.load %arg5[%116, %c0_47] : memref<16x1xi32, #tpu.memory_space<vmem>>, vector<8x1xi32>
    %118 = arith.minsi %117, %98 : vector<8x1xi32>
    %119 = arith.index_cast %69 : i32 to index
    %c0_48 = arith.constant 0 : index
    %120 = vector.load %arg5[%119, %c0_48] : memref<16x1xi32, #tpu.memory_space<vmem>>, vector<8x1xi32>
    tpu.vector_store %arg5[%119, %c0_48], %118 {strides = array<i32>} : memref<16x1xi32, #tpu.memory_space<vmem>>, vector<8x1xi32>,
    %121 = arith.index_cast %69 : i32 to index
    %c0_49 = arith.constant 0 : index
    %122 = vector.load %arg6[%121, %c0_49] : memref<16x1xi32, #tpu.memory_space<vmem>>, vector<8x1xi32>
    %123 = arith.maxsi %122, %110 : vector<8x1xi32>
    %124 = arith.index_cast %69 : i32 to index
    %c0_50 = arith.constant 0 : index
    %125 = vector.load %arg6[%124, %c0_50] : memref<16x1xi32, #tpu.memory_space<vmem>>, vector<8x1xi32>
    tpu.vector_store %arg6[%124, %c0_50], %123 {strides = array<i32>} : memref<16x1xi32, #tpu.memory_space<vmem>>, vector<8x1xi32>,
    %126 = arith.index_cast %69 : i32 to index
    %c0_51 = arith.constant 0 : index
    %127 = vector.load %arg7[%126, %c0_51] : memref<16x1xi32, #tpu.memory_space<vmem>>, vector<8x1xi32>
    %128 = arith.maxsi %127, %102 : vector<8x1xi32>
    %129 = arith.index_cast %69 : i32 to index
    %c0_52 = arith.constant 0 : index
    %130 = vector.load %arg7[%129, %c0_52] : memref<16x1xi32, #tpu.memory_space<vmem>>, vector<8x1xi32>
    tpu.vector_store %arg7[%129, %c0_52], %128 {strides = array<i32>} : memref<16x1xi32, #tpu.memory_space<vmem>>, vector<8x1xi32>,
    %c2_i32 = arith.constant 2 : i32
    %c0_i32_53 = arith.constant 0 : i32
    %131 = arith.cmpi eq, %arg0, %c0_i32_53 : i32
    %132 = arith.extui %131 : i1 to i32
    %c0_i32_54 = arith.constant 0 : i32
    %133 = arith.cmpi ne, %132, %c0_i32_54 : i32
    scf.if %133 {
      %c0_55 = arith.constant 0 : index
      %c0_56 = arith.constant 0 : index
      %134 = vector.load %arg4[%c0_55, %c0_56] : memref<16x1xi32, #tpu.memory_space<vmem>>, vector<16x1xi32>
      %c0_57 = arith.constant 0 : index
      %c0_58 = arith.constant 0 : index
      %135 = vector.load %arg5[%c0_57, %c0_58] : memref<16x1xi32, #tpu.memory_space<vmem>>, vector<16x1xi32>
      %c0_59 = arith.constant 0 : index
      %c0_60 = arith.constant 0 : index
      %136 = vector.load %arg6[%c0_59, %c0_60] : memref<16x1xi32, #tpu.memory_space<vmem>>, vector<16x1xi32>
      %c0_61 = arith.constant 0 : index
      %c0_62 = arith.constant 0 : index
      %137 = vector.load %arg7[%c0_61, %c0_62] : memref<16x1xi32, #tpu.memory_space<vmem>>, vector<16x1xi32>
      %c0_i32_63 = arith.constant 0 : i32
      %138 = vector.broadcast %c0_i32_63 : i32 to vector<16x1xi32>
      %139 = arith.cmpi sge, %136, %138 : vector<16x1xi32>
      %140 = arith.subi %137, %135 : vector<16x1xi32>
      %141 = arith.subi %136, %134 : vector<16x1xi32>
      %142 = arith.muli %140, %141 : vector<16x1xi32>
      %c1_i32_64 = arith.constant 1 : i32
      %143 = vector.broadcast %c1_i32_64 : i32 to vector<16x1xi32>
      %144 = arith.cmpi sge, %142, %143 : vector<16x1xi32>
      %145 = arith.andi %139, %144 : vector<16x1xi1>
      %146 = tpu.iota {dimensions = array<i32: 0>} : vector<16x16xi32>
      %147 = tpu.iota {dimensions = array<i32: 1>} : vector<16x16xi32>
      %148 = arith.cmpi eq, %146, %147 : vector<16x16xi32>
      %149 = vector.shape_cast %136 : vector<16x1xi32> to vector<16x1xi32>
      %150 = vector.broadcast %149 : vector<16x1xi32> to vector<16x16xi32>
      %c0_i32_65 = arith.constant 0 : i32
      %151 = vector.broadcast %c0_i32_65 : i32 to vector<16x16xi32>
      %152 = arith.select %148, %150, %151 : vector<16x16xi1>, vector<16x16xi32>
      %cst_66 = arith.constant dense<0> : vector<16xi32>
      %153 = vector.multi_reduction <add>, %152, %cst_66 [0] : vector<16x16xi32> to vector<16xi32>
      %154 = vector.shape_cast %153 : vector<16xi32> to vector<1x16xi32>
      %155 = vector.shape_cast %137 : vector<16x1xi32> to vector<16x1xi32>
      %156 = vector.broadcast %155 : vector<16x1xi32> to vector<16x16xi32>
      %c0_i32_67 = arith.constant 0 : i32
      %157 = vector.broadcast %c0_i32_67 : i32 to vector<16x16xi32>
      %158 = arith.select %148, %156, %157 : vector<16x16xi1>, vector<16x16xi32>
      %cst_68 = arith.constant dense<0> : vector<16xi32>
      %159 = vector.multi_reduction <add>, %158, %cst_68 [0] : vector<16x16xi32> to vector<16xi32>
      %160 = vector.shape_cast %159 : vector<16xi32> to vector<1x16xi32>
      %161 = arith.extui %145 : vector<16x1xi1> to vector<16x1xi32>
      %162 = vector.shape_cast %161 : vector<16x1xi32> to vector<16x1xi32>
      %163 = vector.broadcast %162 : vector<16x1xi32> to vector<16x16xi32>
      %c0_i32_69 = arith.constant 0 : i32
      %164 = vector.broadcast %c0_i32_69 : i32 to vector<16x16xi32>
      %165 = arith.select %148, %163, %164 : vector<16x16xi1>, vector<16x16xi32>
      %cst_70 = arith.constant dense<0> : vector<16xi32>
      %166 = vector.multi_reduction <add>, %165, %cst_70 [0] : vector<16x16xi32> to vector<16xi32>
      %167 = vector.shape_cast %166 : vector<16xi32> to vector<1x16xi32>
      %c0_i32_71 = arith.constant 0 : i32
      %168 = vector.broadcast %c0_i32_71 : i32 to vector<1x16xi32>
      %169 = arith.cmpi sgt, %167, %168 : vector<1x16xi32>
      %170 = vector.broadcast %160 : vector<1x16xi32> to vector<16x16xi32>
      %171 = vector.broadcast %135 : vector<16x1xi32> to vector<16x16xi32>
      %172 = arith.subi %170, %171 : vector<16x16xi32>
      %173 = vector.broadcast %154 : vector<1x16xi32> to vector<16x16xi32>
      %174 = vector.broadcast %134 : vector<16x1xi32> to vector<16x16xi32>
      %175 = arith.subi %173, %174 : vector<16x16xi32>
      %176 = arith.muli %172, %175 : vector<16x16xi32>
      %177 = arith.cmpi slt, %146, %147 : vector<16x16xi32>
      %178 = vector.broadcast %145 : vector<16x1xi1> to vector<16x16xi1>
      %179 = arith.andi %177, %178 : vector<16x16xi1>
      %180 = vector.broadcast %169 : vector<1x16xi1> to vector<16x16xi1>
      %181 = arith.andi %179, %180 : vector<16x16xi1>
      %c64_i32_72 = arith.constant 64 : i32
      %182 = vector.broadcast %c64_i32_72 : i32 to vector<16x16xi32>
      %183 = arith.cmpi sge, %176, %182 : vector<16x16xi32>
      %184 = arith.andi %181, %183 : vector<16x16xi1>
      %185 = arith.extui %184 : vector<16x16xi1> to vector<16x16xi32>
      %c0_73 = arith.constant 0 : index
      %c0_74 = arith.constant 0 : index
      %186 = vector.load %arg3[%c0_73, %c0_74] : memref<16x16xi32, #tpu.memory_space<vmem>>, vector<16x16xi32>
      tpu.vector_store %arg3[%c0_73, %c0_74], %185 {strides = array<i32>} : memref<16x16xi32, #tpu.memory_space<vmem>>, vector<16x16xi32>,
      %c32_i32 = arith.constant 32 : i32
      %187 = vector.broadcast %c32_i32 : i32 to vector<16x1xi32>
      %188 = arith.muli %134, %187 : vector<16x1xi32>
      %189 = arith.sitofp %188 : vector<16x1xi32> to vector<16x1xf32>
      %cst_75 = arith.constant 1.562500e-02 : f32
      %190 = vector.broadcast %cst_75 : f32 to vector<16x1xf32>
      %191 = arith.mulf %189, %190 : vector<16x1xf32>
      %192 = arith.fptosi %191 : vector<16x1xf32> to vector<16x1xi32>
      %c64_i32_76 = arith.constant 64 : i32
      %193 = vector.broadcast %c64_i32_76 : i32 to vector<16x1xi32>
      %194 = arith.muli %192, %193 : vector<16x1xi32>
      %195 = arith.cmpi sgt, %194, %188 : vector<16x1xi32>
      %c1_i32_77 = arith.constant 1 : i32
      %196 = vector.broadcast %c1_i32_77 : i32 to vector<16x1xi32>
      %197 = arith.subi %192, %196 : vector<16x1xi32>
      %198 = arith.select %195, %197, %192 : vector<16x1xi1>, vector<16x1xi32>
      %c1_i32_78 = arith.constant 1 : i32
      %199 = vector.broadcast %c1_i32_78 : i32 to vector<16x1xi32>
      %200 = arith.addi %198, %199 : vector<16x1xi32>
      %c64_i32_79 = arith.constant 64 : i32
      %201 = vector.broadcast %c64_i32_79 : i32 to vector<16x1xi32>
      %202 = arith.muli %200, %201 : vector<16x1xi32>
      %203 = arith.cmpi sle, %202, %188 : vector<16x1xi32>
      %c1_i32_80 = arith.constant 1 : i32
      %204 = vector.broadcast %c1_i32_80 : i32 to vector<16x1xi32>
      %205 = arith.addi %198, %204 : vector<16x1xi32>
      %206 = arith.select %203, %205, %198 : vector<16x1xi1>, vector<16x1xi32>
      %c64_i32_81 = arith.constant 64 : i32
      %207 = vector.broadcast %c64_i32_81 : i32 to vector<16x1xi32>
      %208 = arith.muli %206, %207 : vector<16x1xi32>
      %209 = arith.cmpi sgt, %208, %188 : vector<16x1xi32>
      %c1_i32_82 = arith.constant 1 : i32
      %210 = vector.broadcast %c1_i32_82 : i32 to vector<16x1xi32>
      %211 = arith.subi %206, %210 : vector<16x1xi32>
      %212 = arith.select %209, %211, %206 : vector<16x1xi1>, vector<16x1xi32>
      %c1_i32_83 = arith.constant 1 : i32
      %213 = vector.broadcast %c1_i32_83 : i32 to vector<16x1xi32>
      %214 = arith.addi %212, %213 : vector<16x1xi32>
      %c64_i32_84 = arith.constant 64 : i32
      %215 = vector.broadcast %c64_i32_84 : i32 to vector<16x1xi32>
      %216 = arith.muli %214, %215 : vector<16x1xi32>
      %217 = arith.cmpi sle, %216, %188 : vector<16x1xi32>
      %c1_i32_85 = arith.constant 1 : i32
      %218 = vector.broadcast %c1_i32_85 : i32 to vector<16x1xi32>
      %219 = arith.addi %212, %218 : vector<16x1xi32>
      %220 = arith.select %217, %219, %212 : vector<16x1xi1>, vector<16x1xi32>
      %c64_i32_86 = arith.constant 64 : i32
      %221 = vector.broadcast %c64_i32_86 : i32 to vector<16x1xi32>
      %222 = arith.muli %220, %221 : vector<16x1xi32>
      %223 = arith.cmpi sgt, %222, %188 : vector<16x1xi32>
      %c1_i32_87 = arith.constant 1 : i32
      %224 = vector.broadcast %c1_i32_87 : i32 to vector<16x1xi32>
      %225 = arith.subi %220, %224 : vector<16x1xi32>
      %226 = arith.select %223, %225, %220 : vector<16x1xi1>, vector<16x1xi32>
      %c1_i32_88 = arith.constant 1 : i32
      %227 = vector.broadcast %c1_i32_88 : i32 to vector<16x1xi32>
      %228 = arith.addi %226, %227 : vector<16x1xi32>
      %c64_i32_89 = arith.constant 64 : i32
      %229 = vector.broadcast %c64_i32_89 : i32 to vector<16x1xi32>
      %230 = arith.muli %228, %229 : vector<16x1xi32>
      %231 = arith.cmpi sle, %230, %188 : vector<16x1xi32>
      %c1_i32_90 = arith.constant 1 : i32
      %232 = vector.broadcast %c1_i32_90 : i32 to vector<16x1xi32>
      %233 = arith.addi %226, %232 : vector<16x1xi32>
      %234 = arith.select %231, %233, %226 : vector<16x1xi1>, vector<16x1xi32>
      %c64_i32_91 = arith.constant 64 : i32
      %235 = vector.broadcast %c64_i32_91 : i32 to vector<16x1xi32>
      %236 = arith.muli %234, %235 : vector<16x1xi32>
      %237 = arith.cmpi sgt, %236, %188 : vector<16x1xi32>
      %c1_i32_92 = arith.constant 1 : i32
      %238 = vector.broadcast %c1_i32_92 : i32 to vector<16x1xi32>
      %239 = arith.subi %234, %238 : vector<16x1xi32>
      %240 = arith.select %237, %239, %234 : vector<16x1xi1>, vector<16x1xi32>
      %c1_i32_93 = arith.constant 1 : i32
      %241 = vector.broadcast %c1_i32_93 : i32 to vector<16x1xi32>
      %242 = arith.addi %240, %241 : vector<16x1xi32>
      %c64_i32_94 = arith.constant 64 : i32
      %243 = vector.broadcast %c64_i32_94 : i32 to vector<16x1xi32>
      %244 = arith.muli %242, %243 : vector<16x1xi32>
      %245 = arith.cmpi sle, %244, %188 : vector<16x1xi32>
      %c1_i32_95 = arith.constant 1 : i32
      %246 = vector.broadcast %c1_i32_95 : i32 to vector<16x1xi32>
      %247 = arith.addi %240, %246 : vector<16x1xi32>
      %248 = arith.select %245, %247, %240 : vector<16x1xi1>, vector<16x1xi32>
      %c32_i32_96 = arith.constant 32 : i32
      %249 = vector.broadcast %c32_i32_96 : i32 to vector<16x1xi32>
      %250 = arith.muli %135, %249 : vector<16x1xi32>
      %251 = arith.sitofp %250 : vector<16x1xi32> to vector<16x1xf32>
      %cst_97 = arith.constant 1.562500e-02 : f32
      %252 = vector.broadcast %cst_97 : f32 to vector<16x1xf32>
      %253 = arith.mulf %251, %252 : vector<16x1xf32>
      %254 = arith.fptosi %253 : vector<16x1xf32> to vector<16x1xi32>
      %c64_i32_98 = arith.constant 64 : i32
      %255 = vector.broadcast %c64_i32_98 : i32 to vector<16x1xi32>
      %256 = arith.muli %254, %255 : vector<16x1xi32>
      %257 = arith.cmpi sgt, %256, %250 : vector<16x1xi32>
      %c1_i32_99 = arith.constant 1 : i32
      %258 = vector.broadcast %c1_i32_99 : i32 to vector<16x1xi32>
      %259 = arith.subi %254, %258 : vector<16x1xi32>
      %260 = arith.select %257, %259, %254 : vector<16x1xi1>, vector<16x1xi32>
      %c1_i32_100 = arith.constant 1 : i32
      %261 = vector.broadcast %c1_i32_100 : i32 to vector<16x1xi32>
      %262 = arith.addi %260, %261 : vector<16x1xi32>
      %c64_i32_101 = arith.constant 64 : i32
      %263 = vector.broadcast %c64_i32_101 : i32 to vector<16x1xi32>
      %264 = arith.muli %262, %263 : vector<16x1xi32>
      %265 = arith.cmpi sle, %264, %250 : vector<16x1xi32>
      %c1_i32_102 = arith.constant 1 : i32
      %266 = vector.broadcast %c1_i32_102 : i32 to vector<16x1xi32>
      %267 = arith.addi %260, %266 : vector<16x1xi32>
      %268 = arith.select %265, %267, %260 : vector<16x1xi1>, vector<16x1xi32>
      %c64_i32_103 = arith.constant 64 : i32
      %269 = vector.broadcast %c64_i32_103 : i32 to vector<16x1xi32>
      %270 = arith.muli %268, %269 : vector<16x1xi32>
      %271 = arith.cmpi sgt, %270, %250 : vector<16x1xi32>
      %c1_i32_104 = arith.constant 1 : i32
      %272 = vector.broadcast %c1_i32_104 : i32 to vector<16x1xi32>
      %273 = arith.subi %268, %272 : vector<16x1xi32>
      %274 = arith.select %271, %273, %268 : vector<16x1xi1>, vector<16x1xi32>
      %c1_i32_105 = arith.constant 1 : i32
      %275 = vector.broadcast %c1_i32_105 : i32 to vector<16x1xi32>
      %276 = arith.addi %274, %275 : vector<16x1xi32>
      %c64_i32_106 = arith.constant 64 : i32
      %277 = vector.broadcast %c64_i32_106 : i32 to vector<16x1xi32>
      %278 = arith.muli %276, %277 : vector<16x1xi32>
      %279 = arith.cmpi sle, %278, %250 : vector<16x1xi32>
      %c1_i32_107 = arith.constant 1 : i32
      %280 = vector.broadcast %c1_i32_107 : i32 to vector<16x1xi32>
      %281 = arith.addi %274, %280 : vector<16x1xi32>
      %282 = arith.select %279, %281, %274 : vector<16x1xi1>, vector<16x1xi32>
      %c64_i32_108 = arith.constant 64 : i32
      %283 = vector.broadcast %c64_i32_108 : i32 to vector<16x1xi32>
      %284 = arith.muli %282, %283 : vector<16x1xi32>
      %285 = arith.cmpi sgt, %284, %250 : vector<16x1xi32>
      %c1_i32_109 = arith.constant 1 : i32
      %286 = vector.broadcast %c1_i32_109 : i32 to vector<16x1xi32>
      %287 = arith.subi %282, %286 : vector<16x1xi32>
      %288 = arith.select %285, %287, %282 : vector<16x1xi1>, vector<16x1xi32>
      %c1_i32_110 = arith.constant 1 : i32
      %289 = vector.broadcast %c1_i32_110 : i32 to vector<16x1xi32>
      %290 = arith.addi %288, %289 : vector<16x1xi32>
      %c64_i32_111 = arith.constant 64 : i32
      %291 = vector.broadcast %c64_i32_111 : i32 to vector<16x1xi32>
      %292 = arith.muli %290, %291 : vector<16x1xi32>
      %293 = arith.cmpi sle, %292, %250 : vector<16x1xi32>
      %c1_i32_112 = arith.constant 1 : i32
      %294 = vector.broadcast %c1_i32_112 : i32 to vector<16x1xi32>
      %295 = arith.addi %288, %294 : vector<16x1xi32>
      %296 = arith.select %293, %295, %288 : vector<16x1xi1>, vector<16x1xi32>
      %c64_i32_113 = arith.constant 64 : i32
      %297 = vector.broadcast %c64_i32_113 : i32 to vector<16x1xi32>
      %298 = arith.muli %296, %297 : vector<16x1xi32>
      %299 = arith.cmpi sgt, %298, %250 : vector<16x1xi32>
      %c1_i32_114 = arith.constant 1 : i32
      %300 = vector.broadcast %c1_i32_114 : i32 to vector<16x1xi32>
      %301 = arith.subi %296, %300 : vector<16x1xi32>
      %302 = arith.select %299, %301, %296 : vector<16x1xi1>, vector<16x1xi32>
      %c1_i32_115 = arith.constant 1 : i32
      %303 = vector.broadcast %c1_i32_115 : i32 to vector<16x1xi32>
      %304 = arith.addi %302, %303 : vector<16x1xi32>
      %c64_i32_116 = arith.constant 64 : i32
      %305 = vector.broadcast %c64_i32_116 : i32 to vector<16x1xi32>
      %306 = arith.muli %304, %305 : vector<16x1xi32>
      %307 = arith.cmpi sle, %306, %250 : vector<16x1xi32>
      %c1_i32_117 = arith.constant 1 : i32
      %308 = vector.broadcast %c1_i32_117 : i32 to vector<16x1xi32>
      %309 = arith.addi %302, %308 : vector<16x1xi32>
      %310 = arith.select %307, %309, %302 : vector<16x1xi1>, vector<16x1xi32>
      %c32_i32_118 = arith.constant 32 : i32
      %311 = vector.broadcast %c32_i32_118 : i32 to vector<1x16xi32>
      %312 = arith.muli %154, %311 : vector<1x16xi32>
      %313 = arith.sitofp %312 : vector<1x16xi32> to vector<1x16xf32>
      %cst_119 = arith.constant 1.562500e-02 : f32
      %314 = vector.broadcast %cst_119 : f32 to vector<1x16xf32>
      %315 = arith.mulf %313, %314 : vector<1x16xf32>
      %316 = arith.fptosi %315 : vector<1x16xf32> to vector<1x16xi32>
      %c64_i32_120 = arith.constant 64 : i32
      %317 = vector.broadcast %c64_i32_120 : i32 to vector<1x16xi32>
      %318 = arith.muli %316, %317 : vector<1x16xi32>
      %319 = arith.cmpi sgt, %318, %312 : vector<1x16xi32>
      %c1_i32_121 = arith.constant 1 : i32
      %320 = vector.broadcast %c1_i32_121 : i32 to vector<1x16xi32>
      %321 = arith.subi %316, %320 : vector<1x16xi32>
      %322 = arith.select %319, %321, %316 : vector<1x16xi1>, vector<1x16xi32>
      %c1_i32_122 = arith.constant 1 : i32
      %323 = vector.broadcast %c1_i32_122 : i32 to vector<1x16xi32>
      %324 = arith.addi %322, %323 : vector<1x16xi32>
      %c64_i32_123 = arith.constant 64 : i32
      %325 = vector.broadcast %c64_i32_123 : i32 to vector<1x16xi32>
      %326 = arith.muli %324, %325 : vector<1x16xi32>
      %327 = arith.cmpi sle, %326, %312 : vector<1x16xi32>
      %c1_i32_124 = arith.constant 1 : i32
      %328 = vector.broadcast %c1_i32_124 : i32 to vector<1x16xi32>
      %329 = arith.addi %322, %328 : vector<1x16xi32>
      %330 = arith.select %327, %329, %322 : vector<1x16xi1>, vector<1x16xi32>
      %c64_i32_125 = arith.constant 64 : i32
      %331 = vector.broadcast %c64_i32_125 : i32 to vector<1x16xi32>
      %332 = arith.muli %330, %331 : vector<1x16xi32>
      %333 = arith.cmpi sgt, %332, %312 : vector<1x16xi32>
      %c1_i32_126 = arith.constant 1 : i32
      %334 = vector.broadcast %c1_i32_126 : i32 to vector<1x16xi32>
      %335 = arith.subi %330, %334 : vector<1x16xi32>
      %336 = arith.select %333, %335, %330 : vector<1x16xi1>, vector<1x16xi32>
      %c1_i32_127 = arith.constant 1 : i32
      %337 = vector.broadcast %c1_i32_127 : i32 to vector<1x16xi32>
      %338 = arith.addi %336, %337 : vector<1x16xi32>
      %c64_i32_128 = arith.constant 64 : i32
      %339 = vector.broadcast %c64_i32_128 : i32 to vector<1x16xi32>
      %340 = arith.muli %338, %339 : vector<1x16xi32>
      %341 = arith.cmpi sle, %340, %312 : vector<1x16xi32>
      %c1_i32_129 = arith.constant 1 : i32
      %342 = vector.broadcast %c1_i32_129 : i32 to vector<1x16xi32>
      %343 = arith.addi %336, %342 : vector<1x16xi32>
      %344 = arith.select %341, %343, %336 : vector<1x16xi1>, vector<1x16xi32>
      %c64_i32_130 = arith.constant 64 : i32
      %345 = vector.broadcast %c64_i32_130 : i32 to vector<1x16xi32>
      %346 = arith.muli %344, %345 : vector<1x16xi32>
      %347 = arith.cmpi sgt, %346, %312 : vector<1x16xi32>
      %c1_i32_131 = arith.constant 1 : i32
      %348 = vector.broadcast %c1_i32_131 : i32 to vector<1x16xi32>
      %349 = arith.subi %344, %348 : vector<1x16xi32>
      %350 = arith.select %347, %349, %344 : vector<1x16xi1>, vector<1x16xi32>
      %c1_i32_132 = arith.constant 1 : i32
      %351 = vector.broadcast %c1_i32_132 : i32 to vector<1x16xi32>
      %352 = arith.addi %350, %351 : vector<1x16xi32>
      %c64_i32_133 = arith.constant 64 : i32
      %353 = vector.broadcast %c64_i32_133 : i32 to vector<1x16xi32>
      %354 = arith.muli %352, %353 : vector<1x16xi32>
      %355 = arith.cmpi sle, %354, %312 : vector<1x16xi32>
      %c1_i32_134 = arith.constant 1 : i32
      %356 = vector.broadcast %c1_i32_134 : i32 to vector<1x16xi32>
      %357 = arith.addi %350, %356 : vector<1x16xi32>
      %358 = arith.select %355, %357, %350 : vector<1x16xi1>, vector<1x16xi32>
      %c64_i32_135 = arith.constant 64 : i32
      %359 = vector.broadcast %c64_i32_135 : i32 to vector<1x16xi32>
      %360 = arith.muli %358, %359 : vector<1x16xi32>
      %361 = arith.cmpi sgt, %360, %312 : vector<1x16xi32>
      %c1_i32_136 = arith.constant 1 : i32
      %362 = vector.broadcast %c1_i32_136 : i32 to vector<1x16xi32>
      %363 = arith.subi %358, %362 : vector<1x16xi32>
      %364 = arith.select %361, %363, %358 : vector<1x16xi1>, vector<1x16xi32>
      %c1_i32_137 = arith.constant 1 : i32
      %365 = vector.broadcast %c1_i32_137 : i32 to vector<1x16xi32>
      %366 = arith.addi %364, %365 : vector<1x16xi32>
      %c64_i32_138 = arith.constant 64 : i32
      %367 = vector.broadcast %c64_i32_138 : i32 to vector<1x16xi32>
      %368 = arith.muli %366, %367 : vector<1x16xi32>
      %369 = arith.cmpi sle, %368, %312 : vector<1x16xi32>
      %c1_i32_139 = arith.constant 1 : i32
      %370 = vector.broadcast %c1_i32_139 : i32 to vector<1x16xi32>
      %371 = arith.addi %364, %370 : vector<1x16xi32>
      %372 = arith.select %369, %371, %364 : vector<1x16xi1>, vector<1x16xi32>
      %c32_i32_140 = arith.constant 32 : i32
      %373 = vector.broadcast %c32_i32_140 : i32 to vector<1x16xi32>
      %374 = arith.muli %160, %373 : vector<1x16xi32>
      %375 = arith.sitofp %374 : vector<1x16xi32> to vector<1x16xf32>
      %cst_141 = arith.constant 1.562500e-02 : f32
      %376 = vector.broadcast %cst_141 : f32 to vector<1x16xf32>
      %377 = arith.mulf %375, %376 : vector<1x16xf32>
      %378 = arith.fptosi %377 : vector<1x16xf32> to vector<1x16xi32>
      %c64_i32_142 = arith.constant 64 : i32
      %379 = vector.broadcast %c64_i32_142 : i32 to vector<1x16xi32>
      %380 = arith.muli %378, %379 : vector<1x16xi32>
      %381 = arith.cmpi sgt, %380, %374 : vector<1x16xi32>
      %c1_i32_143 = arith.constant 1 : i32
      %382 = vector.broadcast %c1_i32_143 : i32 to vector<1x16xi32>
      %383 = arith.subi %378, %382 : vector<1x16xi32>
      %384 = arith.select %381, %383, %378 : vector<1x16xi1>, vector<1x16xi32>
      %c1_i32_144 = arith.constant 1 : i32
      %385 = vector.broadcast %c1_i32_144 : i32 to vector<1x16xi32>
      %386 = arith.addi %384, %385 : vector<1x16xi32>
      %c64_i32_145 = arith.constant 64 : i32
      %387 = vector.broadcast %c64_i32_145 : i32 to vector<1x16xi32>
      %388 = arith.muli %386, %387 : vector<1x16xi32>
      %389 = arith.cmpi sle, %388, %374 : vector<1x16xi32>
      %c1_i32_146 = arith.constant 1 : i32
      %390 = vector.broadcast %c1_i32_146 : i32 to vector<1x16xi32>
      %391 = arith.addi %384, %390 : vector<1x16xi32>
      %392 = arith.select %389, %391, %384 : vector<1x16xi1>, vector<1x16xi32>
      %c64_i32_147 = arith.constant 64 : i32
      %393 = vector.broadcast %c64_i32_147 : i32 to vector<1x16xi32>
      %394 = arith.muli %392, %393 : vector<1x16xi32>
      %395 = arith.cmpi sgt, %394, %374 : vector<1x16xi32>
      %c1_i32_148 = arith.constant 1 : i32
      %396 = vector.broadcast %c1_i32_148 : i32 to vector<1x16xi32>
      %397 = arith.subi %392, %396 : vector<1x16xi32>
      %398 = arith.select %395, %397, %392 : vector<1x16xi1>, vector<1x16xi32>
      %c1_i32_149 = arith.constant 1 : i32
      %399 = vector.broadcast %c1_i32_149 : i32 to vector<1x16xi32>
      %400 = arith.addi %398, %399 : vector<1x16xi32>
      %c64_i32_150 = arith.constant 64 : i32
      %401 = vector.broadcast %c64_i32_150 : i32 to vector<1x16xi32>
      %402 = arith.muli %400, %401 : vector<1x16xi32>
      %403 = arith.cmpi sle, %402, %374 : vector<1x16xi32>
      %c1_i32_151 = arith.constant 1 : i32
      %404 = vector.broadcast %c1_i32_151 : i32 to vector<1x16xi32>
      %405 = arith.addi %398, %404 : vector<1x16xi32>
      %406 = arith.select %403, %405, %398 : vector<1x16xi1>, vector<1x16xi32>
      %c64_i32_152 = arith.constant 64 : i32
      %407 = vector.broadcast %c64_i32_152 : i32 to vector<1x16xi32>
      %408 = arith.muli %406, %407 : vector<1x16xi32>
      %409 = arith.cmpi sgt, %408, %374 : vector<1x16xi32>
      %c1_i32_153 = arith.constant 1 : i32
      %410 = vector.broadcast %c1_i32_153 : i32 to vector<1x16xi32>
      %411 = arith.subi %406, %410 : vector<1x16xi32>
      %412 = arith.select %409, %411, %406 : vector<1x16xi1>, vector<1x16xi32>
      %c1_i32_154 = arith.constant 1 : i32
      %413 = vector.broadcast %c1_i32_154 : i32 to vector<1x16xi32>
      %414 = arith.addi %412, %413 : vector<1x16xi32>
      %c64_i32_155 = arith.constant 64 : i32
      %415 = vector.broadcast %c64_i32_155 : i32 to vector<1x16xi32>
      %416 = arith.muli %414, %415 : vector<1x16xi32>
      %417 = arith.cmpi sle, %416, %374 : vector<1x16xi32>
      %c1_i32_156 = arith.constant 1 : i32
      %418 = vector.broadcast %c1_i32_156 : i32 to vector<1x16xi32>
      %419 = arith.addi %412, %418 : vector<1x16xi32>
      %420 = arith.select %417, %419, %412 : vector<1x16xi1>, vector<1x16xi32>
      %c64_i32_157 = arith.constant 64 : i32
      %421 = vector.broadcast %c64_i32_157 : i32 to vector<1x16xi32>
      %422 = arith.muli %420, %421 : vector<1x16xi32>
      %423 = arith.cmpi sgt, %422, %374 : vector<1x16xi32>
      %c1_i32_158 = arith.constant 1 : i32
      %424 = vector.broadcast %c1_i32_158 : i32 to vector<1x16xi32>
      %425 = arith.subi %420, %424 : vector<1x16xi32>
      %426 = arith.select %423, %425, %420 : vector<1x16xi1>, vector<1x16xi32>
      %c1_i32_159 = arith.constant 1 : i32
      %427 = vector.broadcast %c1_i32_159 : i32 to vector<1x16xi32>
      %428 = arith.addi %426, %427 : vector<1x16xi32>
      %c64_i32_160 = arith.constant 64 : i32
      %429 = vector.broadcast %c64_i32_160 : i32 to vector<1x16xi32>
      %430 = arith.muli %428, %429 : vector<1x16xi32>
      %431 = arith.cmpi sle, %430, %374 : vector<1x16xi32>
      %c1_i32_161 = arith.constant 1 : i32
      %432 = vector.broadcast %c1_i32_161 : i32 to vector<1x16xi32>
      %433 = arith.addi %426, %432 : vector<1x16xi32>
      %434 = arith.select %431, %433, %426 : vector<1x16xi1>, vector<1x16xi32>
      %435 = vector.shape_cast %248 : vector<16x1xi32> to vector<16x1xi32>
      %436 = vector.broadcast %435 : vector<16x1xi32> to vector<16x16xi32>
      %c0_162 = arith.constant 0 : index
      %c0_163 = arith.constant 0 : index
      %c0_164 = arith.constant 0 : index
      %437 = vector.load %arg2[%c0_162, %c0_163, %c0_164] : memref<4x16x16xi32, #tpu.memory_space<vmem>>, vector<1x16x16xi32>
      %438 = vector.shape_cast %437 : vector<1x16x16xi32> to vector<16x16xi32>
      %439 = vector.shape_cast %436 : vector<16x16xi32> to vector<1x16x16xi32>
      tpu.vector_store %arg2[%c0_162, %c0_163, %c0_164], %439 {strides = array<i32>} : memref<4x16x16xi32, #tpu.memory_space<vmem>>, vector<1x16x16xi32>,
      %440 = vector.shape_cast %310 : vector<16x1xi32> to vector<16x1xi32>
      %441 = vector.broadcast %440 : vector<16x1xi32> to vector<16x16xi32>
      %c1 = arith.constant 1 : index
      %c0_165 = arith.constant 0 : index
      %c0_166 = arith.constant 0 : index
      %442 = vector.load %arg2[%c1, %c0_165, %c0_166] : memref<4x16x16xi32, #tpu.memory_space<vmem>>, vector<1x16x16xi32>
      %443 = vector.shape_cast %442 : vector<1x16x16xi32> to vector<16x16xi32>
      %444 = vector.shape_cast %441 : vector<16x16xi32> to vector<1x16x16xi32>
      tpu.vector_store %arg2[%c1, %c0_165, %c0_166], %444 {strides = array<i32>} : memref<4x16x16xi32, #tpu.memory_space<vmem>>, vector<1x16x16xi32>,
      %445 = vector.shape_cast %372 : vector<1x16xi32> to vector<1x16xi32>
      %446 = vector.broadcast %445 : vector<1x16xi32> to vector<16x16xi32>
      %c2 = arith.constant 2 : index
      %c0_167 = arith.constant 0 : index
      %c0_168 = arith.constant 0 : index
      %447 = vector.load %arg2[%c2, %c0_167, %c0_168] : memref<4x16x16xi32, #tpu.memory_space<vmem>>, vector<1x16x16xi32>
      %448 = vector.shape_cast %447 : vector<1x16x16xi32> to vector<16x16xi32>
      %449 = vector.shape_cast %446 : vector<16x16xi32> to vector<1x16x16xi32>
      tpu.vector_store %arg2[%c2, %c0_167, %c0_168], %449 {strides = array<i32>} : memref<4x16x16xi32, #tpu.memory_space<vmem>>, vector<1x16x16xi32>,
      %450 = vector.shape_cast %434 : vector<1x16xi32> to vector<1x16xi32>
      %451 = vector.broadcast %450 : vector<1x16xi32> to vector<16x16xi32>
      %c3 = arith.constant 3 : index
      %c0_169 = arith.constant 0 : index
      %c0_170 = arith.constant 0 : index
      %452 = vector.load %arg2[%c3, %c0_169, %c0_170] : memref<4x16x16xi32, #tpu.memory_space<vmem>>, vector<1x16x16xi32>
      %453 = vector.shape_cast %452 : vector<1x16x16xi32> to vector<16x16xi32>
      %454 = vector.shape_cast %451 : vector<16x16xi32> to vector<1x16x16xi32>
      tpu.vector_store %arg2[%c3, %c0_169, %c0_170], %454 {strides = array<i32>} : memref<4x16x16xi32, #tpu.memory_space<vmem>>, vector<1x16x16xi32>,
    } else {
    }
    return
  }
  func.func @transform_0(%arg0: i32) -> (i32, i32) {
    %c0_i32 = arith.constant 0 : i32
    %c0_i32_0 = arith.constant 0 : i32
    return %arg0, %c0_i32 : i32, i32
  }
  func.func @transform_1(%arg0: i32) -> (i32, i32, i32) {
    %c0_i32 = arith.constant 0 : i32
    %c0_i32_0 = arith.constant 0 : i32
    %c0_i32_1 = arith.constant 0 : i32
    %c0_i32_2 = arith.constant 0 : i32
    return %c0_i32, %c0_i32_0, %c0_i32_1 : i32, i32, i32
  }
  func.func @transform_2(%arg0: i32) -> (i32, i32) {
    %c0_i32 = arith.constant 0 : i32
    %c0_i32_0 = arith.constant 0 : i32
    %c0_i32_1 = arith.constant 0 : i32
    return %c0_i32, %c0_i32_0 : i32, i32
  }
}

</mosaic_0001>

<bundles_post_ra>
// kernel: tpu_custom_call.1
= control target key start
LH: loop header
LB: loop body
LE: loop exit
PB: predicated region body
PF: predicated region fallthrough
CT: control target
= control target key end

     0   :  { %8 = vsyncpa [#allocation7], 0  ;;  %s7023_s0 = inlined_call_operand.hbm [shape: s32[64,64], index: 0, kind: input, shape index: {}]   ;;  %s7024_s1 = inlined_call_operand.hbm [shape: s32[4,16,16], index: 1, kind: output, shape index: {0}]   ;;  %s7025_s2 = inlined_call_operand.hbm [shape: s32[16,16], index: 2, kind: output, shape index: {1}]  }
   0x1   :  { %9 = vsyncpa [#allocation8], 0 }
   0x2   :  { %10 = vsyncpa [#allocation11], 0  ;;  %s15_s11 = sshll.u32 %s7023_s0, 4  ;;  %s3450_s12 = smov [#allocation6]   ;;  %s16_s11 = int_to_ptr.hbm [resolvable:$true] %s15_s11 }
   0x3   :  { %s17_s13 = sshll.u32 %s3450_s12, 4  ;;  %s3451_s14 = smov 128   ;;  %s18_s13 = int_to_ptr.vmem [resolvable:$true] %s17_s13 }
   0x4   :  { %s3452_s15 = smov 8  }
   0x5   :  { %23 = dma.hbm_to_vmem [thread:$0]  %s16_s11, 1024, %s18_s13, [#allocation7], %s3451_s14, %s3451_s14, %s3452_s15  }
   0x6   :  { %3444 = dma.done.wait [#allocation7], 1024  }
   0x7   :  { %3445 = vsyncadd [#allocation7], 4294966272  ;;  %v3480_v0 = vld [vmem:[#allocation6 + $0x10] sm:$0xff]  ;;  %vm7052_vm0 = vcmask 523264   ;;  %v3482_v1 = vld [vmem:[#allocation6] sm:$0xff]  ;;  %v7026_v4 = vmov 0.0  }
   0x8   :  { %v3484_v2 = vld [vmem:[#allocation6 + $0x18] sm:$0xff]  ;;  %vm52_vm1 = vcmp.eq.s32.totalorder %v3480_v0, 1  ;;  %vm50_vm2 = vcmp.eq.s32.totalorder %v3482_v1, 1  ;;  %v3488_v3 = vld [vmem:[#allocation6 + $0x8] sm:$0xff]  ;;  %v3503_v15 = vld [vmem:[#allocation6 + $0x30] sm:$0xff]  ;;  %vm60_vm7 = vcmp.eq.s32.totalorder %v3480_v0, 2 }
   0x9   :  { %v116_v5 = vsel %vm52_vm1, 1.0, %v7026_v4  ;;  %v114_v6 = vsel %vm50_vm2, 1.0, %v7026_v4  ;;  %vm51_vm3 = vcmp.eq.s32.totalorder %v3488_v3, 1  ;;  %vm53_vm4 = vcmp.eq.s32.totalorder %v3484_v2, 1  ;;  %v3501_v14 = vld [vmem:[#allocation6 + $0x38] sm:$0xff]  ;;  %v3525_v23 = vld [vmem:[#allocation6 + $0x28] sm:$0xff] }
   0xa   :  { %v185_v7 = vsel %vm7052_vm0, %v116_v5, -inf  ;;  %v179_v8 = vsel %vm7052_vm0, %v114_v6, -inf  ;;  %v115_v9 = vsel %vm51_vm3, 1.0, %v7026_v4  ;;  %v117_v12 = vsel %vm53_vm4, 1.0, %v7026_v4  ;;  %v3527_v24 = vld [vmem:[#allocation6 + $0x20] sm:$0xff]  ;;  %s3457_s0 = smov [#allocation10]  }
   0xb   :  { %186 = vmax.xlane.f32.xlu1 %v185_v7  ;;  %180 = vmax.xlane.f32.xlu0 %v179_v8  ;;  %v182_v10 = vsel %vm7052_vm0, %v115_v9, -inf  ;;  %v3506_v16 = vsel %vm7052_vm0, %v117_v12, -inf  ;;  %vm57_vm5 = vcmp.eq.s32.totalorder %v3501_v14, 1  ;;  %vm56_vm6 = vcmp.eq.s32.totalorder %v3503_v15, 1  ;;  %s3268_s16 = sshll.u32 %s3457_s0, 4  ;;  %s3270_s19 = sshll.u32 %s7025_s2, 4  ;;  %s3269_s16 = int_to_ptr.vmem [resolvable:$true] %s3268_s16  ;;  %s3271_s19 = int_to_ptr.hbm [resolvable:$true] %s3270_s19 }
   0xc   :  { %v435_v11 = vmax.f32 %v179_v8, %v182_v10  ;;  %v121_v17 = vsel %vm57_vm5, 1.0, %v7026_v4  ;;  %v120_v18 = vsel %vm56_vm6, 1.0, %v7026_v4  ;;  %vm59_vm8 = vcmp.eq.s32.totalorder %v3488_v3, 2  ;;  %s3458_s2 = smov [#allocation9]   ;;  %s3257_s23 = sshll.u32 %s7024_s1, 4  ;;  %s3258_s23 = int_to_ptr.hbm [resolvable:$true] %s3257_s23 }
   0xd   :  { %v3514_v19 = vsel %vm7052_vm0, %v121_v17, -inf  ;;  %v3517_v20 = vsel %vm7052_vm0, %v120_v18, -inf  ;;  %v124_v21 = vsel %vm60_vm7, 1.0, %v7026_v4  ;;  %v123_v22 = vsel %vm59_vm8, 1.0, %v7026_v4  ;;  %s3255_s20 = sshll.u32 %s3458_s2, 4  ;;  %s3256_s20 = int_to_ptr.vmem [resolvable:$true] %s3255_s20 }
   0xe   :  { %v3499_v13 = vmax.f32 %v435_v11, %v185_v7  ;;  %v3530_v25 = vsel %vm7052_vm0, %v124_v21, -inf  ;;  %v3533_v26 = vsel %vm7052_vm0, %v123_v22, -inf  ;;  %vm63_vm9 = vcmp.eq.s32.totalorder %v3525_v23, 2 }
   0xf   :  { %vm62_vm10 = vcmp.eq.s32.totalorder %v3527_v24, 2  ;;  %vm75_vm11 = vcmp.eq.s32.totalorder %v3488_v3, 4  ;;  %v127_v27 = vsel %vm63_vm9, 1.0, %v7026_v4  ;;  %vm74_vm12 = vcmp.eq.s32.totalorder %v3482_v1, 4 }
  0x10   :  { %v126_v28 = vsel %vm62_vm10, 1.0, %v7026_v4  ;;  %v139_v29 = vsel %vm75_vm11, 1.0, %v7026_v4  ;;  %v3544_v30 = vsel %vm7052_vm0, %v127_v27, -inf  ;;  %v138_v32 = vsel %vm74_vm12, 1.0, %v7026_v4 }
  0x11   :  { %v3547_v31 = vsel %vm7052_vm0, %v126_v28, -inf  ;;  %vm66_vm13 = vcmp.eq.s32.totalorder %v3482_v1, 3  ;;  %vm65_vm14 = vcmp.eq.s32.totalorder %v3501_v14, 2  ;;  %v254_v33 = vsel %vm7052_vm0, %v139_v29, -inf }
  0x12   :  { %v251_v34 = vsel %vm7052_vm0, %v138_v32, -inf  ;;  %v130_v36 = vsel %vm66_vm13, 1.0, %v7026_v4  ;;  %v129_v37 = vsel %vm65_vm14, 1.0, %v7026_v4  ;;  %vm69_vm15 = vcmp.eq.s32.totalorder %v3484_v2, 3 }
  0x13   :  { %189 = vmax.xlane.f32.xlu1 %v3506_v16  ;;  %183 = vmax.xlane.f32.xlu0 %v182_v10  ;;  %v474_v35 = vmax.f32 %v251_v34, %v254_v33  ;;  %v3560_v38 = vsel %vm7052_vm0, %v130_v36, -inf  ;;  %v3563_v39 = vsel %vm7052_vm0, %v129_v37, -inf  ;;  %vm68_vm1 = vcmp.eq.s32.totalorder %v3480_v0, 3 }
  0x14   :  { %v133_v40 = vsel %vm69_vm15, 1.0, %v7026_v4  ;;  %v132_v41 = vsel %vm68_vm1, 1.0, %v7026_v4  ;;  %vm72_vm2 = vcmp.eq.s32.totalorder %v3503_v15, 3  ;;  %vm71_vm3 = vcmp.eq.s32.totalorder %v3525_v23, 3 }
  0x15   :  { %v3572_v42 = vsel %vm7052_vm0, %v133_v40, -inf  ;;  %v3575_v43 = vsel %vm7052_vm0, %v132_v41, -inf  ;;  %v136_v44 = vsel %vm72_vm2, 1.0, %v7026_v4  ;;  %v135_v45 = vsel %vm71_vm3, 1.0, %v7026_v4 }
  0x16   :  { %v3584_v46 = vsel %vm7052_vm0, %v136_v44, -inf  ;;  %v3587_v47 = vsel %vm7052_vm0, %v135_v45, -inf  ;;  %vm76_vm4 = vcmp.eq.s32.totalorder %v3480_v0, 4  ;;  %vm78_vm5 = vcmp.eq.s32.totalorder %v3527_v24, 4 }
  0x17   :  { %v140_v48 = vsel %vm76_vm4, 1.0, %v7026_v4  ;;  %vm77_vm6 = vcmp.eq.s32.totalorder %v3484_v2, 4  ;;  %vm82_vm7 = vcmp.eq.s32.totalorder %v3482_v1, 5  ;;  %v142_v50 = vsel %vm78_vm5, 1.0, %v7026_v4 }
  0x18   :  { %v3596_v49 = vsel %vm7052_vm0, %v140_v48, -inf  ;;  %vm83_vm8 = vcmp.eq.s32.totalorder %v3488_v3, 5  ;;  %v141_v51 = vsel %vm77_vm6, 1.0, %v7026_v4  ;;  %v146_v53 = vsel %vm82_vm7, 1.0, %v7026_v4 }
  0x19   :  { %v475_v52 = vmax.f32 %v474_v35, %v3596_v49  ;;  %v263_v54 = vsel %vm7052_vm0, %v142_v50, -inf  ;;  %v147_v55 = vsel %vm83_vm8, 1.0, %v7026_v4  ;;  %v260_v56 = vsel %vm7052_vm0, %v141_v51, -inf }
  0x1a   :  { %vm79_vm9 = vcmp.eq.s32.totalorder %v3525_v23, 4  ;;  %vm84_vm10 = vcmp.eq.s32.totalorder %v3480_v0, 5  ;;  %v3610_v57 = vsel %vm7052_vm0, %v146_v53, -inf  ;;  %vm81_vm11 = vcmp.eq.s32.totalorder %v3501_v14, 4 }
  0x1b   :  { %201 = vmax.xlane.f32.xlu1 %v3514_v19  ;;  %198 = vmax.xlane.f32.xlu0 %v3517_v20  ;;  %v476_v58 = vmax.f32 %v475_v52, %v260_v56  ;;  %vm80_vm12 = vcmp.eq.s32.totalorder %v3503_v15, 4  ;;  %v278_v59 = vsel %vm7052_vm0, %v147_v55, -inf  ;;  %vm85_vm13 = vcmp.eq.s32.totalorder %v3484_v2, 5 }
  0x1c   :  { %v143_v60 = vsel %vm79_vm9, 1.0, %v7026_v4  ;;  %v148_v61 = vsel %vm84_vm10, 1.0, %v7026_v4  ;;  %v487_v62 = vmax.f32 %v3610_v57, %v278_v59  ;;  %v145_v5 = vsel %vm81_vm11, 1.0, %v7026_v4 }
  0x1d   :  { %v477_v63 = vmax.f32 %v476_v58, %v263_v54  ;;  %v144_v6 = vsel %vm80_vm12, 1.0, %v7026_v4  ;;  %v149_v7 = vsel %vm85_vm13, 1.0, %v7026_v4  ;;  %v3623_v8 = vsel %vm7052_vm0, %v143_v60, -inf }
  0x1e   :  { %v281_v9 = vsel %vm7052_vm0, %v148_v61, -inf  ;;  %vm91_vm14 = vcmp.eq.s32.totalorder %v3488_v3, 6  ;;  %v272_v11 = vsel %vm7052_vm0, %v145_v5, -inf  ;;  %v269_v12 = vsel %vm7052_vm0, %v144_v6, -inf }
  0x1f   :  { %v488_v10 = vmax.f32 %v487_v62, %v281_v9  ;;  %vm86_vm15 = vcmp.eq.s32.totalorder %v3527_v24, 5  ;;  %v3631_v17 = vsel %vm7052_vm0, %v149_v7, -inf  ;;  %v478_v18 = vmax.f32 %v477_v63, %v3623_v8 }
  0x20   :  { %vm90_vm1 = vcmp.eq.s32.totalorder %v3482_v1, 6  ;;  %v155_v21 = vsel %vm91_vm14, 1.0, %v7026_v4  ;;  %v150_v22 = vsel %vm86_vm15, 1.0, %v7026_v4  ;;  %vm87_vm2 = vcmp.eq.s32.totalorder %v3525_v23, 5 }
  0x21   :  { %v489_v27 = vmax.f32 %v488_v10, %v3631_v17  ;;  %v154_v28 = vsel %vm90_vm1, 1.0, %v7026_v4  ;;  %v479_v29 = vmax.f32 %v478_v18, %v269_v12  ;;  %v3641_v32 = vsel %vm7052_vm0, %v155_v21, -inf }
  0x22   :  { %vm92_vm3 = vcmp.eq.s32.totalorder %v3480_v0, 6  ;;  %vm88_vm4 = vcmp.eq.s32.totalorder %v3503_v15, 5  ;;  %vm54_vm5 = vcmp.eq.s32.totalorder %v3527_v24, 1  ;;  %v3649_v36 = vsel %vm7052_vm0, %v154_v28, -inf }
  0x23   :  { %210 = vmax.xlane.f32.xlu1 %v3530_v25  ;;  %207 = vmax.xlane.f32.xlu0 %v3533_v26  ;;  %v118_v37 = vsel %vm54_vm5, 1.0, %v7026_v4  ;;  %v500_v40 = vmax.f32 %v3649_v36, %v3641_v32  ;;  %vm89_vm6 = vcmp.eq.s32.totalorder %v3501_v14, 5  ;;  %v156_v41 = vsel %vm92_vm3, 1.0, %v7026_v4 }
  0x24   :  { %v191_v44 = vsel %vm7052_vm0, %v118_v37, -inf  ;;  %v3657_v45 = vmax.f32 %v479_v29, %v272_v11  ;;  %v152_v48 = vsel %vm88_vm4, 1.0, %v7026_v4  ;;  %vm93_vm7 = vcmp.eq.s32.totalorder %v3484_v2, 6 }
  0x25   :  { %192 = vmax.xlane.f32.xlu2 %v191_v44  ;;  %v153_v52 = vsel %vm89_vm6, 1.0, %v7026_v4  ;;  %v3664_v53 = vsel %vm7052_vm0, %v156_v41, -inf  ;;  %v157_v55 = vsel %vm93_vm7, 1.0, %v7026_v4  ;;  %vm94_vm8 = vcmp.eq.s32.totalorder %v3527_v24, 6 }
  0x26   :  { %v481_v58 = vrot.slane %v3657_v45, 4  ;;  %v296_v60 = vsel %vm7052_vm0, %v153_v52, -inf  ;;  %vm55_vm9 = vcmp.eq.s32.totalorder %v3525_v23, 1  ;;  %vm58_vm10 = vcmp.eq.s32.totalorder %v3482_v1, 2 }
  0x27   :  { %v3678_v61 = vsel %vm7052_vm0, %v157_v55, -inf  ;;  %v119_v62 = vsel %vm55_vm9, 1.0, %v7026_v4  ;;  %vm99_vm11 = vcmp.eq.s32.totalorder %v3488_v3, 7  ;;  %v437_v5 = vmax.f32 %v3499_v13, %v3506_v16 }
  0x28   :  { %vm96_vm12 = vcmp.eq.s32.totalorder %v3503_v15, 6  ;;  %v194_v6 = vsel %vm7052_vm0, %v119_v62, -inf  ;;  %v158_v7 = vsel %vm94_vm8, 1.0, %v7026_v4  ;;  %vm98_vm13 = vcmp.eq.s32.totalorder %v3482_v1, 7 }
  0x29   :  { %v122_v10 = vsel %vm58_vm10, 1.0, %v7026_v4  ;;  %vm95_vm14 = vcmp.eq.s32.totalorder %v3525_v23, 6  ;;  %vm97_vm15 = vcmp.eq.s32.totalorder %v3501_v14, 6  ;;  %vm61_vm1 = vcmp.eq.s32.totalorder %v3484_v2, 2 }
  0x2a   :  { %v203_v13 = vsel %vm7052_vm0, %v122_v10, -inf  ;;  %v438_v21 = vmax.f32 %v437_v5, %v191_v44  ;;  %v125_v28 = vsel %vm61_vm1, 1.0, %v7026_v4  ;;  %vm102_vm3 = vcmp.eq.s32.totalorder %v3527_v24, 7 }
  0x2b   :  { %219 = vmax.xlane.f32.xlu1 %v3544_v30  ;;  %216 = vmax.xlane.f32.xlu0 %v3547_v31  ;;  %v448_v18 = vmax.f32 %v203_v13, %v3533_v26  ;;  %vm101_vm4 = vcmp.eq.s32.totalorder %v3484_v2, 7  ;;  %vm64_vm5 = vcmp.eq.s32.totalorder %v3503_v15, 2  ;;  %vm103_vm6 = vcmp.eq.s32.totalorder %v3525_v23, 7 }
  0x2c   :  { %v439_v44 = vmax.f32 %v438_v21, %v194_v6  ;;  %vm104_vm7 = vcmp.eq.s32.totalorder %v3503_v15, 7  ;;  %vm106_vm8 = vcmp.eq.s32.totalorder %v3482_v1, 8  ;;  %vm108_vm9 = vcmp.eq.s32.totalorder %v3480_v0, 8 }
  0x2d   :  { %195 = vmax.xlane.f32.xlu2 %v194_v6  ;;  %v449_v26 = vmax.f32 %v448_v18, %v3530_v25  ;;  %vm107_vm10 = vcmp.eq.s32.totalorder %v3488_v3, 8  ;;  %vm70_vm1 = vcmp.eq.s32.totalorder %v3527_v24, 3 }
  0x2e   :  { %v440_v10 = vmax.f32 %v439_v44, %v3517_v20  ;;  %v482_v44 = vmax.f32 %v3657_v45, %v481_v58 }
  0x33   :  { %228 = vmax.xlane.f32.xlu1 %v3560_v38  ;;  %225 = vmax.xlane.f32.xlu0 %v3563_v39 }
  0x35   :  { %204 = vmax.xlane.f32.xlu2 %v203_v13  ;;  %v167_v13 = vsel %vm103_vm6, 1.0, %v7026_v4 }
  0x3b   :  { %237 = vmax.xlane.f32.xlu1 %v3572_v42  ;;  %234 = vmax.xlane.f32.xlu0 %v3575_v43 }
  0x43   :  { %246 = vmax.xlane.f32.xlu1 %v3584_v46  ;;  %243 = vmax.xlane.f32.xlu0 %v3587_v47 }
  0x4b   :  { %255 = vmax.xlane.f32.xlu1 %v254_v33  ;;  %252 = vmax.xlane.f32.xlu0 %v251_v34  ;;  %v287_v33 = vsel %vm7052_vm0, %v150_v22, -inf  ;;  %v151_v34 = vsel %vm87_vm2, 1.0, %v7026_v4  ;;  %v3704_v22 = vsel %vm7052_vm0, %v158_v7, -inf  ;;  %vm100_vm2 = vcmp.eq.s32.totalorder %v3480_v0, 7 }
  0x4c   :  { %v490_v35 = vmax.f32 %v489_v27, %v287_v33  ;;  %v290_v50 = vsel %vm7052_vm0, %v151_v34, -inf  ;;  %v159_v34 = vsel %vm95_vm14, 1.0, %v7026_v4  ;;  %v164_v37 = vsel %vm100_vm2, 1.0, %v7026_v4 }
  0x4d   :  { %v3728_v25 = vsel %vm7052_vm0, %v164_v37, -inf  ;;  %v3743_v62 = vsel %vm7052_vm0, %v159_v34, -inf  ;;  %v171_v37 = vsel %vm107_vm10, 1.0, %v7026_v4  ;;  %vm109_vm14 = vcmp.eq.s32.totalorder %v3484_v2, 8 }
  0x4e   :  { %v491_v51 = vmax.f32 %v490_v35, %v290_v50  ;;  %v161_v35 = vsel %vm97_vm15, 1.0, %v7026_v4  ;;  %vm110_vm15 = vcmp.eq.s32.totalorder %v3527_v24, 8  ;;  %vm112_vm2 = vcmp.eq.s32.totalorder %v3503_v15, 8 }
  0x4f   :  { %v174_v2 = vsel %vm110_vm15, 1.0, %v7026_v4  ;;  %vm7058_vm15 = vcmask 1043459  }
  0x53   :  { %264 = vmax.xlane.f32.xlu1 %v263_v54  ;;  %261 = vmax.xlane.f32.xlu0 %v260_v56  ;;  %v3667_v54 = vsel %vm7052_vm0, %v152_v48, -inf  ;;  %v501_v56 = vmax.f32 %v500_v40, %v3664_v53  ;;  %v212_v40 = vsel %vm7052_vm0, %v125_v28, -inf  ;;  %v166_v48 = vsel %vm102_vm3, 1.0, %v7026_v4 }
  0x54   :  { %v3737_v55 = vsel %vm7052_vm0, %v166_v48, -inf  ;;  %213 = vmax.xlane.f32.xlu2 %v212_v40  ;;  %vm73_vm3 = vcmp.eq.s32.totalorder %v3501_v14, 3 }
  0x55   :  { %v502_v63 = vmax.f32 %v501_v56, %v3678_v61 }
  0x57   :  { %v503_v41 = vmax.f32 %v502_v63, %v3704_v22  ;;  %v3746_v63 = vsel %vm7052_vm0, %v161_v35, -inf  ;;  %v172_v35 = vsel %vm108_vm9, 1.0, %v7026_v4 }
  0x59   :  { %v504_v6 = vmax.f32 %v503_v41, %v3743_v62 }
  0x5b   :  { %273 = vmax.xlane.f32.xlu1 %v272_v11  ;;  %270 = vmax.xlane.f32.xlu0 %v269_v12  ;;  %v162_v11 = vsel %vm98_vm13, 1.0, %v7026_v4  ;;  %vm111_vm13 = vcmp.eq.s32.totalorder %v3525_v23, 8  ;;  %v173_v23 = vsel %vm109_vm14, 1.0, %v7026_v4  ;;  %vm7061_vm14 = vcmask 1042434  }
  0x5c   :  { %v3699_v12 = vsel %vm7052_vm0, %v162_v11, -inf }
  0x63   :  { %282 = vmax.xlane.f32.xlu1 %v281_v9  ;;  %279 = vmax.xlane.f32.xlu0 %v278_v59  ;;  %v492_v59 = vmax.f32 %v491_v51, %v3667_v54  ;;  %v163_v9 = vsel %vm99_vm11, 1.0, %v7026_v4  ;;  %vm105_vm11 = vcmp.eq.s32.totalorder %v3501_v14, 7 }
  0x64   :  { %v3696_v16 = vsel %vm7052_vm0, %v163_v9, -inf  ;;  %v128_v9 = vsel %vm64_vm5, 1.0, %v7026_v4  ;;  %v169_v1 = vsel %vm105_vm11, 1.0, %v7026_v4  ;;  %vm7064_vm11 = vcmask 1041409  }
  0x65   :  { %v513_v27 = vmax.f32 %v3699_v12, %v3696_v16  ;;  %v3709_v29 = vmax.f32 %v492_v59, %v296_v60  ;;  %v450_v59 = vmax.f32 %v449_v26, %v212_v40  ;;  %v221_v18 = vsel %vm7052_vm0, %v128_v9, -inf }
  0x66   :  { %v170_v26 = vsel %vm106_vm8, 1.0, %v7026_v4  ;;  %v3779_v0 = vsel %vm7052_vm0, %v169_v1, -inf  ;;  %222 = vmax.xlane.f32.xlu2 %v221_v18 }
  0x67   :  { %v514_v51 = vmax.f32 %v513_v27, %v3728_v25  ;;  %v451_v7 = vmax.f32 %v450_v59, %v3547_v31  ;;  %v168_v31 = vsel %vm104_vm7, 1.0, %v7026_v4  ;;  %v3785_v41 = vsel %vm7052_vm0, %v170_v26, -inf }
  0x68   :  { %v3772_v27 = vsel %vm7052_vm0, %v168_v31, -inf  ;;  %v494_v40 = vrot.slane %v3709_v29, 4  ;;  %v3799_v59 = vsel %vm7052_vm0, %v172_v35, -inf  ;;  %v175_v31 = vsel %vm111_vm13, 1.0, %v7026_v4 }
  0x69   :  { %v134_v26 = vsel %vm70_vm1, 1.0, %v7026_v4  ;;  %vm7057_vm1 = vcmask 1044484  }
  0x6b   :  { %291 = vmax.xlane.f32.xlu1 %v290_v50  ;;  %288 = vmax.xlane.f32.xlu0 %v287_v33  ;;  %v160_v33 = vsel %vm96_vm12, 1.0, %v7026_v4  ;;  %v165_v50 = vsel %vm101_vm4, 1.0, %v7026_v4  ;;  %vm67_vm12 = vcmp.eq.s32.totalorder %v3488_v3, 3  ;;  %vm113_vm4 = vcmp.eq.s32.totalorder %v3501_v14, 8 }
  0x6c   :  { %v3734_v52 = vsel %vm7052_vm0, %v160_v33, -inf  ;;  %v3740_v56 = vsel %vm7052_vm0, %v165_v50, -inf }
  0x6d   :  { %v515_v5 = vmax.f32 %v514_v51, %v3740_v56  ;;  %v505_v20 = vmax.f32 %v504_v6, %v3734_v52  ;;  %v483_v6 = vrot.slane %v482_v44, 2 }
  0x6f   :  { %v516_v11 = vmax.f32 %v515_v5, %v3737_v55 }
  0x73   :  { %300 = vmax.xlane.f32.xlu1 %v3649_v36  ;;  %297 = vmax.xlane.f32.xlu0 %v296_v60  ;;  %v3761_v36 = vsel %vm7052_vm0, %v167_v13, -inf  ;;  %v452_v60 = vmax.f32 %v451_v7, %v3544_v30  ;;  %v441_v30 = vmax.f32 %v440_v10, %v3514_v19  ;;  %v3788_v19 = vsel %vm7052_vm0, %v171_v37, -inf }
  0x74   :  { %v517_v21 = vmax.f32 %v516_v11, %v3761_v36  ;;  %v526_v5 = vmax.f32 %v3785_v41, %v3788_v19  ;;  %v495_v7 = vmax.f32 %v3709_v29, %v494_v40  ;;  %v3820_v29 = vsel %vm7052_vm0, %v173_v23, -inf }
  0x75   :  { %v453_v28 = vmax.f32 %v452_v60, %v221_v18  ;;  %v442_v50 = vrot.slane %v441_v30, 4  ;;  %v176_v40 = vsel %vm112_vm2, 1.0, %v7026_v4  ;;  %v547_v23 = vlaneseq }
  0x76   :  { %v518_v33 = vmax.f32 %v517_v21, %v3772_v27  ;;  %v527_v10 = vmax.f32 %v526_v5, %v3799_v59  ;;  %vm7056_vm2 = vcmask 1045509  }
  0x77   :  { %v454_v34 = vmax.f32 %v453_v28, %v3563_v39  ;;  %v506_v39 = vmax.f32 %v505_v20, %v3746_v63  ;;  %v443_v11 = vmax.f32 %v441_v30, %v442_v50  ;;  %v3823_v20 = vsel %vm7052_vm0, %v174_v2, -inf }
  0x78   :  { %v519_v51 = vmax.f32 %v518_v33, %v3779_v0  ;;  %v496_v28 = vrot.slane %v495_v7, 2  ;;  %v528_v30 = vmax.f32 %v527_v10, %v3820_v29  ;;  %v3831_v33 = vsel %vm7052_vm0, %v175_v31, -inf }
  0x79   :  { %v455_v48 = vrot.slane %v454_v34, 4  ;;  %v507_v9 = vrot.slane %v506_v39, 4  ;;  %v444_v1 = vrot.slane %v443_v11, 2  ;;  %v177_v10 = vsel %vm113_vm4, 1.0, %v7026_v4 }
  0x7a   :  { %v520_v13 = vrot.slane %v519_v51, 4  ;;  %v529_v24 = vmax.f32 %v528_v30, %v3823_v20  ;;  %vm7053_vm4 = vcmask 1047559  }
  0x7b   :  { %309 = vmax.xlane.f32.xlu1 %v3678_v61  ;;  %306 = vmax.xlane.f32.xlu0 %v3664_v53  ;;  %v456_v61 = vmax.f32 %v454_v34, %v455_v48  ;;  %v131_v53 = vsel %vm67_vm12, 1.0, %v7026_v4  ;;  %v508_v18 = vmax.f32 %v506_v39, %v507_v9  ;;  %v484_v39 = vmax.f32 %v482_v44, %v483_v6 }
  0x7c   :  { %v230_v3 = vsel %vm7052_vm0, %v131_v53, -inf  ;;  %v521_v34 = vmax.f32 %v519_v51, %v520_v13  ;;  %v530_v15 = vmax.f32 %v529_v24, %v3831_v33  ;;  %v497_v48 = vmax.f32 %v495_v7, %v496_v28 }
  0x7d   :  { %v461_v60 = vmax.f32 %v3560_v38, %v230_v3  ;;  %v457_v21 = vrot.slane %v456_v61, 2  ;;  %v509_v50 = vrot.slane %v508_v18, 2  ;;  %v137_v51 = vsel %vm73_vm3, 1.0, %v7026_v4  ;;  %231 = vmax.xlane.f32.xlu2 %v230_v3 }
  0x7e   :  { %v3804_v45 = vpop.xlane.xlu1 %186  ;;  %v3806_v58 = vpop.xlane.xlu0 %180  ;;  %v445_v53 = vmax.f32 %v443_v11, %v444_v1  ;;  %v522_v9 = vrot.slane %v521_v34, 2  ;;  %v3853_v44 = vsel %vm7052_vm0, %v177_v10, -inf  ;;  %v485_v7 = vrot.slane %v484_v39, 1 }
  0x7f   :  { %v462_v38 = vmax.f32 %v461_v60, %v3575_v43  ;;  %v458_v35 = vmax.f32 %v456_v61, %v457_v21  ;;  %v3849_v61 = vsel %vm7052_vm0, %v176_v40, -inf  ;;  %v248_v11 = vsel %vm7052_vm0, %v137_v51, -inf }
  0x80   :  { %v531_v6 = vmax.f32 %v530_v15, %v3849_v61  ;;  %v498_v13 = vrot.slane %v497_v48, 1  ;;  %v510_v3 = vmax.f32 %v508_v18, %v509_v50  ;;  %v446_v2 = vrot.slane %v445_v53, 1 }
  0x81   :  { %v463_v37 = vmax.f32 %v462_v38, %v3572_v42  ;;  %v459_v42 = vrot.slane %v458_v35, 1  ;;  %v486_v1 = vmax.f32 %v484_v39, %v485_v7  ;;  %v3866_v18 = vand.u32 127, %v547_v23 }
  0x82   :  { %v532_v31 = vmax.f32 %v531_v6, %v3853_v44  ;;  %v447_v40 = vmax.f32 %v445_v53, %v446_v2  ;;  %vm7054_vm3 = vcmask 1046534  }
  0x83   :  { %318 = vmax.xlane.f32.xlu1 %v3734_v52  ;;  %315 = vmax.xlane.f32.xlu0 %v3743_v62  ;;  %v239_v52 = vsel %vm7052_vm0, %v134_v26, -inf  ;;  %v460_v38 = vmax.f32 %v458_v35, %v459_v42  ;;  %v511_v26 = vrot.slane %v510_v3, 1  ;;  %7324 = vst [vmem:[#allocation17_spill] sm:$0xff] %v3866_v18  ;;  %vm542_vm6 = vcmp.gt.f32.partialorder %v486_v1, 0.0 }
  0x84   :  { %v464_v5 = vmax.f32 %v463_v37, %v239_v52  ;;  %vm539_vm8 = vcmp.gt.f32.partialorder %v447_v40, 0.0 }
  0x85   :  { %240 = vmax.xlane.f32.xlu2 %v239_v52  ;;  %vm540_vm5 = vcmp.gt.f32.partialorder %v460_v38, 0.0  ;;  %v512_v35 = vmax.f32 %v510_v3, %v511_v26 }
  0x86   :  { %v3838_v62 = vpop.xlane.xlu1 %189  ;;  %v3840_v43 = vpop.xlane.xlu0 %183  ;;  %v465_v14 = vmax.f32 %v464_v5, %v3587_v47  ;;  %v523_v47 = vmax.f32 %v521_v34, %v522_v9  ;;  %v552_v51 = vsel %vm540_vm5, %v3866_v18, 129  ;;  %v596_v53 = vsel %vm540_vm5, %v3866_v18, 4294967295 }
  0x87   :  { %7322 = vst [vmem:[#allocation15_spill] sm:$0xff] %v3840_v43  ;;  %vm544_vm9 = vcmp.gt.f32.partialorder %v512_v35, 0.0  ;;  %v603_v3 = vrot.slane %v596_v53, 7 }
  0x88   :  { %v466_v60 = vmax.f32 %v465_v14, %v3584_v46  ;;  %v524_v46 = vrot.slane %v523_v47, 1  ;;  %v559_v14 = vrot.slane %v552_v51, 7 }
  0x8a   :  { %v467_v30 = vmax.f32 %v466_v60, %v248_v11  ;;  %v525_v50 = vmax.f32 %v523_v47, %v524_v46 }
  0x8b   :  { %327 = vmax.xlane.f32.xlu1 %v3696_v16  ;;  %324 = vmax.xlane.f32.xlu0 %v3699_v12  ;;  %v533_v16 = vrot.slane %v532_v31, 4  ;;  %v499_v12 = vmax.f32 %v497_v48, %v498_v13  ;;  %v551_v13 = vsel %vm539_vm8, %v3866_v18, 129 }
  0x8c   :  { %v468_v24 = vrot.slane %v467_v30, 4  ;;  %vm545_vm10 = vcmp.gt.f32.partialorder %v525_v50, 0.0 }
  0x8d   :  { %v534_v37 = vmax.f32 %v532_v31, %v533_v16  ;;  %vm543_vm7 = vcmp.gt.f32.partialorder %v499_v12, 0.0  ;;  %249 = vmax.xlane.f32.xlu2 %v248_v11  ;;  %v595_v31 = vsel %vm539_vm8, %v3866_v18, 4294967295  ;;  %v556_v16 = vsel %vm544_vm9, %v3866_v18, 129 }
  0x8e   :  { %v3861_v21 = vpop.xlane.xlu1 %201  ;;  %v3863_v28 = vpop.xlane.xlu0 %198  ;;  %v469_v34 = vmax.f32 %v467_v30, %v468_v24  ;;  %v555_v42 = vsel %vm543_vm7, %v3866_v18, 129  ;;  %v599_v30 = vsel %vm543_vm7, %v3866_v18, 4294967295  ;;  %v561_v11 = vsel %vm7064_vm11, %v559_v14, %v551_v13 }
  0x8f   :  { %7323 = vst [vmem:[#allocation16_spill] sm:$0xff] %v3861_v21  ;;  %v535_v15 = vrot.slane %v534_v37, 2  ;;  %v568_v38 = vrot.slane %v555_v42, 4  ;;  %v557_v1 = vsel %vm545_vm10, %v3866_v18, 129  ;;  %v604_v26 = vsel %vm7064_vm11, %v603_v3, %v595_v31 }
  0x90   :  { %v470_v39 = vrot.slane %v469_v34, 2  ;;  %v574_v51 = vrot.slane %v557_v1, 2  ;;  %v601_v42 = vsel %vm545_vm10, %v3866_v18, 4294967295  ;;  %vm7051_vm7 = vcmask 7168  }
  0x91   :  { %v536_v48 = vmax.f32 %v534_v37, %v535_v15  ;;  %v600_v15 = vsel %vm544_vm9, %v3866_v18, 4294967295  ;;  %vm372_vm8 = vcmp.gt.f32.partialorder %v3840_v43, 0.0  ;;  %vm371_vm10 = vcmp.gt.f32.partialorder %v3806_v58, 0.0 }
  0x92   :  { %v471_v9 = vmax.f32 %v469_v34, %v470_v39  ;;  %v609_v34 = vrot.slane %v599_v30, 4  ;;  %v571_v39 = vrot.slane %v556_v16, 3  ;;  %v611_v14 = vrot.slane %v600_v15, 3 }
  0x93   :  { %336 = vmax.xlane.f32.xlu1 %v3737_v55  ;;  %333 = vmax.xlane.f32.xlu0 %v3740_v56  ;;  %v537_v10 = vrot.slane %v536_v48, 1  ;;  %v554_v55 = vsel %vm542_vm6, %v3866_v18, 129  ;;  %v598_v56 = vsel %vm542_vm6, %v3866_v18, 4294967295 }
  0x94   :  { %v472_v6 = vrot.slane %v471_v9, 1  ;;  %v565_v60 = vrot.slane %v554_v55, 5  ;;  %v607_v2 = vrot.slane %v598_v56, 5 }
  0x95   :  { %v538_v7 = vmax.f32 %v536_v48, %v537_v10  ;;  %258 = vmax.xlane.f32.xlu2 %v3596_v49 }
  0x96   :  { %v3871_v5 = vpop.xlane.xlu1 %210  ;;  %v3873_v52 = vpop.xlane.xlu0 %207  ;;  %v473_v47 = vmax.f32 %v471_v9, %v472_v6  ;;  %v3918_v6 = vshrl.u32 %v547_v23, 7  ;;  %v613_v23 = vrot.slane %v601_v42, 2 }
  0x97   :  { %7325 = vst [vmem:[#allocation18_spill] sm:$0xff] %v3871_v5  ;;  %vm546_vm12 = vcmp.gt.f32.partialorder %v538_v7, 0.0 }
  0x98   :  { %vm541_vm13 = vcmp.gt.f32.partialorder %v473_v47, 0.0  ;;  %v558_v40 = vsel %vm546_vm12, %v3866_v18, 129  ;;  %7327 = vst [vmem:[#allocation20_spill] sm:$0xff] %v3918_v6  ;;  %3351 = vset.pattern.permute.xlu2 %v3918_v6  ;;  %v602_v50 = vsel %vm546_vm12, %v3866_v18, 4294967295 }
  0x99   :  { %v553_v24 = vsel %vm541_vm13, %v3866_v18, 129  ;;  %v597_v12 = vsel %vm541_vm13, %v3866_v18, 4294967295  ;;  %v577_v10 = vrot.slane %v558_v40, 1  ;;  %vm374_vm13 = vcmp.gt.f32.partialorder %v3838_v62, 0.0 }
  0x9a   :  { %v562_v37 = vrot.slane %v553_v24, 6  ;;  %v605_v46 = vrot.slane %v597_v12, 6 }
  0x9b   :  { %345 = vmax.xlane.f32.xlu1 %v3779_v0  ;;  %342 = vmax.xlane.f32.xlu0 %v3772_v27 }
  0x9c   :  { %v564_v48 = vsel %vm7061_vm14, %v562_v37, %v561_v11  ;;  %v606_v53 = vsel %vm7061_vm14, %v605_v46, %v604_v26 }
  0x9d   :  { %v567_v9 = vsel %vm7058_vm15, %v565_v60, %v564_v48  ;;  %v608_v55 = vsel %vm7058_vm15, %v607_v2, %v606_v53  ;;  %v3924_v60 = vadd.s32 8, %v3918_v6  ;;  %v615_v2 = vrot.slane %v602_v50, 1  ;;  %267 = vmax.xlane.f32.xlu2 %v3623_v8 }
  0x9e   :  { %v3898_v0 = vpop.xlane.xlu1 %219  ;;  %v3900_v27 = vpop.xlane.xlu0 %216  ;;  %v570_v56 = vsel %vm7057_vm1, %v568_v38, %v567_v9  ;;  %v610_v49 = vsel %vm7057_vm1, %v609_v34, %v608_v55  ;;  %vm7063_vm1 = vcmp.gt.f32.partialorder %v3871_v5, 0.0 }
  0x9f   :  { %7326 = vst [vmem:[#allocation19_spill] sm:$0xff] %v3898_v0  ;;  %v573_v35 = vsel %vm7056_vm2, %v571_v39, %v570_v56  ;;  %v612_v31 = vsel %vm7056_vm2, %v611_v14, %v610_v49  ;;  %3352 = vset.pattern.permute.xlu0 %v3924_v60 }
  0xa0   :  { %v576_v13 = vsel %vm7054_vm3, %v574_v51, %v573_v35  ;;  %7328 = vst [vmem:[#allocation21_spill] sm:$0xff] %v3924_v60  ;;  %v614_v38 = vsel %vm7054_vm3, %v613_v23, %v612_v31  ;;  %vm7060_vm3 = vcmp.gt.f32.partialorder %v3861_v21, 0.0 }
  0xa1   :  { %v579_v3 = vsel %vm7053_vm4, %v577_v10, %v576_v13  ;;  %v616_v30 = vsel %vm7053_vm4, %v615_v2, %v614_v38  ;;  %v646_v38 = vadd.s32 16, %v3918_v6  ;;  %vm383_vm4 = vcmp.gt.f32.partialorder %v3900_v27, 0.0  ;;  %v7408_v27 = vld [vmem:[#allocation17_spill] sm:$0xff] }
  0xa2   :  { %v3936_v47 = vsel %vm7052_vm0, %v579_v3, 2147483647  ;;  %v3951_v26 = vsel %vm7052_vm0, %v616_v30, 2147483648 }
  0xa3   :  { %354 = vmax.xlane.f32.xlu1 %v3799_v59  ;;  %351 = vmax.xlane.f32.xlu0 %v3788_v19  ;;  %v582_v7 = vshra.s32 %v3936_v47, 16  ;;  %v619_v8 = vshra.s32 %v3951_v26, 16  ;;  %v581_v2 = vand.u32 65535, %v3936_v47 }
  0xa4   :  { %3353 = vset.pattern.permute.xlu1 %v646_v38 }
  0xa5   :  { %v3948_v1 = vcvt.s32.f32 %v582_v7  ;;  %276 = vmax.xlane.f32.xlu2 %v3610_v57  ;;  %v3961_v24 = vcvt.s32.f32 %v619_v8  ;;  %v583_v7 = vcvt.s32.f32 %v581_v2 }
  0xa6   :  { %v3927_v19 = vpop.xlane.xlu1 %228  ;;  %v3929_v59 = vpop.xlane.xlu0 %225 }
  0xa7   :  { %7329 = vst [vmem:[#allocation22_spill] sm:$0xff] %v3927_v19  ;;  %vm386_vm2 = vcmp.gt.f32.partialorder %v3929_v59, 0.0 }
  0xab   :  { %363 = vmax.xlane.f32.xlu1 %v3831_v33  ;;  %360 = vmax.xlane.f32.xlu0 %v3823_v20 }
  0xad   :  { %285 = vmax.xlane.f32.xlu2 %v3631_v17  ;;  %v3981_v17 = vpop.xlane.xlu2 %192 }
  0xae   :  { %v3944_v16 = vpop.xlane.xlu1 %237  ;;  %v3946_v11 = vpop.xlane.xlu0 %234 }
  0xaf   :  { %7330 = vst [vmem:[#allocation23_spill] sm:$0xff] %v3944_v16 }
  0xb3   :  { %369 = vmax.xlane.f32.xlu0 %v3853_v44  ;;  %585 = vmin.xlane.f32.xlu1 %v3948_v1 }
  0xb5   :  { %294 = vmax.xlane.f32.xlu2 %v3667_v54  ;;  %v3988_v54 = vpop.xlane.xlu2 %195 }
  0xb6   :  { %v3957_v20 = vpop.xlane.xlu1 %246  ;;  %v3959_v33 = vpop.xlane.xlu0 %243  ;;  %7337 = vst [vmem:[#allocation30_spill] sm:$0xff] %v3988_v54 }
  0xb7   :  { %7331 = vst [vmem:[#allocation24_spill] sm:$0xff] %v3957_v20 }
  0xbb   :  { %622 = vmax.xlane.f32.xlu0 %v3961_v24 }
  0xbd   :  { %303 = vmax.xlane.f32.xlu2 %v3641_v32  ;;  %v3995_v48 = vpop.xlane.xlu2 %204 }
  0xbe   :  { %v3965_v12 = vpop.xlane.xlu1 %255  ;;  %v3967_v37 = vpop.xlane.xlu0 %252  ;;  %vm379_vm0 = vcmp.gt.f32.partialorder %v3995_v48, 0.0 }
  0xbf   :  { %7332 = vst [vmem:[#allocation25_spill] sm:$0xff] %v3965_v12 }
  0xc5   :  { %312 = vmax.xlane.f32.xlu2 %v3704_v22 }
  0xc6   :  { %v3970_v57 = vpop.xlane.xlu1 %264  ;;  %v3972_v44 = vpop.xlane.xlu0 %261 }
  0xc7   :  { %7333 = vst [vmem:[#allocation26_spill] sm:$0xff] %v3970_v57  ;;  %v4002_v53 = vpop.xlane.xlu2 %213 }
  0xc8   :  { %7342 = vst [vmem:[#allocation35_spill] sm:$0xff] %v4002_v53 }
  0xcd   :  { %321 = vmax.xlane.f32.xlu2 %v3746_v63 }
  0xce   :  { %v3975_v46 = vpop.xlane.xlu1 %273  ;;  %v3977_v40 = vpop.xlane.xlu0 %270 }
  0xcf   :  { %7334 = vst [vmem:[#allocation27_spill] sm:$0xff] %v3975_v46  ;;  %642 = vperm.xlu0 %3352, %v3866_v18  }
  0xd5   :  { %330 = vmax.xlane.f32.xlu2 %v3728_v25 }
  0xd6   :  { %v3983_v34 = vpop.xlane.xlu1 %282  ;;  %v3985_v15 = vpop.xlane.xlu0 %279 }
  0xd7   :  { %7335 = vst [vmem:[#allocation28_spill] sm:$0xff] %v3983_v34 }
  0xd8   :  { %7336 = vst [vmem:[#allocation29_spill] sm:$0xff] %v3985_v15 }
  0xd9   :  { %v4009_v10 = vpop.xlane.xlu2 %222 }
  0xda   :  { %7345 = vst [vmem:[#allocation38_spill] sm:$0xff] %v4009_v10  ;;  %vm7062_vm15 = vcmp.gt.f32.partialorder %v4009_v10, 0.0 }
  0xdd   :  { %339 = vmax.xlane.f32.xlu2 %v3761_v36 }
  0xde   :  { %v3990_v39 = vpop.xlane.xlu1 %291  ;;  %v3992_v32 = vpop.xlane.xlu0 %288 }
  0xdf   :  { %7338 = vst [vmem:[#allocation31_spill] sm:$0xff] %v3990_v39 }
  0xe0   :  { %7339 = vst [vmem:[#allocation32_spill] sm:$0xff] %v3992_v32 }
  0xe5   :  { %348 = vmax.xlane.f32.xlu2 %v3785_v41 }
  0xe6   :  { %v3997_v51 = vpop.xlane.xlu1 %300  ;;  %v3999_v22 = vpop.xlane.xlu0 %297 }
  0xe7   :  { %7340 = vst [vmem:[#allocation33_spill] sm:$0xff] %v3997_v51 }
  0xe8   :  { %7341 = vst [vmem:[#allocation34_spill] sm:$0xff] %v3999_v22 }
  0xed   :  { %357 = vmax.xlane.f32.xlu2 %v3820_v29 }
  0xee   :  { %v4004_v9 = vpop.xlane.xlu1 %309  ;;  %v4006_v63 = vpop.xlane.xlu0 %306 }
  0xef   :  { %7343 = vst [vmem:[#allocation36_spill] sm:$0xff] %v4004_v9 }
  0xf0   :  { %7344 = vst [vmem:[#allocation37_spill] sm:$0xff] %v4006_v63  ;;  %v4016_v56 = vpop.xlane.xlu2 %231 }
  0xf1   :  { %7348 = vst [vmem:[#allocation41_spill] sm:$0xff] %v4016_v56  ;;  %vm7065_vm14 = vcmp.gt.f32.partialorder %v4016_v56, 0.0 }
  0xf5   :  { %366 = vmax.xlane.f32.xlu2 %v3849_v61 }
  0xf6   :  { %v4011_v55 = vpop.xlane.xlu1 %318  ;;  %v4013_v25 = vpop.xlane.xlu0 %315 }
  0xf7   :  { %7346 = vst [vmem:[#allocation39_spill] sm:$0xff] %v4011_v55 }
  0xf8   :  { %7347 = vst [vmem:[#allocation40_spill] sm:$0xff] %v4013_v25  ;;  %v4023_v42 = vpop.xlane.xlu2 %240 }
  0xf9   :  { %7351 = vst [vmem:[#allocation44_spill] sm:$0xff] %v4023_v42  ;;  %vm7068_vm11 = vcmp.gt.f32.partialorder %v4023_v42, 0.0 }
  0xfe   :  { %v4018_v35 = vpop.xlane.xlu1 %327  ;;  %v4020_v36 = vpop.xlane.xlu0 %324 }
  0xff   :  { %7349 = vst [vmem:[#allocation42_spill] sm:$0xff] %v4018_v35 }
 0x100   :  { %7350 = vst [vmem:[#allocation43_spill] sm:$0xff] %v4020_v36  ;;  %v4033_v3 = vpop.xlane.xlu2 %249 }
 0x101   :  { %7356 = vst [vmem:[#allocation49_spill] sm:$0xff] %v4033_v3 }
 0x106   :  { %v4025_v14 = vpop.xlane.xlu1 %336  ;;  %v4027_v41 = vpop.xlane.xlu0 %333  ;;  %v7386_v10 = vld [vmem:[#allocation42_spill] sm:$0xff] }
 0x107   :  { %7352 = vst [vmem:[#allocation45_spill] sm:$0xff] %v4025_v14 }
 0x108   :  { %7353 = vst [vmem:[#allocation46_spill] sm:$0xff] %v4027_v41  ;;  %v4039_v23 = vpop.xlane.xlu2 %258 }
 0x109   :  { %7359 = vst [vmem:[#allocation52_spill] sm:$0xff] %v4039_v23 }
 0x10e   :  { %v4029_v13 = vpop.xlane.xlu1 %345  ;;  %v4031_v49 = vpop.xlane.xlu0 %342 }
 0x10f   :  { %7354 = vst [vmem:[#allocation47_spill] sm:$0xff] %v4029_v13 }
 0x110   :  { %7355 = vst [vmem:[#allocation48_spill] sm:$0xff] %v4031_v49  ;;  %v4047_v30 = vpop.xlane.xlu2 %267 }
 0x111   :  { %7362 = vst [vmem:[#allocation55_spill] sm:$0xff] %v4047_v30 }
 0x116   :  { %v4035_v29 = vpop.xlane.xlu1 %354  ;;  %v4037_v50 = vpop.xlane.xlu0 %351 }
 0x117   :  { %7357 = vst [vmem:[#allocation50_spill] sm:$0xff] %v4035_v29  ;;  %v618_v29 = vand.u32 65535, %v3951_v26  ;;  %v664_v26 = vadd.s32 40, %v3918_v6  ;;  %v7385_v56 = vld [vmem:[#allocation48_spill] sm:$0xff] }
 0x118   :  { %7358 = vst [vmem:[#allocation51_spill] sm:$0xff] %v4037_v50 }
 0x11e   :  { %v4041_v31 = vpop.xlane.xlu1 %363  ;;  %v4043_v61 = vpop.xlane.xlu0 %360 }
 0x11f   :  { %7360 = vst [vmem:[#allocation53_spill] sm:$0xff] %v4041_v31  ;;  %v620_v31 = vcvt.s32.f32 %v618_v29  ;;  %v658_v29 = vadd.s32 32, %v3918_v6 }
 0x120   :  { %7361 = vst [vmem:[#allocation54_spill] sm:$0xff] %v4043_v61  ;;  %v4055_v61 = vpop.xlane.xlu2 %276 }
 0x121   :  { %7364 = vst [vmem:[#allocation57_spill] sm:$0xff] %v4055_v61 }
 0x126   :  { %v4049_v8 = vpop.xlane.xlu0 %369  ;;  %v586_v4 = vpop.xlane.xlu1 %585 }
 0x127   :  { %7363 = vst [vmem:[#allocation56_spill] sm:$0xff] %v4049_v8  ;;  %vm587_vm5 = vcmp.eq.f32.partialorder %v3948_v1, %v586_v4  ;;  %v652_v1 = vadd.s32 24, %v3918_v6 }
 0x128   :  { %v588_v60 = vsel %vm587_vm5, %v583_v7, inf  ;;  %v4059_v2 = vpop.xlane.xlu2 %285  ;;  %v3455_v7 = vmov 129   ;;  %vm373_vm5 = vcmp.gt.f32.partialorder %v3804_v45, 0.0 }
 0x129   :  { %589 = vmin.xlane.f32.xlu2 %v588_v60  ;;  %7365 = vst [vmem:[#allocation58_spill] sm:$0xff] %v4059_v2 }
 0x12a   :  { %35 = vst.msk [vmem:[#allocation3] sm:$0xff] %vm7051_vm7, %v3455_v7 }
 0x12b   :  { %33 = vst.msk [vmem:[#allocation2] sm:$0xff] %vm7051_vm7, %v3455_v7 }
 0x12c   :  { %34 = vst.msk [vmem:[#allocation2 + $0x8] sm:$0xff] %vm7051_vm7, %v3455_v7 }
 0x12d   :  { %36 = vst.msk [vmem:[#allocation3 + $0x8] sm:$0xff] %vm7051_vm7, %v3455_v7 }
 0x12e   :  { %v4053_v13 = vpop.xlane.xlu0 %622 }
 0x12f   :  { %vm624_vm6 = vcmp.eq.f32.partialorder %v3961_v24, %v4053_v13  ;;  %v7040_v24 = vmov 0  }
 0x130   :  { %v625_v47 = vsel %vm624_vm6, %v620_v31, -inf  ;;  %v4062_v38 = vpop.xlane.xlu2 %294  ;;  %3359 = vset.pattern.permute.xlu0 %v7040_v24  ;;  %vm375_vm6 = vcmp.gt.f32.partialorder %v3981_v17, 0.0 }
 0x131   :  { %626 = vmax.xlane.f32.xlu1 %v625_v47  ;;  %7366 = vst [vmem:[#allocation59_spill] sm:$0xff] %v4062_v38  ;;  %v676_v47 = vadd.s32 56, %v3918_v6 }
 0x138   :  { %v4066_v60 = vpop.xlane.xlu2 %303 }
 0x139   :  { %7367 = vst [vmem:[#allocation60_spill] sm:$0xff] %v4066_v60 }
 0x140   :  { %v4072_v31 = vpop.xlane.xlu2 %312 }
 0x141   :  { %636 = vperm.xlu2 %3351, %v3866_v18   ;;  %7368 = vst [vmem:[#allocation61_spill] sm:$0xff] %v4072_v31  ;;  %v4091_v14 = vpop.permute.xlu0 %642 }
 0x142   :  { %7372 = vst [vmem:[#allocation65_spill] sm:$0xff] %v4091_v14  ;;  %v681_v7 = vsel %vm372_vm8, %v4091_v14, 129 }
 0x149   :  { %3354 = vset.pattern.permute.xlu2 %v652_v1  ;;  %v4080_v1 = vpop.xlane.xlu2 %321 }
 0x14a   :  { %648 = vperm.xlu1 %3353, %v3866_v18   ;;  %7369 = vst [vmem:[#allocation62_spill] sm:$0xff] %v4080_v1 }
 0x151   :  { %654 = vperm.xlu2 %3354, %v3866_v18  }
 0x152   :  { %3356 = vset.pattern.permute.xlu1 %v664_v26  ;;  %v670_v26 = vadd.s32 48, %v3918_v6 }
 0x159   :  { %3355 = vset.pattern.permute.xlu2 %v658_v29  ;;  %v4085_v29 = vpop.xlane.xlu2 %330 }
 0x15a   :  { %666 = vperm.xlu1 %3356, %v3866_v18   ;;  %7370 = vst [vmem:[#allocation63_spill] sm:$0xff] %v4085_v29 }
 0x161   :  { %660 = vperm.xlu2 %3355, %v3866_v18   ;;  %v4089_v8 = vpop.xlane.xlu2 %339 }
 0x162   :  { %3358 = vset.pattern.permute.xlu1 %v676_v47  ;;  %7371 = vst [vmem:[#allocation64_spill] sm:$0xff] %v4089_v8 }
 0x169   :  { %3357 = vset.pattern.permute.xlu2 %v670_v26  ;;  %v4098_v47 = vpop.xlane.xlu2 %348  ;;  %v3456_v26 = vmov 4294967295  }
 0x16a   :  { %678 = vperm.xlu1 %3358, %v3866_v18   ;;  %7373 = vst [vmem:[#allocation66_spill] sm:$0xff] %v4098_v47  ;;  %v629_v47 = vcvt.f32.s32 %v4053_v13 }
 0x16b   :  { %39 = vst.msk [vmem:[#allocation5] sm:$0xff] %vm7051_vm7, %v3456_v26 }
 0x16c   :  { %37 = vst.msk [vmem:[#allocation4] sm:$0xff] %vm7051_vm7, %v3456_v26 }
 0x16d   :  { %38 = vst.msk [vmem:[#allocation4 + $0x8] sm:$0xff] %vm7051_vm7, %v3456_v26 }
 0x16e   :  { %40 = vst.msk [vmem:[#allocation5 + $0x8] sm:$0xff] %vm7051_vm7, %v3456_v26 }
 0x171   :  { %672 = vperm.xlu2 %3357, %v3866_v18   ;;  %v4104_v6 = vpop.xlane.xlu2 %357 }
 0x172   :  { %3361 = vset.pattern.permute.xlu1 %v7040_v24  ;;  %7374 = vst [vmem:[#allocation67_spill] sm:$0xff] %v4104_v6  ;;  %v630_v6 = vshll.u32 %v629_v47, 16 }
 0x179   :  { %3360 = vset.pattern.permute.xlu2 %v7040_v24  ;;  %v4106_v18 = vpop.xlane.xlu2 %366  ;;  %v592_v24 = vcvt.f32.s32 %v586_v4 }
 0x17a   :  { %748 = vperm.xlu2 %3360, %v681_v7   ;;  %7375 = vst [vmem:[#allocation68_spill] sm:$0xff] %v4106_v18  ;;  %v1495_v7 = vld [vmem:[#allocation3] sm:$0xff] }
 0x17b   :  { %v593_v43 = vshll.u32 %v592_v24, 16 }
 0x19c   :  { %v590_v50 = vpop.xlane.xlu2 %589 }
 0x19d   :  { %v591_v8 = vcvt.f32.s32 %v590_v50  ;;  %v1503_v50 = vld [vmem:[#allocation5] sm:$0xff] }
 0x19f   :  { %v594_v35 = vadd.s32 %v593_v43, %v591_v8 }
 0x1a1   :  { %vm1496_vm9 = vcmp.lt.s32.totalorder %v1495_v7, %v594_v35 }
 0x1a2   :  { %v1497_v49 = vsel %vm1496_vm9, %v1495_v7, %v594_v35  ;;  %vm377_vm9 = vcmp.gt.f32.partialorder %v3863_v28, 0.0 }
 0x1a3   :  { %1498 = vst.msk [vmem:[#allocation3] sm:$0xff] %vm7051_vm7, %v1497_v49 }
 0x1a4   :  { %v627_v29 = vpop.xlane.xlu1 %626  ;;  %v4111_v26 = vpop.permute.xlu2 %636 }
 0x1a5   :  { %7376 = vst [vmem:[#allocation69_spill] sm:$0xff] %v4111_v26  ;;  %v628_v55 = vcvt.f32.s32 %v627_v29  ;;  %v680_v4 = vsel %vm371_vm10, %v4111_v26, 129  ;;  %v1100_v17 = vsel %vm379_vm0, %v4111_v26, 4294967295 }
 0x1a6   :  { %745 = vperm.xlu0 %3359, %v680_v4  }
 0x1a7   :  { %v631_v43 = vadd.s32 %v630_v6, %v628_v55 }
 0x1a9   :  { %vm1504_vm12 = vcmp.gt.s32.totalorder %v1503_v50, %v631_v43 }
 0x1aa   :  { %v1505_v13 = vsel %vm1504_vm12, %v1503_v50, %v631_v43  ;;  %vm7055_vm12 = vcmp.gt.f32.partialorder %v3988_v54, 0.0  ;;  %v688_v43 = vsel %vm379_vm0, %v4111_v26, 129  ;;  %vm7409_vm0 = vcmp.gt.f32.partialorder %v3946_v11, 0.0 }
 0x1ab   :  { %1506 = vst.msk [vmem:[#allocation5] sm:$0xff] %vm7051_vm7, %v1505_v13  ;;  %vm380_vm7 = vcmp.gt.f32.partialorder %v3873_v52, 0.0 }
 0x1ac   :  { %v4118_v35 = vpop.permute.xlu2 %654  ;;  %v689_v50 = vsel %vm380_vm7, %v4091_v14, 129  ;;  %v1101_v28 = vsel %vm380_vm7, %v4091_v14, 4294967295  ;;  %vm7411_vm7 = vcmp.gt.f32.partialorder %v3959_v33, 0.0 }
 0x1ad   :  { %7377 = vst [vmem:[#allocation70_spill] sm:$0xff] %v4118_v35  ;;  %v683_v49 = vsel %vm374_vm13, %v4118_v35, 129 }
 0x1ae   :  { %754 = vperm.xlu2 %3360, %v683_v49  }
 0x1bb   :  { %v4129_v55 = vpop.permute.xlu2 %660 }
 0x1bc   :  { %v4124_v8 = vpop.permute.xlu1 %648  ;;  %7379 = vst [vmem:[#allocation72_spill] sm:$0xff] %v4129_v55  ;;  %v684_v24 = vsel %vm375_vm6, %v4129_v55, 129  ;;  %v692_v49 = vsel %vm383_vm4, %v4129_v55, 129  ;;  %v1096_v45 = vsel %vm375_vm6, %v4129_v55, 4294967295  ;;  %v1104_v48 = vsel %vm383_vm4, %v4129_v55, 4294967295 }
 0x1bd   :  { %7378 = vst [vmem:[#allocation71_spill] sm:$0xff] %v4124_v8  ;;  %v682_v6 = vsel %vm373_vm5, %v4124_v8, 129  ;;  %vm7167_vm4 = vcmask 195712   ;;  %vm959_vm6 = vcmask 458112  }
 0x1be   :  { %751 = vperm.xlu1 %3361, %v682_v6  }
 0x1c6   :  { %757 = vperm.xlu1 %3361, %v684_v24  }
 0x1cb   :  { %v4136_v29 = vpop.permute.xlu2 %672 }
 0x1cc   :  { %7380 = vst [vmem:[#allocation73_spill] sm:$0xff] %v4136_v29  ;;  %v4139_v47 = vpop.permute.xlu1 %666  ;;  %v686_v7 = vsel %vm377_vm9, %v4136_v29, 129  ;;  %v1098_v62 = vsel %vm377_vm9, %v4136_v29, 4294967295  ;;  %vm7231_vm9 = vcmask 523712  }
 0x1cd   :  { %7381 = vst [vmem:[#allocation74_spill] sm:$0xff] %v4139_v47  ;;  %763 = vperm.xlu2 %3360, %v686_v7   ;;  %v685_v4 = vsel %vm7055_vm12, %v4139_v47, 129  ;;  %vm7059_vm12 = vcmp.gt.f32.partialorder %v4002_v53, 0.0 }
 0x1ce   :  { %760 = vperm.xlu0 %3359, %v685_v4   ;;  %v691_v6 = vsel %vm7059_vm12, %v4118_v35, 129  ;;  %v690_v4 = vsel %vm7063_vm1, %v4124_v8, 129  ;;  %vm7067_vm12 = vcmp.gt.f32.partialorder %v3946_v11, 0.0  ;;  %vm7069_vm1 = vcmp.gt.f32.partialorder %v3927_v19, 0.0 }
 0x1cf   :  { %v1093_v19 = vsel %vm372_vm8, %v4091_v14, 4294967295  ;;  %vm7165_vm8 = vcmask 261312  }
 0x1d5   :  { %772 = vperm.xlu2 %3360, %v689_v50   ;;  %v694_v50 = vsel %vm7062_vm15, %v4136_v29, 129  ;;  %vm7070_vm15 = vcmp.gt.f32.partialorder %v3959_v33, 0.0  ;;  %v4561_v33 = vadd.s32 4294967248, %v7408_v27 }
 0x1d6   :  { %769 = vperm.xlu0 %3359, %v688_v43   ;;  %v698_v43 = vsel %vm7067_vm12, %v4124_v8, 129  ;;  %vm7071_vm12 = vcmp.gt.f32.partialorder %v4033_v3, 0.0 }
 0x1dc   :  { %v4158_v13 = vpop.permute.xlu1 %678 }
 0x1dd   :  { %7382 = vst [vmem:[#allocation75_spill] sm:$0xff] %v4158_v13  ;;  %781 = vperm.xlu2 %3360, %v692_v49   ;;  %v687_v24 = vsel %vm7060_vm3, %v4158_v13, 129  ;;  %v695_v7 = vsel %vm386_vm2, %v4158_v13, 129  ;;  %vm7066_vm3 = vcmp.gt.f32.partialorder %v3898_v0, 0.0  ;;  %v1107_v52 = vsel %vm386_vm2, %v4158_v13, 4294967295 }
 0x1de   :  { %778 = vperm.xlu0 %3359, %v691_v6   ;;  %766 = vperm.xlu1 %3361, %v687_v24   ;;  %v693_v49 = vsel %vm7066_vm3, %v4139_v47, 129  ;;  %v697_v6 = vsel %vm7065_vm14, %v4091_v14, 129  ;;  %v701_v24 = vsel %vm7070_vm15, %v4139_v47, 129  ;;  %vm7073_vm14 = vcmp.gt.f32.partialorder %v3967_v37, 0.0 }
 0x1df   :  { %vm7072_vm3 = vcmp.gt.f32.partialorder %v3944_v16, 0.0  ;;  %vm7074_vm15 = vcmp.gt.f32.partialorder %v4039_v23, 0.0  ;;  %vm939_vm2 = vcmask 130112  }
 0x1e5   :  { %790 = vperm.xlu2 %3360, %v695_v7   ;;  %v696_v7 = vsel %vm7069_vm1, %v4111_v26, 129  ;;  %vm7075_vm1 = vcmp.gt.f32.partialorder %v3957_v20, 0.0  ;;  %v7394_v20 = vld [vmem:[#allocation56_spill] sm:$0xff] }
 0x1e6   :  { %775 = vperm.xlu1 %3361, %v690_v4   ;;  %787 = vperm.xlu0 %3359, %v694_v50   ;;  %v700_v4 = vsel %vm7068_vm11, %v4129_v55, 129  ;;  %v704_v50 = vsel %vm7073_vm14, %v4111_v26, 129  ;;  %vm7076_vm11 = vcmp.gt.f32.partialorder %v3972_v44, 0.0  ;;  %vm7077_vm14 = vcmp.gt.f32.partialorder %v4047_v30, 0.0  ;;  %v7383_v30 = vld [vmem:[#allocation39_spill] sm:$0xff] }
 0x1ed   :  { %799 = vperm.xlu2 %3360, %v698_v43   ;;  %v699_v43 = vsel %vm7072_vm3, %v4118_v35, 129  ;;  %vm7078_vm3 = vcmp.gt.f32.partialorder %v3965_v12, 0.0 }
 0x1ee   :  { %784 = vperm.xlu1 %3361, %v693_v49   ;;  %796 = vperm.xlu0 %3359, %v697_v6   ;;  %v703_v49 = vsel %vm7071_vm12, %v4158_v13, 129  ;;  %v707_v6 = vsel %vm7076_vm11, %v4118_v35, 129  ;;  %vm7079_vm12 = vcmp.gt.f32.partialorder %v3977_v40, 0.0  ;;  %vm7080_vm11 = vcmp.gt.f32.partialorder %v4055_v61, 0.0 }
 0x1f5   :  { %808 = vperm.xlu2 %3360, %v701_v24   ;;  %v702_v24 = vsel %vm7075_vm1, %v4136_v29, 129  ;;  %vm7081_vm1 = vcmp.gt.f32.partialorder %v3970_v57, 0.0  ;;  %v7393_v57 = vld [vmem:[#allocation67_spill] sm:$0xff] }
 0x1f6   :  { %793 = vperm.xlu1 %3361, %v696_v7   ;;  %805 = vperm.xlu0 %3359, %v700_v4   ;;  %v706_v7 = vsel %vm7074_vm15, %v4124_v8, 129  ;;  %v710_v4 = vsel %vm7079_vm12, %v4136_v29, 129  ;;  %vm7082_vm15 = vcmp.gt.f32.partialorder %v3985_v15, 0.0  ;;  %vm7083_vm12 = vcmp.gt.f32.partialorder %v4059_v2, 0.0 }
 0x1fd   :  { %817 = vperm.xlu2 %3360, %v704_v50   ;;  %v705_v50 = vsel %vm7078_vm3, %v4091_v14, 129  ;;  %vm7084_vm3 = vcmp.gt.f32.partialorder %v3975_v46, 0.0  ;;  %v7392_v46 = vld [vmem:[#allocation47_spill] sm:$0xff] }
 0x1fe   :  { %802 = vperm.xlu1 %3361, %v699_v43   ;;  %814 = vperm.xlu0 %3359, %v703_v49   ;;  %v709_v43 = vsel %vm7077_vm14, %v4139_v47, 129  ;;  %v713_v49 = vsel %vm7082_vm15, %v4091_v14, 129  ;;  %vm7085_vm14 = vcmp.gt.f32.partialorder %v3992_v32, 0.0  ;;  %vm7086_vm15 = vcmp.gt.f32.partialorder %v4062_v38, 0.0 }
 0x205   :  { %826 = vperm.xlu2 %3360, %v707_v6   ;;  %v708_v6 = vsel %vm7081_vm1, %v4129_v55, 129  ;;  %vm7087_vm1 = vcmp.gt.f32.partialorder %v3983_v34, 0.0  ;;  %v7391_v34 = vld [vmem:[#allocation54_spill] sm:$0xff] }
 0x206   :  { %811 = vperm.xlu1 %3361, %v702_v24   ;;  %823 = vperm.xlu0 %3359, %v706_v7   ;;  %v712_v24 = vsel %vm7080_vm11, %v4111_v26, 129  ;;  %v4253_v7 = vpop.permute.xlu2 %748  ;;  %vm7088_vm11 = vcmp.gt.f32.partialorder %v3999_v22, 0.0 }
 0x20d   :  { %835 = vperm.xlu2 %3360, %v710_v4   ;;  %v716_v4 = vsel %vm7085_vm14, %v4129_v55, 129  ;;  %vm7092_vm14 = vcmp.gt.f32.partialorder %v3990_v39, 0.0 }
 0x20e   :  { %820 = vperm.xlu1 %3361, %v705_v50   ;;  %832 = vperm.xlu0 %3359, %v709_v43   ;;  %v711_v50 = vsel %vm7084_vm3, %v4158_v13, 129  ;;  %v715_v43 = vsel %vm7083_vm12, %v4118_v35, 129  ;;  %vm7091_vm12 = vcmp.gt.f32.partialorder %v4066_v60, 0.0  ;;  %vm413_vm3 = vcmp.gt.f32.partialorder %v4006_v63, 0.0 }
 0x215   :  { %844 = vperm.xlu2 %3360, %v713_v49   ;;  %v4267_v49 = vpop.permute.xlu2 %754 }
 0x216   :  { %829 = vperm.xlu1 %3361, %v708_v6   ;;  %841 = vperm.xlu0 %3359, %v712_v24   ;;  %v719_v6 = vsel %vm7088_vm11, %v4158_v13, 129  ;;  %v714_v24 = vsel %vm7087_vm1, %v4124_v8, 129  ;;  %vm7099_vm1 = vcmp.gt.f32.partialorder %v3997_v51, 0.0  ;;  %vm7097_vm11 = vcmp.gt.f32.partialorder %v4072_v31, 0.0  ;;  %v7389_v51 = vld [vmem:[#allocation45_spill] sm:$0xff] }
 0x217   :  { %v720_v60 = vsel %vm7099_vm1, %v4111_v26, 129  ;;  %vm7117_vm1 = vcmp.gt.f32.partialorder %v7383_v30, 0.0  ;;  %v7388_v30 = vld [vmem:[#allocation51_spill] sm:$0xff] }
 0x218   :  { %v4311_v38 = vpop.permute.xlu0 %745 }
 0x21d   :  { %853 = vperm.xlu2 %3360, %v716_v4   ;;  %v718_v4 = vsel %vm7086_vm15, %v4136_v29, 129  ;;  %vm7093_vm15 = vcmp.gt.f32.partialorder %v4013_v25, 0.0 }
 0x21e   :  { %838 = vperm.xlu1 %3361, %v711_v50   ;;  %850 = vperm.xlu0 %3359, %v715_v43   ;;  %v722_v43 = vsel %vm413_vm3, %v4124_v8, 129 }
 0x225   :  { %862 = vperm.xlu2 %3360, %v719_v6   ;;  %v717_v6 = vsel %vm7092_vm14, %v4139_v47, 129  ;;  %vm7108_vm14 = vcmp.gt.f32.partialorder %v4004_v9, 0.0 }
 0x226   :  { %847 = vperm.xlu1 %3361, %v714_v24   ;;  %859 = vperm.xlu0 %3359, %v718_v4   ;;  %v721_v24 = vsel %vm7091_vm12, %v4091_v14, 129  ;;  %vm7100_vm12 = vcmp.gt.f32.partialorder %v4020_v36, 0.0 }
 0x227   :  { %v4281_v50 = vpop.permute.xlu2 %763 }
 0x22d   :  { %871 = vperm.xlu2 %3360, %v722_v43   ;;  %v725_v43 = vsel %vm7093_vm15, %v4139_v47, 129  ;;  %vm7106_vm15 = vcmp.gt.f32.partialorder %v4080_v1, 0.0 }
 0x22e   :  { %856 = vperm.xlu1 %3361, %v717_v6   ;;  %868 = vperm.xlu0 %3359, %v721_v24   ;;  %v724_v6 = vsel %vm7097_vm11, %v4129_v55, 129  ;;  %vm7109_vm11 = vcmp.gt.f32.partialorder %v4027_v41, 0.0 }
 0x22f   :  { %v4295_v4 = vpop.permute.xlu2 %772  ;;  %v731_v23 = vsel %vm7109_vm11, %v4118_v35, 129 }
 0x230   :  { %v4325_v31 = vpop.permute.xlu1 %751 }
 0x235   :  { %880 = vperm.xlu2 %3360, %v725_v43   ;;  %v728_v43 = vsel %vm7100_vm12, %v4111_v26, 129 }
 0x236   :  { %865 = vperm.xlu1 %3361, %v720_v60   ;;  %877 = vperm.xlu0 %3359, %v724_v6   ;;  %v723_v60 = vsel %vm7108_vm14, %v4118_v35, 129  ;;  %v727_v6 = vsel %vm7106_vm15, %v4158_v13, 129  ;;  %vm7118_vm15 = vcmp.gt.f32.partialorder %v7385_v56, 0.0  ;;  %vm7125_vm14 = vcmp.gt.f32.partialorder %v7386_v10, 0.0 }
 0x237   :  { %v4309_v24 = vpop.permute.xlu2 %781  ;;  %v734_v53 = vsel %vm7118_vm15, %v4136_v29, 129 }
 0x238   :  { %v4343_v1 = vpop.permute.xlu1 %757 }
 0x23d   :  { %889 = vperm.xlu2 %3360, %v728_v43   ;;  %v7384_v43 = vld [vmem:[#allocation63_spill] sm:$0xff] }
 0x23e   :  { %874 = vperm.xlu1 %3361, %v723_v60   ;;  %886 = vperm.xlu0 %3359, %v727_v6   ;;  %vm7114_vm12 = vcmp.gt.f32.partialorder %v7384_v43, 0.0  ;;  %v726_v60 = vsel %vm7117_vm1, %v4136_v29, 129  ;;  %vm7134_vm1 = vcmp.gt.f32.partialorder %v7389_v51, 0.0 }
 0x23f   :  { %v4327_v2 = vpop.permute.xlu2 %790  ;;  %v730_v6 = vsel %vm7114_vm12, %v4124_v8, 129  ;;  %vm7127_vm12 = vcmp.gt.f32.partialorder %v7388_v30, 0.0  ;;  %v7396_v30 = vld [vmem:[#allocation53_spill] sm:$0xff] }
 0x240   :  { %v4329_v61 = vpop.permute.xlu0 %760  ;;  %v737_v10 = vsel %vm7127_vm12, %v4091_v14, 129  ;;  %vm7140_vm12 = vcmp.gt.f32.partialorder %v7393_v57, 0.0 }
 0x245   :  { %898 = vperm.xlu2 %3360, %v731_v23   ;;  %v7387_v23 = vld [vmem:[#allocation64_spill] sm:$0xff] }
 0x246   :  { %883 = vperm.xlu1 %3361, %v726_v60   ;;  %895 = vperm.xlu0 %3359, %v730_v6   ;;  %vm7123_vm11 = vcmp.gt.f32.partialorder %v7387_v23, 0.0  ;;  %v729_v60 = vsel %vm7125_vm14, %v4091_v14, 129  ;;  %vm426_vm14 = vcmp.gt.f32.partialorder %v7392_v46, 0.0 }
 0x247   :  { %v4347_v42 = vpop.permute.xlu2 %799  ;;  %v733_v6 = vsel %vm7123_vm11, %v4139_v47, 129  ;;  %vm7135_vm11 = vcmp.gt.f32.partialorder %v7391_v34, 0.0  ;;  %v7395_v34 = vld [vmem:[#allocation50_spill] sm:$0xff] }
 0x248   :  { %v4345_v3 = vpop.permute.xlu0 %769 }
 0x24d   :  { %907 = vperm.xlu2 %3360, %v734_v53   ;;  %v7390_v53 = vld [vmem:[#allocation66_spill] sm:$0xff] }
 0x24e   :  { %892 = vperm.xlu1 %3361, %v729_v60   ;;  %904 = vperm.xlu0 %3359, %v733_v6   ;;  %vm7132_vm15 = vcmp.gt.f32.partialorder %v7390_v53, 0.0  ;;  %v732_v60 = vsel %vm7134_vm1, %v4129_v55, 129  ;;  %vm429_vm1 = vcmp.gt.f32.partialorder %v7395_v34, 0.0 }
 0x24f   :  { %v4366_v9 = vpop.permute.xlu2 %808  ;;  %v736_v6 = vsel %vm7132_vm15, %v4111_v26, 129  ;;  %vm434_vm15 = vcmp.gt.f32.partialorder %v7394_v20, 0.0  ;;  %v1095_v20 = vsel %vm374_vm13, %v4118_v35, 4294967295  ;;  %vm955_vm13 = vcmask 392512  }
 0x250   :  { %v4361_v43 = vpop.permute.xlu0 %778  ;;  %v4363_v21 = vpop.permute.xlu1 %766 }
 0x255   :  { %916 = vperm.xlu2 %3360, %v737_v10   ;;  %v740_v10 = vsel %vm7135_vm11, %v4129_v55, 129  ;;  %vm433_vm11 = vcmp.gt.f32.partialorder %v4106_v18, 0.0  ;;  %v4510_v55 = vadd.s32 4294967288, %v7408_v27 }
 0x256   :  { %901 = vperm.xlu1 %3361, %v732_v60   ;;  %913 = vperm.xlu0 %3359, %v736_v6   ;;  %v735_v60 = vsel %vm426_vm14, %v4158_v13, 129  ;;  %v739_v6 = vsel %vm7140_vm12, %v4118_v35, 129  ;;  %vm432_vm12 = vcmp.gt.f32.partialorder %v7396_v30, 0.0 }
 0x257   :  { %v4389_v51 = vpop.permute.xlu2 %817  ;;  %v741_v18 = vsel %vm432_vm12, %v4139_v47, 129  ;;  %v938_v59 = vperm.slane %v4253_v7, %v4510_v55  ;;  %v4534_v7 = vadd.s32 4294967272, %v7408_v27 }
 0x258   :  { %v4379_v23 = vpop.permute.xlu1 %775  ;;  %v4381_v39 = vpop.permute.xlu0 %787 }
 0x25d   :  { %925 = vperm.xlu2 %3360, %v740_v10   ;;  %v743_v10 = vsel %vm434_vm15, %v4158_v13, 129  ;;  %v965_v13 = vperm.slane %v4345_v3, %v7408_v27  ;;  %v4539_v3 = vadd.s32 4294967256, %v7408_v27 }
 0x25e   :  { %910 = vperm.xlu1 %3361, %v735_v60   ;;  %922 = vperm.xlu0 %3359, %v739_v6   ;;  %v738_v60 = vsel %vm429_vm1, %v4124_v8, 129  ;;  %v742_v6 = vsel %vm433_vm11, %v4136_v29, 129 }
 0x25f   :  { %v4413_v57 = vpop.permute.xlu2 %826 }
 0x260   :  { %v4397_v53 = vpop.permute.xlu1 %784  ;;  %v4399_v12 = vpop.permute.xlu0 %796 }
 0x265   :  { %934 = vperm.xlu2 %3360, %v743_v10   ;;  %v1092_v10 = vsel %vm371_vm10, %v4111_v26, 4294967295  ;;  %vm7166_vm10 = vcmask 326912  }
 0x266   :  { %919 = vperm.xlu1 %3361, %v738_v60   ;;  %931 = vperm.xlu0 %3359, %v742_v6  }
 0x267   :  { %v4430_v34 = vpop.permute.xlu2 %835 }
 0x268   :  { %v4415_v46 = vpop.permute.xlu1 %793  ;;  %v4417_v16 = vpop.permute.xlu0 %805  ;;  %7397 = vst [vmem:[#allocation76_spill] sm:$0xff] %v4430_v34 }
 0x26d   :  { %1157 = vperm.xlu2 %3360, %v1092_v10  }
 0x26e   :  { %928 = vperm.xlu1 %3361, %v741_v18   ;;  %v1094_v18 = vsel %vm373_vm5, %v4124_v8, 4294967295  ;;  %vm7412_vm5 = vcmp.gt.f32.partialorder %v3967_v37, 0.0 }
 0x26f   :  { %v4439_v10 = vpop.permute.xlu2 %844 }
 0x270   :  { %v4426_v60 = vpop.permute.xlu1 %802  ;;  %v4428_v6 = vpop.permute.xlu0 %814 }
 0x275   :  { %1160 = vperm.xlu2 %3360, %v1093_v19  }
 0x277   :  { %v4451_v19 = vpop.permute.xlu2 %853 }
 0x278   :  { %v4435_v56 = vpop.permute.xlu1 %811  ;;  %v4437_v58 = vpop.permute.xlu0 %823 }
 0x27d   :  { %1163 = vperm.xlu2 %3360, %v1094_v18  }
 0x27f   :  { %v4460_v18 = vpop.permute.xlu2 %862 }
 0x280   :  { %v4444_v30 = vpop.permute.xlu1 %820  ;;  %v4446_v0 = vpop.permute.xlu0 %832  ;;  %7399 = vst [vmem:[#allocation15_spill] sm:$0xff] %v4460_v18 }
 0x285   :  { %1166 = vperm.xlu2 %3360, %v1095_v20  }
 0x287   :  { %v4473_v63 = vpop.permute.xlu2 %871 }
 0x288   :  { %v4453_v41 = vpop.permute.xlu1 %829  ;;  %v4455_v5 = vpop.permute.xlu0 %841 }
 0x28d   :  { %1169 = vperm.xlu2 %3360, %v1096_v45  }
 0x28f   :  { %v4482_v32 = vpop.permute.xlu2 %880 }
 0x290   :  { %v4462_v36 = vpop.permute.xlu1 %838  ;;  %v4464_v54 = vpop.permute.xlu0 %850  ;;  %7403 = vst [vmem:[#allocation80_spill] sm:$0xff] %v4482_v32 }
 0x291   :  { %7400 = vst [vmem:[#allocation77_spill] sm:$0xff] %v4462_v36 }
 0x295   :  { %1175 = vperm.xlu2 %3360, %v1098_v62  }
 0x298   :  { %v4469_v20 = vpop.permute.xlu1 %847  ;;  %v4471_v25 = vpop.permute.xlu0 %859 }
 0x299   :  { %7401 = vst [vmem:[#allocation78_spill] sm:$0xff] %v4471_v25 }
 0x29d   :  { %1181 = vperm.xlu2 %3360, %v1100_v17   ;;  %v4494_v17 = vpop.permute.xlu2 %889 }
 0x2a0   :  { %v4478_v45 = vpop.permute.xlu1 %856  ;;  %v4480_v22 = vpop.permute.xlu0 %868 }
 0x2a1   :  { %7402 = vst [vmem:[#allocation79_spill] sm:$0xff] %v4478_v45 }
 0x2a5   :  { %1184 = vperm.xlu2 %3360, %v1101_v28   ;;  %v4503_v28 = vpop.permute.xlu2 %898 }
 0x2a6   :  { %7406 = vst [vmem:[#allocation83_spill] sm:$0xff] %v4503_v28 }
 0x2a8   :  { %v4487_v62 = vpop.permute.xlu1 %865  ;;  %v4489_v15 = vpop.permute.xlu0 %877 }
 0x2a9   :  { %7404 = vst [vmem:[#allocation81_spill] sm:$0xff] %v4489_v15  ;;  %v1113_v15 = vsel %vm7411_vm7, %v4139_v47, 4294967295  ;;  %vm7414_vm7 = vcmp.gt.f32.partialorder %v3977_v40, 0.0  ;;  %v1025_v40 = vperm.slane %v4487_v62, %v7408_v27 }
 0x2ad   :  { %1193 = vperm.xlu2 %3360, %v1104_v48   ;;  %v4513_v48 = vadd.s32 4294967280, %v7408_v27 }
 0x2af   :  { %v942_v36 = vperm.slane %v4325_v31, %v4513_v48  ;;  %v968_v11 = vperm.slane %v4379_v23, %v4513_v48  ;;  %v4543_v31 = vpop.permute.xlu2 %907 }
 0x2b0   :  { %v4496_v18 = vpop.permute.xlu1 %874  ;;  %v4498_v34 = vpop.permute.xlu0 %886 }
 0x2b1   :  { %7405 = vst [vmem:[#allocation82_spill] sm:$0xff] %v4498_v34  ;;  %v1110_v34 = vsel %vm7409_vm0, %v4124_v8, 4294967295  ;;  %vm7413_vm0 = vcmp.gt.f32.partialorder %v3972_v44, 0.0  ;;  %v989_v44 = vperm.slane %v4366_v9, %v4539_v3 }
 0x2b5   :  { %1202 = vperm.xlu2 %3360, %v1107_v52   ;;  %v936_v52 = vperm.slane %v4311_v38, %v7408_v27  ;;  %v966_v38 = vperm.slane %v4295_v4, %v4510_v55 }
 0x2b7   :  { %v940_v32 = vsel %vm939_vm2, %v938_v59, %v936_v52  ;;  %v967_v23 = vsel %vm939_vm2, %v966_v38, %v965_v13  ;;  %v954_v59 = vperm.slane %v4329_v61, %v4539_v3  ;;  %v970_v13 = vperm.slane %v4361_v43, %v4534_v7 }
 0x2b8   :  { %v4505_v14 = vpop.permute.xlu1 %883  ;;  %v4507_v25 = vpop.permute.xlu0 %895  ;;  %v944_v28 = vsel %vm7167_vm4, %v942_v36, %v940_v32  ;;  %v969_v45 = vsel %vm7167_vm4, %v968_v11, %v967_v23  ;;  %v4564_v32 = vadd.s32 4294967240, %v7408_v27  ;;  %v980_v61 = vperm.slane %v4415_v46, %v7408_v27 }
 0x2b9   :  { %7407 = vst [vmem:[#allocation84_spill] sm:$0xff] %v4505_v14  ;;  %v4527_v14 = vadd.s32 4294967264, %v7408_v27  ;;  %v1116_v11 = vsel %vm7412_vm5, %v4111_v26, 4294967295  ;;  %v981_v46 = vperm.slane %v4399_v12, %v4510_v55  ;;  %v985_v23 = vperm.slane %v4426_v60, %v4534_v7 }
 0x2ba   :  { %v1119_v12 = vsel %vm7413_vm0, %v4118_v35, 4294967295  ;;  %v978_v60 = vperm.slane %v4327_v2, %v4564_v32  ;;  %v1010_v2 = vperm.slane %v4455_v5, %v7408_v27  ;;  %v1011_v5 = vperm.slane %v4439_v10, %v4510_v55 }
 0x2bb   :  { %v950_v4 = vperm.slane %v4343_v1, %v4527_v14  ;;  %v971_v1 = vsel %vm7165_vm8, %v970_v13, %v969_v45  ;;  %v982_v38 = vsel %vm939_vm2, %v981_v46, %v980_v61  ;;  %v4606_v13 = vpop.permute.xlu2 %916  ;;  %v1013_v61 = vperm.slane %v4469_v20, %v4513_v48 }
 0x2bc   :  { %v1002_v62 = vperm.slane %v4453_v41, %v4527_v14  ;;  %v993_v10 = vperm.slane %v4428_v6, %v4564_v32  ;;  %v991_v46 = vperm.slane %v4435_v56, %v4561_v33  ;;  %v1017_v56 = vperm.slane %v4451_v19, %v4527_v14 }
 0x2bd   :  { %1211 = vperm.xlu2 %3360, %v1110_v34   ;;  %vm7426_vm5 = vcmask 1041409   ;;  %vm7427_vm0 = vcmask 1042434  }
 0x2c0   :  { %v4531_v34 = vpop.permute.xlu1 %892  ;;  %v4541_v8 = vpop.permute.xlu0 %904 }
 0x2c1   :  { %7410 = vst [vmem:[#allocation17_spill] sm:$0xff] %v4541_v8  ;;  %v946_v8 = vperm.slane %v4267_v49, %v4534_v7  ;;  %v974_v49 = vperm.slane %v4397_v53, %v4539_v3  ;;  %v962_v53 = vperm.slane %v4363_v21, %v4564_v32 }
 0x2c3   :  { %v948_v36 = vsel %vm7165_vm8, %v946_v8, %v944_v28  ;;  %v996_v28 = vperm.slane %v4444_v30, %v4510_v55  ;;  %v995_v30 = vperm.slane %v4389_v51, %v7408_v27  ;;  %v926_v19 = vpop.permute.xlu2 %925 }
 0x2c4   :  { %v952_v43 = vsel %vm7166_vm10, %v950_v4, %v948_v36 }
 0x2c5   :  { %1220 = vperm.xlu2 %3360, %v1113_v15   ;;  %v972_v15 = vperm.slane %v4309_v24, %v4527_v14  ;;  %v956_v8 = vsel %vm955_vm13, %v954_v59, %v952_v43  ;;  %v958_v24 = vperm.slane %v4281_v50, %v4561_v33  ;;  %v983_v50 = vperm.slane %v4347_v42, %v4513_v48 }
 0x2c6   :  { %v976_v59 = vperm.slane %v4381_v39, %v4561_v33  ;;  %v4618_v42 = vsel %vm7414_vm7, %v4136_v29, 4294967295  ;;  %v987_v43 = vperm.slane %v4417_v16, %v4527_v14  ;;  %vm7428_vm7 = vcmask 1043459  }
 0x2c7   :  { %v973_v45 = vsel %vm7166_vm10, %v972_v15, %v971_v1  ;;  %v960_v4 = vsel %vm959_vm6, %v958_v24, %v956_v8  ;;  %v984_v39 = vsel %vm7167_vm4, %v983_v50, %v982_v38  ;;  %v997_v1 = vsel %vm939_vm2, %v996_v28, %v995_v30 }
 0x2c8   :  { %v4575_v52 = vpop.permute.xlu1 %901  ;;  %v975_v37 = vsel %vm955_vm13, %v974_v49, %v973_v45  ;;  %v4594_v21 = vpop.permute.xlu0 %913  ;;  %v4613_v36 = vsel %vm7231_vm9, %v962_v53, %v960_v4  ;;  %v986_v9 = vsel %vm7165_vm8, %v985_v23, %v984_v39  ;;  %v998_v49 = vperm.slane %v4437_v58, %v4513_v48 }
 0x2c9   :  { %v977_v51 = vsel %vm959_vm6, %v976_v59, %v975_v37  ;;  %v1000_v15 = vperm.slane %v4413_v57, %v4534_v7  ;;  %v1026_v57 = vperm.slane %v4480_v22, %v4510_v55  ;;  %v988_v16 = vsel %vm7166_vm10, %v987_v43, %v986_v9 }
 0x2ca   :  { %v4643_v58 = vsel %vm7231_vm9, %v978_v60, %v977_v51  ;;  %v999_v20 = vsel %vm7167_vm4, %v998_v49, %v997_v1  ;;  %v1040_v53 = vperm.slane %v4494_v17, %v7408_v27  ;;  %v1030_v22 = vperm.slane %v4496_v18, %v4534_v7  ;;  %v7416_v51 = vld [vmem:[#allocation83_spill] sm:$0xff]  ;;  %v7417_v1 = vld [vmem:[#allocation81_spill] sm:$0xff]  ;;  %v7418_v49 = vld [vmem:[#allocation80_spill] sm:$0xff] }
 0x2cb   :  { %v1027_v41 = vsel %vm939_vm2, %v1026_v57, %v1025_v40  ;;  %v1028_v45 = vperm.slane %v4473_v63, %v4513_v48  ;;  %v1001_v6 = vsel %vm7165_vm8, %v1000_v15, %v999_v20  ;;  %v1015_v28 = vperm.slane %v4464_v54, %v4534_v7  ;;  %v7415_v54 = vld [vmem:[#allocation79_spill] sm:$0xff] }
 0x2cc   :  { %v990_v37 = vsel %vm955_vm13, %v989_v44, %v988_v16  ;;  %v1003_v38 = vsel %vm7166_vm10, %v1002_v62, %v1001_v6  ;;  %v1043_v18 = vperm.slane %v4507_v25, %v4513_v48  ;;  %v1004_v63 = vperm.slane %v4446_v0, %v4539_v3  ;;  %v7420_v62 = vld [vmem:[#allocation77_spill] sm:$0xff]  ;;  %v7421_v16 = vld [vmem:[#allocation78_spill] sm:$0xff] }
 0x2cd   :  { %1229 = vperm.xlu2 %3360, %v1116_v11   ;;  %v1041_v11 = vperm.slane %v4531_v34, %v4510_v55  ;;  %v1012_v34 = vsel %vm939_vm2, %v1011_v5, %v1010_v2  ;;  %v1019_v4 = vperm.slane %v7415_v54, %v4539_v3  ;;  %v1029_v30 = vsel %vm7167_vm4, %v1028_v45, %v1027_v41  ;;  %v7419_v5 = vld [vmem:[#allocation84_spill] sm:$0xff] }
 0x2ce   :  { %v1014_v24 = vsel %vm7167_vm4, %v1013_v61, %v1012_v34  ;;  %v1031_v59 = vsel %vm7165_vm8, %v1030_v22, %v1029_v30  ;;  %v1047_v25 = vperm.slane %v4575_v52, %v4527_v14  ;;  %v992_v0 = vsel %vm959_vm6, %v991_v46, %v990_v37  ;;  %v7422_v46 = vld [vmem:[#allocation76_spill] sm:$0xff]  ;;  %v7423_v22 = vld [vmem:[#allocation17_spill] sm:$0xff]  ;;  %v7425_v30 = vld [vmem:[#allocation82_spill] sm:$0xff] }
 0x2cf   :  { %v1042_v17 = vsel %vm939_vm2, %v1041_v11, %v1040_v53  ;;  %v1016_v50 = vsel %vm7165_vm8, %v1015_v28, %v1014_v24  ;;  %v1005_v44 = vsel %vm955_vm13, %v1004_v63, %v1003_v38  ;;  %v1045_v39 = vperm.slane %v7416_v51, %v4534_v7  ;;  %v7424_v28 = vld [vmem:[#allocation15_spill] sm:$0xff] }
 0x2d0   :  { %v4640_v8 = vpop.permute.xlu1 %910  ;;  %v923_v23 = vpop.permute.xlu0 %922  ;;  %v1044_v60 = vsel %vm7167_vm4, %v1043_v18, %v1042_v17  ;;  %v1032_v2 = vperm.slane %v7417_v1, %v4527_v14  ;;  %v1034_v61 = vperm.slane %v7418_v49, %v4539_v3  ;;  %v1018_v40 = vsel %vm7166_vm10, %v1017_v56, %v1016_v50 }
 0x2d1   :  { %v1056_v52 = vperm.slane %v4606_v13, %v4510_v55  ;;  %v1020_v15 = vsel %vm955_vm13, %v1019_v4, %v1018_v40  ;;  %v1036_v11 = vperm.slane %v7419_v5, %v4561_v33  ;;  %v1046_v20 = vsel %vm7165_vm8, %v1045_v39, %v1044_v60  ;;  %v7431_v40 = vld [vmem:[#allocation29_spill] sm:$0xff] }
 0x2d2   :  { %v1033_v43 = vsel %vm7166_vm10, %v1032_v2, %v1031_v59  ;;  %v1008_v57 = vperm.slane %v7420_v62, %v4564_v32  ;;  %v1021_v34 = vperm.slane %v7421_v16, %v4561_v33  ;;  %v1048_v53 = vsel %vm7166_vm10, %v1047_v25, %v1046_v20  ;;  %v7437_v16 = vld [vmem:[#allocation72_spill] sm:$0xff] }
 0x2d3   :  { %v1006_v24 = vperm.slane %v7422_v46, %v4561_v33  ;;  %v994_v41 = vsel %vm7231_vm9, %v993_v10, %v992_v0  ;;  %v1049_v45 = vperm.slane %v7423_v22, %v4539_v3  ;;  %v1023_v17 = vperm.slane %v7424_v28, %v4564_v32  ;;  %v7441_v46 = vld [vmem:[#allocation34_spill] sm:$0xff]  ;;  %v4832_v22 = vld [vmem:[#allocation6 + $0x18] sm:$0xff] }
 0x2d4   :  { %v1022_v56 = vsel %vm959_vm6, %v1021_v34, %v1020_v15  ;;  %v1035_v37 = vsel %vm955_vm13, %v1034_v61, %v1033_v43  ;;  %v1060_v38 = vperm.slane %v923_v23, %v4534_v7  ;;  %v1053_v50 = vperm.slane %v4640_v8, %v4564_v32  ;;  %v935_v8 = vpop.permute.xlu2 %934  ;;  %v7430_v61 = vld [vmem:[#allocation65_spill] sm:$0xff]  ;;  %v7438_v34 = vld [vmem:[#allocation32_spill] sm:$0xff]  ;;  %7486 = vst [vmem:[#allocation81_spill] sm:$0xff] %v4832_v22 }
 0x2d5   :  { %1238 = vperm.xlu2 %3360, %v1119_v12   ;;  %v1055_v12 = vperm.slane %v4594_v21, %v7408_v27  ;;  %v1007_v18 = vsel %vm959_vm6, %v1006_v24, %v1005_v44  ;;  %v1037_v10 = vsel %vm959_vm6, %v1036_v11, %v1035_v37  ;;  %v1050_v63 = vsel %vm955_vm13, %v1049_v45, %v1048_v53  ;;  %v7449_v37 = vld [vmem:[#allocation43_spill] sm:$0xff] }
 0x2d6   :  { %v1009_v54 = vsel %vm7231_vm9, %v1008_v57, %v1007_v18  ;;  %v1051_v4 = vperm.slane %v4543_v31, %v4561_v33  ;;  %v1038_v59 = vperm.slane %v7425_v30, %v4564_v32  ;;  %v1070_v60 = vsel %vm7426_vm5, %v4643_v58, %v4613_v36  ;;  %v7451_v18 = vld [vmem:[#allocation18_spill] sm:$0xff]  ;;  %v7457_v30 = vld [vmem:[#allocation48_spill] sm:$0xff] }
 0x2d7   :  { %v1057_v13 = vsel %vm939_vm2, %v1056_v52, %v1055_v12  ;;  %v1024_v25 = vsel %vm7231_vm9, %v1023_v17, %v1022_v56  ;;  %v1062_v12 = vperm.slane %v926_v19, %v4527_v14  ;;  %v1071_v44 = vsel %vm7427_vm0, %v994_v41, %v1070_v60  ;;  %v7443_v41 = vld [vmem:[#allocation71_spill] sm:$0xff]  ;;  %v7447_v17 = vld [vmem:[#allocation30_spill] sm:$0xff] }
 0x2d8   :  { %v920_v9 = vpop.permute.xlu1 %919  ;;  %v1039_v31 = vsel %vm7231_vm9, %v1038_v59, %v1037_v10  ;;  %v1052_v51 = vsel %vm959_vm6, %v1051_v4, %v1050_v63  ;;  %v1072_v1 = vsel %vm7428_vm7, %v1009_v54, %v1071_v44  ;;  %v1068_v19 = vperm.slane %v935_v8, %v4564_v32  ;;  %v7453_v63 = vld [vmem:[#allocation46_spill] sm:$0xff]  ;;  %v7455_v54 = vld [vmem:[#allocation19_spill] sm:$0xff] }
 0x2d9   :  { %v1058_v21 = vperm.slane %v920_v9, %v4513_v48  ;;  %v1054_v2 = vsel %vm7231_vm9, %v1053_v50, %v1052_v51  ;;  %vm7429_vm5 = vcmask 1044484   ;;  %vm7432_vm0 = vcmp.gt.f32.partialorder %v7431_v40, 0.0  ;;  %v7461_v60 = vld [vmem:[#allocation51_spill] sm:$0xff]  ;;  %v7476_v40 = vld [vmem:[#allocation28_spill] sm:$0xff] }
 0x2da   :  { %v1073_v49 = vsel %vm7429_vm5, %v1024_v25, %v1072_v1  ;;  %v1125_v52 = vsel %vm7432_vm0, %v7430_v61, 4294967295  ;;  %vm7434_vm7 = vcmask 1046534   ;;  %vm7439_vm5 = vcmp.gt.f32.partialorder %v7438_v34, 0.0 }
 0x2db   :  { %v1059_v6 = vsel %vm7167_vm4, %v1058_v21, %v1057_v13  ;;  %vm7436_vm4 = vcmask 523264   ;;  %v1128_v53 = vsel %vm7439_vm5, %v7437_v16, 4294967295  ;;  %v7440_v13 = vld [vmem:[#allocation75_spill] sm:$0xff]  ;;  %v1134_v45 = vsel %vm413_vm3, %v7443_v41, 4294967295 }
 0x2dc   :  { %v1061_v23 = vsel %vm7165_vm8, %v1060_v38, %v1059_v6  ;;  %vm7433_vm8 = vcmask 1045509   ;;  %v7445_v6 = vld [vmem:[#allocation40_spill] sm:$0xff]  ;;  %vm7450_vm0 = vcmp.gt.f32.partialorder %v7449_v37, 0.0  ;;  %vm7454_vm3 = vcmp.gt.f32.partialorder %v7453_v63, 0.0 }
 0x2dd   :  { %1247 = vperm.xlu2 %3360, %v4618_v42   ;;  %v932_v42 = vpop.permute.xlu0 %931  ;;  %v1063_v58 = vsel %vm7166_vm10, %v1062_v12, %v1061_v23  ;;  %v1074_v15 = vsel %vm7433_vm8, %v1039_v31, %v1073_v49  ;;  %vm7435_vm10 = vcmask 1047559   ;;  %vm7442_vm8 = vcmp.gt.f32.partialorder %v7441_v46, 0.0  ;;  %v7459_v23 = vld [vmem:[#allocation22_spill] sm:$0xff]  ;;  %v7463_v12 = vld [vmem:[#allocation23_spill] sm:$0xff]  ;;  %v7467_v31 = vld [vmem:[#allocation24_spill] sm:$0xff] }
 0x2de   :  { %v1066_v36 = vperm.slane %v932_v42, %v4561_v33  ;;  %v1075_v5 = vsel %vm7434_vm7, %v1054_v2, %v1074_v15  ;;  %v1131_v24 = vsel %vm7442_vm8, %v7440_v13, 4294967295  ;;  %v1140_v38 = vsel %vm7450_vm0, %v4111_v26, 4294967295  ;;  %v7470_v2 = vld [vmem:[#allocation25_spill] sm:$0xff]  ;;  %v7489_v37 = vld [vmem:[#allocation36_spill] sm:$0xff] }
 0x2df   :  { %vm7452_vm7 = vcmp.gt.f32.partialorder %v7451_v18, 0.0  ;;  %v1143_v50 = vsel %vm7454_vm3, %v4118_v35, 4294967295  ;;  %vm7456_vm5 = vcmp.gt.f32.partialorder %v7455_v54, 0.0  ;;  %vm7458_vm8 = vcmp.gt.f32.partialorder %v7457_v30, 0.0  ;;  %v7484_v46 = vld [vmem:[#allocation33_spill] sm:$0xff]  ;;  %v4848_v18 = vld [vmem:[#allocation6 + $0x30] sm:$0xff] }
 0x2e0   :  { %v929_v0 = vpop.permute.xlu1 %928  ;;  %v1102_v10 = vsel %vm7452_vm7, %v7443_v41, 4294967295  ;;  %v1105_v4 = vsel %vm7456_vm5, %v4139_v47, 4294967295  ;;  %v1146_v59 = vsel %vm7458_vm8, %v4136_v29, 4294967295  ;;  %vm7464_vm0 = vcmp.gt.f32.partialorder %v7463_v12, 0.0  ;;  %7491 = vst [vmem:[#allocation84_spill] sm:$0xff] %v4848_v18 }
 0x2e1   :  { %v1064_v39 = vperm.slane %v929_v0, %v4539_v3  ;;  %v1111_v8 = vsel %vm7464_vm0, %v4118_v35, 4294967295  ;;  %v7465_v0 = vld [vmem:[#allocation54_spill] sm:$0xff]  ;;  %vm7468_vm3 = vcmp.gt.f32.partialorder %v7467_v31, 0.0  ;;  %v1155_v1 = vsel %vm434_vm15, %v7440_v13, 4294967295 }
 0x2e2   :  { %vm7466_vm7 = vcmp.gt.f32.partialorder %v7465_v0, 0.0  ;;  %v1114_v51 = vsel %vm7468_vm3, %v4136_v29, 4294967295  ;;  %vm7471_vm5 = vcmp.gt.f32.partialorder %v7470_v2, 0.0  ;;  %vm7485_vm3 = vcmp.gt.f32.partialorder %v7484_v46, 0.0 }
 0x2e3   :  { %v1065_v9 = vsel %vm955_vm13, %v1064_v39, %v1063_v58  ;;  %v1152_v44 = vsel %vm7466_vm7, %v7437_v16, 4294967295  ;;  %v7472_v58 = vld [vmem:[#allocation26_spill] sm:$0xff]  ;;  %vm7482_vm7 = vcmask 523264   ;;  %v7506_v39 = vld [vmem:[#allocation45_spill] sm:$0xff] }
 0x2e4   :  { %v1067_v21 = vsel %vm959_vm6, %v1066_v36, %v1065_v9  ;;  %v1117_v36 = vsel %vm7471_vm5, %v7430_v61, 4294967295  ;;  %vm7473_vm8 = vcmp.gt.f32.partialorder %v7472_v58, 0.0  ;;  %v7474_v9 = vld [vmem:[#allocation27_spill] sm:$0xff]  ;;  %vm1510_vm5 = vcmp.eq.s32.totalorder %v4832_v22, 9 }
 0x2e5   :  { %1256 = vperm.xlu2 %3360, %v1125_v52   ;;  %v1069_v43 = vsel %vm7231_vm9, %v1068_v19, %v1067_v21  ;;  %v1120_v19 = vsel %vm7473_vm8, %v7437_v16, 4294967295  ;;  %v7478_v21 = vld [vmem:[#allocation31_spill] sm:$0xff] }
 0x2e6   :  { %v1076_v11 = vsel %vm7435_vm10, %v1069_v43, %v1075_v5  ;;  %vm7448_vm10 = vcmp.gt.f32.partialorder %v7447_v17, 0.0  ;;  %vm7479_vm15 = vcmp.gt.f32.partialorder %v7478_v21, 0.0  ;;  %v4820_v43 = vld [vmem:[#allocation6] sm:$0xff]  ;;  %v4823_v5 = vpop.permute.xlu2 %1157  ;;  %v4910_v21 = vld [vmem:[#allocation6 + $0x10] sm:$0xff] }
 0x2e7   :  { %v1077_v20 = vsel %vm7436_vm4, %v1076_v11, 2147483647  ;;  %vm7446_vm4 = vcmp.gt.f32.partialorder %v7445_v6, 0.0  ;;  %v1097_v56 = vsel %vm7448_vm10, %v4139_v47, 4294967295  ;;  %vm7462_vm10 = vcmp.gt.f32.partialorder %v7461_v60, 0.0  ;;  %7480 = vst [vmem:[#allocation79_spill] sm:$0xff] %v4820_v43 }
 0x2e8   :  { %v1079_v62 = vshra.s32 %v1077_v20, 16  ;;  %v1137_v28 = vsel %vm7446_vm4, %v4139_v47, 4294967295  ;;  %vm7460_vm4 = vcmp.gt.f32.partialorder %v7459_v23, 0.0  ;;  %v1149_v25 = vsel %vm7462_vm10, %v7430_v61, 4294967295  ;;  %7512 = vst [vmem:[#allocation29_spill] sm:$0xff] %v4910_v21 }
 0x2e9   :  { %v1108_v42 = vsel %vm7460_vm4, %v4111_v26, 4294967295  ;;  %vm7475_vm4 = vcmp.gt.f32.partialorder %v7474_v9, 0.0  ;;  %vm7477_vm10 = vcmp.gt.f32.partialorder %v7476_v40, 0.0  ;;  %v1129_v15 = vsel %vm7479_vm15, %v4139_v47, 4294967295 }
 0x2ea   :  { %v1081_v57 = vcvt.s32.f32 %v1079_v62  ;;  %v1123_v49 = vsel %vm7475_vm4, %v7440_v13, 4294967295  ;;  %v1126_v52 = vsel %vm7477_vm10, %v7443_v41, 4294967295  ;;  %vm1507_vm0 = vcmp.eq.s32.totalorder %v4820_v43, 9  ;;  %vm7487_vm4 = vmmov %vm7482_vm7 }
 0x2eb   :  { %v7481_v11 = vmov 0.0   ;;  %vm7490_vm10 = vcmp.gt.f32.partialorder %v7489_v37, 0.0  ;;  %vm1513_vm15 = vcmp.eq.s32.totalorder %v4848_v18, 9 }
 0x2ec   :  { %1082 = vmin.xlane.f32.xlu1 %v1081_v57  ;;  %v1571_v62 = vsel %vm1507_vm0, 1.0, %v7481_v11  ;;  %vm7492_vm0 = vmmov %vm7487_vm4 }
 0x2ed   :  { %1265 = vperm.xlu2 %3360, %v1128_v53   ;;  %v4827_v34 = vsel %vm7482_vm7, %v1571_v62, -inf  ;;  %v1078_v53 = vand.u32 65535, %v1077_v20  ;;  %v1574_v20 = vsel %vm1510_vm5, 1.0, %v7481_v11  ;;  %vm7497_vm5 = vmmov %vm7492_vm0 }
 0x2ee   :  { %7483 = vst [vmem:[#allocation83_spill] sm:$0xff] %v4827_v34 }
 0x2ef   :  { %v1080_v6 = vcvt.s32.f32 %v1078_v53 }
 0x2f5   :  { %1274 = vperm.xlu2 %3360, %v1131_v24   ;;  %v1132_v24 = vsel %vm7485_vm3, %v4111_v26, 4294967295 }
 0x2fd   :  { %1283 = vperm.xlu2 %3360, %v1134_v45  }
 0x305   :  { %1292 = vperm.xlu2 %3360, %v1137_v28   ;;  %1172 = vperm.xlu1 %3361, %v1097_v56   ;;  %v4838_v28 = vpop.permute.xlu2 %1160  ;;  %v4843_v56 = vsel %vm7487_vm4, %v1574_v20, -inf }
 0x306   :  { %7488 = vst [vmem:[#allocation80_spill] sm:$0xff] %v4843_v56 }
 0x30d   :  { %1301 = vperm.xlu2 %3360, %v1140_v38   ;;  %1187 = vperm.xlu1 %3361, %v1102_v10   ;;  %v1135_v38 = vsel %vm7490_vm10, %v4118_v35, 4294967295  ;;  %v4853_v10 = vpop.permute.xlu2 %1163 }
 0x315   :  { %1310 = vperm.xlu2 %3360, %v1143_v50   ;;  %1196 = vperm.xlu1 %3361, %v1105_v4   ;;  %v7494_v50 = vld [vmem:[#allocation39_spill] sm:$0xff]  ;;  %v4861_v4 = vld [vmem:[#allocation6 + $0x8] sm:$0xff]  ;;  %v4869_v23 = vpop.permute.xlu2 %1166 }
 0x316   :  { %vm7495_vm7 = vcmp.gt.f32.partialorder %v7494_v50, 0.0  ;;  %7496 = vst [vmem:[#allocation78_spill] sm:$0xff] %v4861_v4  ;;  %vm1516_vm3 = vcmp.eq.s32.totalorder %v4861_v4, 10 }
 0x317   :  { %v1138_v54 = vsel %vm7495_vm7, %v4136_v29, 4294967295  ;;  %v1580_v30 = vsel %vm1516_vm3, 1.0, %v7481_v11  ;;  %vm7504_vm7 = vmmov %vm7497_vm5  ;;  %vm7507_vm3 = vcmp.gt.f32.partialorder %v7506_v39, 0.0  ;;  %v1150_v39 = vsel %vm429_vm1, %v7443_v41, 4294967295 }
 0x318   :  { %vm1539_vm1 = vcmp.eq.s32.totalorder %v4820_v43, 13 }
 0x31d   :  { %1319 = vperm.xlu2 %3360, %v1146_v59   ;;  %1205 = vperm.xlu1 %3361, %v1108_v42   ;;  %v4867_v59 = vsel %vm7497_vm5, %v1580_v30, -inf  ;;  %v7499_v42 = vld [vmem:[#allocation42_spill] sm:$0xff]  ;;  %v4901_v9 = vpop.permute.xlu2 %1169 }
 0x31e   :  { %7498 = vst [vmem:[#allocation76_spill] sm:$0xff] %v4867_v59 }
 0x325   :  { %1328 = vperm.xlu2 %3360, %v1149_v25   ;;  %1214 = vperm.xlu1 %3361, %v1111_v8   ;;  %v7501_v25 = vld [vmem:[#allocation16_spill] sm:$0xff]  ;;  %v4877_v8 = vld [vmem:[#allocation6 + $0x20] sm:$0xff]  ;;  %v4940_v30 = vpop.permute.xlu2 %1175 }
 0x326   :  { %vm7502_vm4 = vcmp.gt.f32.partialorder %v7501_v25, 0.0  ;;  %7503 = vst [vmem:[#allocation17_spill] sm:$0xff] %v4877_v8  ;;  %vm1519_vm10 = vcmp.eq.s32.totalorder %v4877_v8, 10  ;;  %v4944_v25 = vld [vmem:[#allocation6 + $0x28] sm:$0xff] }
 0x327   :  { %v1099_v12 = vsel %vm7502_vm4, %v7440_v13, 4294967295  ;;  %v1583_v0 = vsel %vm1519_vm10, 1.0, %v7481_v11  ;;  %vm7511_vm10 = vmmov %vm7497_vm5  ;;  %7523 = vst [vmem:[#allocation40_spill] sm:$0xff] %v4944_v25 }
 0x328   :  { %v4886_v31 = vsel %vm7504_vm7, %v1583_v0, -inf  ;;  %vm1535_vm7 = vcmp.eq.s32.totalorder %v4877_v8, 12 }
 0x329   :  { %7505 = vst [vmem:[#allocation15_spill] sm:$0xff] %v4886_v31 }
 0x32d   :  { %1337 = vperm.xlu2 %3360, %v1152_v44   ;;  %1223 = vperm.xlu1 %3361, %v1114_v51   ;;  %v4974_v20 = vpop.permute.xlu2 %1181 }
 0x335   :  { %1346 = vperm.xlu2 %3360, %v1155_v1   ;;  %1232 = vperm.xlu1 %3361, %v1117_v36   ;;  %v1144_v1 = vsel %vm7507_vm3, %v7437_v16, 4294967295  ;;  %v7509_v36 = vld [vmem:[#allocation35_spill] sm:$0xff]  ;;  %vm7513_vm3 = vmmov %vm7497_vm5 }
 0x33d   :  { %1241 = vperm.xlu1 %3361, %v1120_v19   ;;  %v4898_v19 = vld [vmem:[#allocation6 + $0x38] sm:$0xff] }
 0x33e   :  { %vm1522_vm4 = vcmp.eq.s32.totalorder %v4898_v19, 10 }
 0x345   :  { %1250 = vperm.xlu1 %3361, %v1123_v49  }
 0x34d   :  { %1259 = vperm.xlu1 %3361, %v1126_v52   ;;  %v1586_v52 = vsel %vm1522_vm4, 1.0, %v7481_v11 }
 0x355   :  { %1268 = vperm.xlu1 %3361, %v1129_v15  }
 0x35d   :  { %1277 = vperm.xlu1 %3361, %v1132_v24   ;;  %v1599_v24 = vsel %vm1535_vm7, 1.0, %v7481_v11  ;;  %vm7524_vm7 = vmmov %vm7513_vm3 }
 0x35e   :  { %1636 = vmax.xlane.f32.xlu2 %v4827_v34 }
 0x35f   :  { %v4836_v45 = vpop.xlane.xlu1 %1082 }
 0x360   :  { %vm1084_vm8 = vcmp.eq.f32.partialorder %v1081_v57, %v4836_v45  ;;  %v1577_v57 = vsel %vm1513_vm15, 1.0, %v7481_v11  ;;  %vm1531_vm15 = vcmp.eq.s32.totalorder %v4820_v43, 12 }
 0x361   :  { %v1085_v17 = vsel %vm1084_vm8, %v1080_v6, inf  ;;  %v4856_v63 = vsel %vm7492_vm0, %v1577_v57, -inf  ;;  %vm7500_vm8 = vcmp.gt.f32.partialorder %v7499_v42, 0.0  ;;  %vm1532_vm0 = vcmp.eq.s32.totalorder %v4861_v4, 12 }
 0x362   :  { %1086 = vmin.xlane.f32.xlu0 %v1085_v17  ;;  %7493 = vst [vmem:[#allocation77_spill] sm:$0xff] %v4856_v63  ;;  %v1141_v60 = vsel %vm7500_vm8, %v7430_v61, 4294967295  ;;  %v1596_v44 = vsel %vm1532_vm0, 1.0, %v7481_v11  ;;  %v1595_v51 = vsel %vm1531_vm15, 1.0, %v7481_v11  ;;  %vm7510_vm8 = vcmp.gt.f32.partialorder %v7509_v36, 0.0  ;;  %v7528_v36 = vld [vmem:[#allocation41_spill] sm:$0xff] }
 0x363   :  { %v4893_v2 = vsel %vm7497_vm5, %v1596_v44, -inf  ;;  %v1103_v58 = vsel %vm7510_vm8, %v4118_v35, 4294967295  ;;  %v4905_v49 = vsel %vm7511_vm10, %v1595_v51, -inf  ;;  %vm1533_vm15 = vcmp.eq.s32.totalorder %v4910_v21, 12  ;;  %vm7515_vm5 = vmmov %vm7513_vm3  ;;  %v7539_v51 = vld [vmem:[#allocation44_spill] sm:$0xff] }
 0x364   :  { %7508 = vst [vmem:[#allocation82_spill] sm:$0xff] %v4893_v2  ;;  %v1930_v40 = vmax.f32 %v4905_v49, %v4893_v2  ;;  %vm1534_vm0 = vcmp.eq.s32.totalorder %v4832_v22, 12  ;;  %v1597_v15 = vsel %vm1533_vm15, 1.0, %v7481_v11  ;;  %v4921_v46 = vsel %vm7515_vm5, %v1586_v52, -inf  ;;  %vm7518_vm8 = vmmov %vm7513_vm3 }
 0x365   :  { %1286 = vperm.xlu1 %3361, %v1135_v38   ;;  %v1598_v62 = vsel %vm1534_vm0, 1.0, %v7481_v11  ;;  %v4918_v53 = vsel %vm7513_vm3, %v1597_v15, -inf  ;;  %7516 = vst [vmem:[#allocation34_spill] sm:$0xff] %v4921_v46  ;;  %v1147_v17 = vsel %vm426_vm14, %v7440_v13, 4294967295  ;;  %v7519_v38 = vld [vmem:[#allocation38_spill] sm:$0xff]  ;;  %vm1525_vm10 = vcmp.eq.s32.totalorder %v4910_v21, 11  ;;  %vm7521_vm15 = vmmov %vm7513_vm3 }
 0x366   :  { %1645 = vmax.xlane.f32.xlu2 %v4843_v56  ;;  %7514 = vst [vmem:[#allocation32_spill] sm:$0xff] %v4918_v53  ;;  %v1931_v6 = vmax.f32 %v1930_v40, %v4918_v53  ;;  %v4929_v37 = vsel %vm7518_vm8, %v1598_v62, -inf  ;;  %vm7520_vm4 = vcmp.gt.f32.partialorder %v7519_v38, 0.0  ;;  %v1589_v42 = vsel %vm1525_vm10, 1.0, %v7481_v11 }
 0x367   :  { %v1106_v57 = vsel %vm7520_vm4, %v4136_v29, 4294967295  ;;  %vm1536_vm14 = vcmp.eq.s32.totalorder %v4944_v25, 12  ;;  %vm1537_vm0 = vcmp.eq.s32.totalorder %v4848_v18, 12  ;;  %vm7529_vm5 = vcmp.gt.f32.partialorder %v7528_v36, 0.0  ;;  %vm7530_vm4 = vmmov %vm7513_vm3 }
 0x368   :  { %v1932_v50 = vmax.f32 %v1931_v6, %v4929_v37  ;;  %v1600_v0 = vsel %vm1536_vm14, 1.0, %v7481_v11  ;;  %v1601_v44 = vsel %vm1537_vm0, 1.0, %v7481_v11  ;;  %vm1528_vm8 = vcmp.eq.s32.totalorder %v4944_v25, 11  ;;  %vm7531_vm14 = vmmov %vm7513_vm3 }
 0x369   :  { %v1725_v52 = vsel %vm7530_vm4, %v1601_v44, -inf  ;;  %v1592_v62 = vsel %vm1528_vm8, 1.0, %v7481_v11  ;;  %vm1540_vm10 = vcmp.eq.s32.totalorder %v4861_v4, 13  ;;  %vm7533_vm0 = vmmov %vm7513_vm3  ;;  %vm1542_vm8 = vcmp.eq.s32.totalorder %v4832_v22, 13 }
 0x36a   :  { %v1604_v6 = vsel %vm1540_vm10, 1.0, %v7481_v11  ;;  %vm1543_vm4 = vcmp.eq.s32.totalorder %v4877_v8, 13  ;;  %vm7543_vm10 = vmmov %vm7533_vm0 }
 0x36d   :  { %1295 = vperm.xlu1 %3361, %v1138_v54   ;;  %v4938_v54 = vsel %vm7521_vm15, %v1599_v24, -inf  ;;  %vm1541_vm15 = vcmp.eq.s32.totalorder %v4910_v21, 13  ;;  %v1603_v24 = vsel %vm1539_vm1, 1.0, %v7481_v11  ;;  %vm1544_vm1 = vcmp.eq.s32.totalorder %v4944_v25, 13 }
 0x36e   :  { %1654 = vmax.xlane.f32.xlu2 %v4856_v63  ;;  %7522 = vst [vmem:[#allocation37_spill] sm:$0xff] %v4938_v54  ;;  %v4978_v38 = vsel %vm7531_vm14, %v1603_v24, -inf }
 0x36f   :  { %7532 = vst [vmem:[#allocation18_spill] sm:$0xff] %v4978_v38 }
 0x375   :  { %1304 = vperm.xlu1 %3361, %v1141_v60   ;;  %v1933_v60 = vmax.f32 %v1932_v50, %v4938_v54 }
 0x376   :  { %1663 = vmax.xlane.f32.xlu2 %v4867_v59  ;;  %1178 = vperm.xlu0 %3359, %v1099_v12   ;;  %v4949_v12 = vsel %vm7524_vm7, %v1589_v42, -inf  ;;  %vm7534_vm7 = vmmov %vm7533_vm0 }
 0x377   :  { %7525 = vst [vmem:[#allocation30_spill] sm:$0xff] %v4949_v12  ;;  %v4982_v50 = vsel %vm7534_vm7, %v1592_v62, -inf  ;;  %v1608_v62 = vsel %vm1544_vm1, 1.0, %v7481_v11  ;;  %vm1546_vm7 = vcmp.eq.s32.totalorder %v4898_v19, 13  ;;  %vm1548_vm1 = vcmp.eq.s32.totalorder %v4861_v4, 14 }
 0x378   :  { %7535 = vst [vmem:[#allocation46_spill] sm:$0xff] %v4982_v50 }
 0x37d   :  { %1313 = vperm.xlu1 %3361, %v1144_v1   ;;  %v4957_v1 = vsel %vm7513_vm3, %v1600_v0, -inf  ;;  %v1153_v0 = vsel %vm432_vm12, %v4139_v47, 4294967295  ;;  %vm7537_vm3 = vmmov %vm7533_vm0 }
 0x37e   :  { %1672 = vmax.xlane.f32.xlu2 %v4886_v31  ;;  %1190 = vperm.xlu0 %3359, %v1103_v58   ;;  %7527 = vst [vmem:[#allocation43_spill] sm:$0xff] %v4957_v1  ;;  %v1109_v58 = vsel %vm7529_vm5, %v7430_v61, 4294967295  ;;  %v1934_v40 = vmax.f32 %v1933_v60, %v4957_v1  ;;  %vm7540_vm5 = vcmp.gt.f32.partialorder %v7539_v51, 0.0  ;;  %vm7541_vm12 = vmmov %vm7533_vm0 }
 0x380   :  { %v4966_v15 = vmax.f32 %v1934_v40, %v1725_v52  ;;  %v1607_v40 = vsel %vm1543_vm4, 1.0, %v7481_v11  ;;  %vm1547_vm4 = vcmp.eq.s32.totalorder %v4820_v43, 14 }
 0x385   :  { %1322 = vperm.xlu1 %3361, %v1147_v17   ;;  %v1605_v17 = vsel %vm1541_vm15, 1.0, %v7481_v11  ;;  %vm7544_vm15 = vmmov %vm7533_vm0 }
 0x386   :  { %1681 = vmax.xlane.f32.xlu2 %v4921_v46  ;;  %1199 = vperm.xlu0 %3359, %v1106_v57   ;;  %v1734_v57 = vsel %vm7533_vm0, %v1604_v6, -inf  ;;  %v4989_v44 = vsel %vm7537_vm3, %v1605_v17, -inf  ;;  %v5006_v17 = vpop.permute.xlu2 %1184  ;;  %v5010_v60 = vsel %vm7544_vm15, %v1608_v62, -inf  ;;  %vm1545_vm0 = vcmp.eq.s32.totalorder %v4848_v18, 13  ;;  %vm7555_vm15 = vmmov %vm7537_vm3 }
 0x387   :  { %v1943_v42 = vmax.f32 %v4978_v38, %v1734_v57  ;;  %7538 = vst [vmem:[#allocation19_spill] sm:$0xff] %v4989_v44 }
 0x388   :  { %7545 = vst [vmem:[#allocation22_spill] sm:$0xff] %v5010_v60 }
 0x389   :  { %v1944_v36 = vmax.f32 %v1943_v42, %v4989_v44  ;;  %v1743_v42 = vsel %vm7543_vm10, %v1607_v40, -inf  ;;  %v1610_v40 = vsel %vm1546_vm7, 1.0, %v7481_v11  ;;  %vm1549_vm10 = vcmp.eq.s32.totalorder %v4910_v21, 14 }
 0x38d   :  { %1331 = vperm.xlu1 %3361, %v1150_v39   ;;  %v1112_v39 = vsel %vm7540_vm5, %v7437_v16, 4294967295  ;;  %vm7549_vm5 = vmmov %vm7537_vm3 }
 0x38e   :  { %1690 = vmax.xlane.f32.xlu2 %v4949_v12  ;;  %1208 = vperm.xlu0 %3359, %v1109_v58   ;;  %v1606_v58 = vsel %vm1542_vm8, 1.0, %v7481_v11 }
 0x38f   :  { %v5003_v24 = vsel %vm7541_vm12, %v1606_v58, -inf }
 0x390   :  { %7542 = vst [vmem:[#allocation48_spill] sm:$0xff] %v5003_v24  ;;  %v1945_v6 = vmax.f32 %v1944_v36, %v5003_v24  ;;  %v1609_v36 = vsel %vm1545_vm0, 1.0, %v7481_v11  ;;  %v5031_v24 = vpop.permute.xlu2 %1193  ;;  %vm1550_vm0 = vcmp.eq.s32.totalorder %v4832_v22, 14 }
 0x391   :  { %v5022_v62 = vsel %vm7537_vm3, %v1609_v36, -inf  ;;  %v7553_v36 = vld [vmem:[#allocation55_spill] sm:$0xff]  ;;  %v1614_v38 = vsel %vm1550_vm0, 1.0, %v7481_v11  ;;  %vm7568_vm0 = vmmov %vm7537_vm3 }
 0x392   :  { %7548 = vst [vmem:[#allocation51_spill] sm:$0xff] %v5022_v62  ;;  %vm7554_vm12 = vcmp.gt.f32.partialorder %v7553_v36, 0.0  ;;  %v1613_v36 = vsel %vm1549_vm10, 1.0, %v7481_v11  ;;  %vm7565_vm10 = vmmov %vm7537_vm3 }
 0x395   :  { %1340 = vperm.xlu1 %3361, %v1153_v0   ;;  %v7546_v0 = vld [vmem:[#allocation49_spill] sm:$0xff] }
 0x396   :  { %1699 = vmax.xlane.f32.xlu2 %v4982_v50  ;;  %1217 = vperm.xlu0 %3359, %v1112_v39   ;;  %vm7547_vm14 = vcmp.gt.f32.partialorder %v7546_v0, 0.0  ;;  %v1946_v39 = vmax.f32 %v1945_v6, %v1743_v42  ;;  %v1752_v6 = vsel %vm7549_vm5, %v1610_v40, -inf  ;;  %v1611_v40 = vsel %vm1547_vm4, 1.0, %v7481_v11  ;;  %vm7561_vm5 = vmmov %vm7537_vm3 }
 0x397   :  { %v1115_v51 = vsel %vm7547_vm14, %v7440_v13, 4294967295  ;;  %vm7557_vm14 = vmmov %vm7537_vm3  ;;  %vm1551_vm4 = vcmp.eq.s32.totalorder %v4877_v8, 14 }
 0x398   :  { %v1947_v58 = vmax.f32 %v1946_v39, %v5010_v60 }
 0x39a   :  { %v1948_v0 = vmax.f32 %v1947_v58, %v5022_v62  ;;  %v1121_v58 = vsel %vm7554_vm12, %v4139_v47, 4294967295  ;;  %vm1555_vm12 = vcmp.eq.s32.totalorder %v4820_v43, 15 }
 0x39c   :  { %v5029_v39 = vmax.f32 %v1948_v0, %v1752_v6  ;;  %v5041_v0 = vpop.permute.xlu2 %1202 }
 0x39e   :  { %1708 = vmax.xlane.f32.xlu2 %v4905_v49  ;;  %1226 = vperm.xlu0 %3359, %v1115_v51   ;;  %v7550_v49 = vld [vmem:[#allocation52_spill] sm:$0xff]  ;;  %7552 = vst [vmem:[#allocation23_spill] sm:$0xff] %v5029_v39 }
 0x39f   :  { %vm7551_vm8 = vcmp.gt.f32.partialorder %v7550_v49, 0.0  ;;  %v1612_v49 = vsel %vm1548_vm1, 1.0, %v7481_v11 }
 0x3a0   :  { %v1118_v51 = vsel %vm7551_vm8, %v7443_v41, 4294967295  ;;  %vm1552_vm8 = vcmp.eq.s32.totalorder %v4944_v25, 14 }
 0x3a4   :  { %v5062_v53 = vpop.permute.xlu2 %1211 }
 0x3a6   :  { %1717 = vmax.xlane.f32.xlu2 %v4929_v37  ;;  %1235 = vperm.xlu0 %3359, %v1118_v51   ;;  %v5045_v37 = vsel %vm7555_vm15, %v1611_v40, -inf  ;;  %v5048_v51 = vsel %vm7557_vm14, %v1612_v49, -inf  ;;  %v1761_v40 = vsel %vm7537_vm3, %v1613_v36, -inf  ;;  %v5060_v49 = vsel %vm7561_vm5, %v1614_v38, -inf  ;;  %vm7567_vm14 = vmmov %vm7537_vm3 }
 0x3a7   :  { %7556 = vst [vmem:[#allocation54_spill] sm:$0xff] %v5045_v37  ;;  %v1956_v62 = vmax.f32 %v5045_v37, %v5048_v51  ;;  %v1616_v36 = vsel %vm1552_vm8, 1.0, %v7481_v11  ;;  %vm1556_vm15 = vcmp.eq.s32.totalorder %v4861_v4, 15  ;;  %vm1557_vm3 = vcmp.eq.s32.totalorder %v4910_v21, 15 }
 0x3a8   :  { %7558 = vst [vmem:[#allocation24_spill] sm:$0xff] %v5048_v51  ;;  %vm1558_vm5 = vcmp.eq.s32.totalorder %v4832_v22, 15  ;;  %vm1559_vm8 = vcmp.eq.s32.totalorder %v4877_v8, 15 }
 0x3a9   :  { %v1957_v1 = vmax.f32 %v1956_v62, %v1761_v40  ;;  %7562 = vst [vmem:[#allocation56_spill] sm:$0xff] %v5060_v49  ;;  %v1619_v62 = vsel %vm1555_vm12, 1.0, %v7481_v11  ;;  %vm7575_vm12 = vmmov %vm7568_vm0 }
 0x3ab   :  { %v1958_v51 = vmax.f32 %v1957_v1, %v5060_v49 }
 0x3ae   :  { %1726 = vmax.xlane.f32.xlu2 %v1725_v52  ;;  %1244 = vperm.xlu0 %3359, %v1121_v58   ;;  %v7559_v52 = vld [vmem:[#allocation57_spill] sm:$0xff] }
 0x3af   :  { %vm7560_vm7 = vcmp.gt.f32.partialorder %v7559_v52, 0.0  ;;  %v7563_v52 = vld [vmem:[#allocation58_spill] sm:$0xff] }
 0x3b0   :  { %v1124_v58 = vsel %vm7560_vm7, %v4111_v26, 4294967295  ;;  %vm7564_vm1 = vcmp.gt.f32.partialorder %v7563_v52, 0.0  ;;  %v5083_v52 = vsel %vm7567_vm14, %v1616_v36, -inf  ;;  %vm7570_vm7 = vmmov %vm7568_vm0  ;;  %v5100_v36 = vpop.permute.xlu2 %1220  ;;  %vm1561_vm14 = vcmp.eq.s32.totalorder %v4848_v18, 15 }
 0x3b1   :  { %v1127_v37 = vsel %vm7564_vm1, %v4118_v35, 4294967295  ;;  %vm7573_vm1 = vmmov %vm7568_vm0 }
 0x3b6   :  { %1735 = vmax.xlane.f32.xlu2 %v1734_v57  ;;  %1253 = vperm.xlu0 %3359, %v1124_v58   ;;  %v1615_v57 = vsel %vm1551_vm4, 1.0, %v7481_v11  ;;  %v1620_v58 = vsel %vm1556_vm15, 1.0, %v7481_v11  ;;  %vm1560_vm15 = vcmp.eq.s32.totalorder %v4944_v25, 15 }
 0x3b7   :  { %v5074_v38 = vsel %vm7565_vm10, %v1615_v57, -inf  ;;  %v5086_v49 = vsel %vm7568_vm0, %v1620_v58, -inf  ;;  %v5093_v57 = vsel %vm7570_vm7, %v1619_v62, -inf  ;;  %v1621_v58 = vsel %vm1557_vm3, 1.0, %v7481_v11  ;;  %v7571_v62 = vld [vmem:[#allocation59_spill] sm:$0xff]  ;;  %vm7576_vm10 = vmmov %vm7568_vm0 }
 0x3b8   :  { %7566 = vst [vmem:[#allocation25_spill] sm:$0xff] %v5074_v38  ;;  %v5078_v1 = vmax.f32 %v1958_v51, %v5074_v38  ;;  %v1969_v51 = vmax.f32 %v5093_v57, %v5086_v49  ;;  %v1622_v38 = vsel %vm1558_vm5, 1.0, %v7481_v11  ;;  %vm7572_vm4 = vcmp.gt.f32.partialorder %v7571_v62, 0.0  ;;  %vm7580_vm7 = vmmov %vm7573_vm1 }
 0x3b9   :  { %7569 = vst [vmem:[#allocation26_spill] sm:$0xff] %v5086_v49  ;;  %v1130_v60 = vsel %vm7572_vm4, %v4136_v29, 4294967295  ;;  %v5109_v49 = vsel %vm7573_vm1, %v1621_v58, -inf  ;;  %v5113_v54 = vsel %vm7575_vm12, %v1622_v38, -inf  ;;  %v7578_v38 = vld [vmem:[#allocation60_spill] sm:$0xff]  ;;  %vm7582_vm3 = vmmov %vm7573_vm1  ;;  %vm1563_vm5 = vcmp.eq.s32.totalorder %v4820_v43, 16 }
 0x3ba   :  { %7574 = vst [vmem:[#allocation27_spill] sm:$0xff] %v5109_v49  ;;  %v1970_v44 = vmax.f32 %v1969_v51, %v5109_v49  ;;  %vm7579_vm0 = vcmp.gt.f32.partialorder %v7578_v38, 0.0  ;;  %v1089_v49 = vcvt.f32.s32 %v4836_v45  ;;  %vm1564_vm4 = vcmp.eq.s32.totalorder %v4861_v4, 16  ;;  %vm7586_vm12 = vmmov %vm7582_vm3 }
 0x3bb   :  { %v1133_v51 = vsel %vm7579_vm0, %v7430_v61, 4294967295  ;;  %vm1565_vm1 = vcmp.eq.s32.totalorder %v4910_v21, 16  ;;  %v1627_v45 = vsel %vm1563_vm5, 1.0, %v7481_v11  ;;  %vm7591_vm0 = vcmask 7168  }
 0x3bc   :  { %v1971_v50 = vmax.f32 %v1970_v44, %v5113_v54  ;;  %v5132_v44 = vpop.permute.xlu2 %1229  ;;  %vm1568_vm5 = vcmp.eq.s32.totalorder %v4944_v25, 16 }
 0x3be   :  { %1744 = vmax.xlane.f32.xlu2 %v1743_v42  ;;  %1262 = vperm.xlu0 %3359, %v1127_v37   ;;  %v5088_v42 = vpop.permute.xlu1 %1172  ;;  %v1623_v37 = vsel %vm1559_vm8, 1.0, %v7481_v11 }
 0x3bf   :  { %v5116_v2 = vsel %vm7576_vm10, %v1623_v37, -inf  ;;  %vm7588_vm10 = vmmov %vm7582_vm3 }
 0x3c0   :  { %7577 = vst [vmem:[#allocation28_spill] sm:$0xff] %v5116_v2  ;;  %v1972_v46 = vmax.f32 %v1971_v50, %v5116_v2 }
 0x3c6   :  { %1753 = vmax.xlane.f32.xlu2 %v1752_v6  ;;  %1271 = vperm.xlu0 %3359, %v1130_v60   ;;  %v5120_v12 = vpop.permute.xlu1 %1187  ;;  %v1624_v60 = vsel %vm1560_vm15, 1.0, %v7481_v11  ;;  %v1625_v6 = vsel %vm1561_vm14, 1.0, %v7481_v11  ;;  %vm7589_vm15 = vmmov %vm7582_vm3 }
 0x3c7   :  { %v5130_v37 = vsel %vm7580_vm7, %v1624_v60, -inf  ;;  %v1797_v58 = vsel %vm7582_vm3, %v1625_v6, -inf  ;;  %v7584_v60 = vld [vmem:[#allocation61_spill] sm:$0xff]  ;;  %v1628_v6 = vsel %vm1564_vm4, 1.0, %v7481_v11  ;;  %vm1566_vm7 = vcmp.eq.s32.totalorder %v4832_v22, 16  ;;  %vm7594_vm4 = vmmov %vm7588_vm10 }
 0x3c8   :  { %7581 = vst [vmem:[#allocation31_spill] sm:$0xff] %v5130_v37  ;;  %v1973_v50 = vmax.f32 %v1972_v46, %v5130_v37  ;;  %vm7585_vm8 = vcmp.gt.f32.partialorder %v7584_v60, 0.0  ;;  %v1090_v46 = vshll.u32 %v1089_v49, 16  ;;  %v5152_v37 = vsel %vm7586_vm12, %v1627_v45, -inf  ;;  %v5154_v60 = vpop.permute.xlu2 %1238 }
 0x3c9   :  { %v1136_v61 = vsel %vm7585_vm8, %v7437_v16, 4294967295  ;;  %7587 = vst [vmem:[#allocation36_spill] sm:$0xff] %v5152_v37  ;;  %v1806_v31 = vsel %vm7588_vm10, %v1628_v6, -inf  ;;  %vm1567_vm3 = vcmp.eq.s32.totalorder %v4877_v8, 16  ;;  %v1630_v45 = vsel %vm1566_vm7, 1.0, %v7481_v11 }
 0x3ca   :  { %v5136_v62 = vmax.f32 %v1973_v50, %v1797_v58  ;;  %v1629_v50 = vsel %vm1565_vm1, 1.0, %v7481_v11  ;;  %v1631_v6 = vsel %vm1567_vm3, 1.0, %v7481_v11  ;;  %vm7596_vm1 = vmmov %vm7594_vm4  ;;  %vm1569_vm10 = vcmp.eq.s32.totalorder %v4848_v18, 16 }
 0x3cb   :  { %v5158_v49 = vsel %vm7589_vm15, %v1629_v50, -inf  ;;  %vm7597_vm12 = vmmov %vm7596_vm1  ;;  %vm1570_vm15 = vcmp.eq.s32.totalorder %v4898_v19, 16 }
 0x3cc   :  { %7583 = vst [vmem:[#allocation33_spill] sm:$0xff] %v5136_v62 }
 0x3cd   :  { %7590 = vst [vmem:[#allocation39_spill] sm:$0xff] %v5158_v49 }
 0x3ce   :  { %1762 = vmax.xlane.f32.xlu2 %v1761_v40  ;;  %1280 = vperm.xlu0 %3359, %v1133_v51   ;;  %v5140_v2 = vpop.permute.xlu1 %1196  ;;  %v1490_v51 = vld [vmem:[#allocation2] sm:$0xff] }
 0x3d5   :  { %v1087_v38 = vpop.xlane.xlu0 %1086 }
 0x3d6   :  { %v1088_v40 = vcvt.f32.s32 %v1087_v38  ;;  %1771 = vmax.xlane.f32.xlu2 %v5083_v52  ;;  %1289 = vperm.xlu0 %3359, %v1136_v61   ;;  %v1982_v61 = vmax.f32 %v5152_v37, %v1806_v31  ;;  %v5176_v50 = vpop.permute.xlu1 %1205 }
 0x3d8   :  { %v1091_v16 = vadd.s32 %v1090_v46, %v1088_v40  ;;  %v1983_v39 = vmax.f32 %v1982_v61, %v5158_v49  ;;  %v7592_v46 = vld [vmem:[#allocation62_spill] sm:$0xff]  ;;  %v5183_v49 = vpop.permute.xlu2 %1247 }
 0x3d9   :  { %vm7593_vm8 = vcmp.gt.f32.partialorder %v7592_v46, 0.0 }
 0x3da   :  { %vm1491_vm14 = vcmp.lt.s32.totalorder %v1490_v51, %v1091_v16  ;;  %v1139_v40 = vsel %vm7593_vm8, %v7440_v13, 4294967295 }
 0x3db   :  { %v1492_v38 = vsel %vm1491_vm14, %v1490_v51, %v1091_v16  ;;  %v1632_v16 = vsel %vm1568_vm5, 1.0, %v7481_v11  ;;  %v5174_v51 = vsel %vm7594_vm4, %v1630_v45, -inf  ;;  %v1634_v45 = vsel %vm1570_vm15, 1.0, %v7481_v11 }
 0x3dc   :  { %1494 = vst.msk [vmem:[#allocation2] sm:$0xff] %vm7591_vm0, %v1492_v38  ;;  %v1984_v61 = vmax.f32 %v1983_v39, %v5174_v51  ;;  %v1815_v38 = vsel %vm7596_vm1, %v1631_v6, -inf  ;;  %v5181_v46 = vsel %vm7597_vm12, %v1632_v16, -inf  ;;  %v1633_v39 = vsel %vm1569_vm10, 1.0, %v7481_v11  ;;  %vm7601_vm0 = vmmov %vm7596_vm1 }
 0x3dd   :  { %7595 = vst [vmem:[#allocation42_spill] sm:$0xff] %v5174_v51  ;;  %v5195_v6 = vsel %vm7601_vm0, %v1633_v39, -inf  ;;  %vm7604_vm7 = vmmov %vm7601_vm0  ;;  %vm1515_vm4 = vcmp.eq.s32.totalorder %v4820_v43, 10  ;;  %vm7629_vm1 = vcmask 195712   ;;  %vm7632_vm10 = vcmask 261312  }
 0x3de   :  { %1780 = vmax.xlane.f32.xlu2 %v5093_v57  ;;  %1298 = vperm.xlu0 %3359, %v1139_v40   ;;  %7598 = vst [vmem:[#allocation16_spill] sm:$0xff] %v5181_v46  ;;  %v1985_v37 = vmax.f32 %v1984_v61, %v1815_v38  ;;  %v7599_v57 = vld [vmem:[#allocation63_spill] sm:$0xff]  ;;  %v1824_v61 = vsel %vm7604_vm7, %v1634_v45, -inf  ;;  %v5201_v51 = vpop.permute.xlu1 %1214  ;;  %vm7630_vm12 = vmmov %vm7601_vm0  ;;  %vm7633_vm15 = vcmask 326912  }
 0x3df   :  { %vm7600_vm14 = vcmp.gt.f32.partialorder %v7599_v57, 0.0  ;;  %7602 = vst [vmem:[#allocation45_spill] sm:$0xff] %v5195_v6  ;;  %vm7637_vm7 = vmmov %vm7629_vm1 }
 0x3e0   :  { %v1986_v13 = vmax.f32 %v1985_v37, %v5181_v46  ;;  %v1142_v40 = vsel %vm7600_vm14, %v7443_v41, 4294967295  ;;  %v5205_v46 = vpop.permute.xlu2 %1256  ;;  %v7606_v41 = vld [vmem:[#allocation64_spill] sm:$0xff]  ;;  %vm7634_vm14 = vmmov %vm7601_vm0  ;;  %vm1553_vm0 = vcmp.eq.s32.totalorder %v4848_v18, 14 }
 0x3e1   :  { %vm7607_vm3 = vcmp.gt.f32.partialorder %v7606_v41, 0.0  ;;  %v7611_v41 = vld [vmem:[#allocation67_spill] sm:$0xff] }
 0x3e2   :  { %v1987_v37 = vmax.f32 %v1986_v13, %v5195_v6  ;;  %v7608_v13 = vld [vmem:[#allocation66_spill] sm:$0xff]  ;;  %vm7612_vm8 = vcmp.gt.f32.partialorder %v7611_v41, 0.0 }
 0x3e3   :  { %vm7609_vm5 = vcmp.gt.f32.partialorder %v7608_v13, 0.0 }
 0x3e4   :  { %v5203_v57 = vmax.f32 %v1987_v37, %v1824_v61  ;;  %v1148_v45 = vsel %vm7609_vm5, %v4111_v26, 4294967295  ;;  %v1154_v26 = vsel %vm433_vm11, %v4136_v29, 4294967295  ;;  %vm1538_vm11 = vcmp.eq.s32.totalorder %v4898_v19, 12  ;;  %vm7639_vm5 = vmmov %vm7630_vm12 }
 0x3e6   :  { %1789 = vmax.xlane.f32.xlu2 %v5113_v54  ;;  %1307 = vperm.xlu0 %3359, %v1142_v40   ;;  %7605 = vst [vmem:[#allocation47_spill] sm:$0xff] %v5203_v57  ;;  %v1145_v54 = vsel %vm7607_vm3, %v4139_v47, 4294967295  ;;  %v5212_v39 = vpop.permute.xlu1 %1223  ;;  %vm1554_vm3 = vcmp.eq.s32.totalorder %v4898_v19, 14 }
 0x3e8   :  { %v5198_v16 = vpop.permute.xlu0 %1178  ;;  %v5217_v6 = vpop.permute.xlu2 %1265 }
 0x3e9   :  { %7603 = vst [vmem:[#allocation35_spill] sm:$0xff] %v5198_v16 }
 0x3ee   :  { %1798 = vmax.xlane.f32.xlu2 %v1797_v58  ;;  %1316 = vperm.xlu0 %3359, %v1145_v54   ;;  %v5221_v57 = vpop.permute.xlu1 %1232  ;;  %v1151_v58 = vsel %vm7612_vm8, %v4118_v35, 4294967295  ;;  %vm1562_vm8 = vcmp.eq.s32.totalorder %v4898_v19, 15 }
 0x3f0   :  { %v5210_v40 = vpop.permute.xlu0 %1190  ;;  %v5226_v54 = vpop.permute.xlu2 %1274 }
 0x3f6   :  { %1807 = vmax.xlane.f32.xlu2 %v1806_v31  ;;  %1325 = vperm.xlu0 %3359, %v1148_v45   ;;  %v5233_v31 = vpop.permute.xlu1 %1241 }
 0x3f8   :  { %v5219_v37 = vpop.permute.xlu0 %1199  ;;  %v5237_v62 = vpop.permute.xlu2 %1283 }
 0x3f9   :  { %7610 = vst [vmem:[#allocation38_spill] sm:$0xff] %v5219_v37 }
 0x3fe   :  { %1816 = vmax.xlane.f32.xlu2 %v1815_v38  ;;  %1334 = vperm.xlu0 %3359, %v1151_v58   ;;  %v5241_v38 = vpop.permute.xlu1 %1250 }
 0x400   :  { %v5228_v47 = vpop.permute.xlu0 %1208  ;;  %v5243_v58 = vpop.permute.xlu2 %1292 }
 0x406   :  { %1825 = vmax.xlane.f32.xlu2 %v1824_v61  ;;  %1343 = vperm.xlu0 %3359, %v1154_v26   ;;  %v5247_v22 = vpop.permute.xlu1 %1259 }
 0x408   :  { %v5235_v45 = vpop.permute.xlu0 %1217  ;;  %v5249_v13 = vpop.permute.xlu2 %1301 }
 0x409   :  { %7614 = vst [vmem:[#allocation50_spill] sm:$0xff] %v5235_v45 }
 0x40e   :  { %v5253_v26 = vpop.permute.xlu1 %1268 }
 0x410   :  { %v5239_v41 = vpop.permute.xlu0 %1226  ;;  %v5255_v29 = vpop.permute.xlu2 %1310 }
 0x411   :  { %7615 = vst [vmem:[#allocation41_spill] sm:$0xff] %v5239_v41 }
 0x416   :  { %v5259_v56 = vpop.permute.xlu1 %1277 }
 0x417   :  { %7619 = vst [vmem:[#allocation52_spill] sm:$0xff] %v5259_v56 }
 0x418   :  { %v5245_v35 = vpop.permute.xlu0 %1235  ;;  %v5263_v25 = vpop.permute.xlu2 %1319 }
 0x419   :  { %7616 = vst [vmem:[#allocation53_spill] sm:$0xff] %v5245_v35  ;;  %v1579_v35 = vsel %vm1515_vm4, 1.0, %v7481_v11 }
 0x41e   :  { %v5267_v16 = vpop.permute.xlu1 %1286 }
 0x41f   :  { %7622 = vst [vmem:[#allocation58_spill] sm:$0xff] %v5267_v16 }
 0x420   :  { %v5251_v61 = vpop.permute.xlu0 %1244  ;;  %v5269_v34 = vpop.permute.xlu2 %1328 }
 0x421   :  { %7617 = vst [vmem:[#allocation44_spill] sm:$0xff] %v5251_v61 }
 0x426   :  { %v5273_v61 = vpop.permute.xlu1 %1295 }
 0x427   :  { %7624 = vst [vmem:[#allocation60_spill] sm:$0xff] %v5273_v61  ;;  %v1348_v61 = vperm.slane %v4823_v5, %v7408_v27  ;;  %v1363_v5 = vperm.slane %v4974_v20, %v7408_v27  ;;  %v1617_v20 = vsel %vm1553_vm0, 1.0, %v7481_v11  ;;  %vm7659_vm0 = vmmov %vm7637_vm7 }
 0x428   :  { %v5257_v63 = vpop.permute.xlu0 %1253  ;;  %v5275_v37 = vpop.permute.xlu2 %1337 }
 0x429   :  { %7618 = vst [vmem:[#allocation49_spill] sm:$0xff] %v5257_v63 }
 0x42e   :  { %v5279_v4 = vpop.permute.xlu1 %1304 }
 0x42f   :  { %7626 = vst [vmem:[#allocation62_spill] sm:$0xff] %v5279_v4 }
 0x430   :  { %v5261_v41 = vpop.permute.xlu0 %1262  ;;  %v5286_v16 = vpop.permute.xlu2 %1346 }
 0x431   :  { %7620 = vst [vmem:[#allocation55_spill] sm:$0xff] %v5261_v41  ;;  %v1349_v41 = vperm.slane %v4838_v28, %v4510_v55  ;;  %v1355_v28 = vperm.slane %v4901_v9, %v4527_v14  ;;  %v1357_v9 = vperm.slane %v5088_v42, %v4539_v3 }
 0x432   :  { %7627 = vst [vmem:[#allocation63_spill] sm:$0xff] %v5286_v16 }
 0x433   :  { %v1350_v4 = vsel %vm939_vm2, %v1349_v41, %v1348_v61  ;;  %v1368_v41 = vperm.slane %v5210_v40, %v4534_v7  ;;  %v1383_v40 = vperm.slane %v5201_v51, %v4534_v7 }
 0x438   :  { %v5265_v8 = vpop.permute.xlu0 %1271  ;;  %v5336_v61 = vpop.xlane.xlu2 %1636 }
 0x439   :  { %7621 = vst [vmem:[#allocation57_spill] sm:$0xff] %v5265_v8  ;;  %v1351_v8 = vperm.slane %v4853_v10, %v4513_v48  ;;  %v1364_v10 = vperm.slane %v5006_v17, %v4510_v55  ;;  %v1359_v17 = vperm.slane %v4940_v30, %v4561_v33 }
 0x43a   :  { %7636 = vst [vmem:[#allocation68_spill] sm:$0xff] %v5336_v61  ;;  %v7647_v61 = vld [vmem:[#allocation78_spill] sm:$0xff] }
 0x43b   :  { %vm1508_vm4 = vcmp.eq.s32.totalorder %v7647_v61, 9 }
 0x440   :  { %v5271_v45 = vpop.permute.xlu0 %1280 }
 0x441   :  { %7623 = vst [vmem:[#allocation59_spill] sm:$0xff] %v5271_v45  ;;  %v1602_v45 = vsel %vm1538_vm11, 1.0, %v7481_v11  ;;  %vm7641_vm11 = vmmov %vm7632_vm10 }
 0x448   :  { %v5277_v21 = vpop.permute.xlu0 %1289 }
 0x449   :  { %7625 = vst [vmem:[#allocation61_spill] sm:$0xff] %v5277_v21  ;;  %v1353_v21 = vperm.slane %v4869_v23, %v4534_v7  ;;  %v5306_v23 = vsel %vm7630_vm12, %v1602_v45, -inf }
 0x44a   :  { %7631 = vst [vmem:[#allocation66_spill] sm:$0xff] %v5306_v23 }
 0x450   :  { %v5288_v63 = vpop.permute.xlu0 %1298 }
 0x451   :  { %7628 = vst [vmem:[#allocation64_spill] sm:$0xff] %v5288_v63  ;;  %v1352_v63 = vsel %vm7629_vm1, %v1351_v8, %v1350_v4  ;;  %v1365_v4 = vsel %vm939_vm2, %v1364_v10, %v1363_v5  ;;  %v1370_v8 = vperm.slane %v5031_v24, %v4527_v14  ;;  %v1393_v24 = vperm.slane %v5132_v44, %v7408_v27  ;;  %vm7649_vm1 = vmmov %vm7633_vm15 }
 0x452   :  { %v1354_v43 = vsel %vm7632_vm10, %v1353_v21, %v1352_v63  ;;  %v5322_v63 = vsel %vm7634_vm14, %v1579_v35, -inf  ;;  %v5326_v21 = vpop.permute.xlu1 %1313  ;;  %v1366_v10 = vperm.slane %v5120_v12, %v4513_v48  ;;  %v1438_v12 = vperm.slane %v5249_v13, %v7408_v27  ;;  %v7645_v13 = vld [vmem:[#allocation53_spill] sm:$0xff]  ;;  %vm7653_vm10 = vmmov %vm7637_vm7 }
 0x453   :  { %v1356_v56 = vsel %vm7633_vm15, %v1355_v28, %v1354_v43  ;;  %7635 = vst [vmem:[#allocation67_spill] sm:$0xff] %v5322_v63  ;;  %v1936_v43 = vmax.f32 %v4966_v15, %v5306_v23  ;;  %v1409_v15 = vperm.slane %v5205_v46, %v4510_v55  ;;  %v1394_v5 = vperm.slane %v5221_v57, %v4510_v55  ;;  %vm7654_vm15 = vmmov %vm7639_vm5 }
 0x454   :  { %v1358_v28 = vsel %vm955_vm13, %v1357_v9, %v1356_v56  ;;  %v1367_v56 = vsel %vm7637_vm7, %v1366_v10, %v1365_v4  ;;  %v1372_v46 = vperm.slane %v5140_v2, %v4539_v3  ;;  %v1378_v57 = vperm.slane %v5176_v50, %v7408_v27  ;;  %vm7657_vm14 = vmmov %vm7639_vm5 }
 0x455   :  { %v1937_v9 = vrot.slane %v1936_v43, 4  ;;  %v5366_v30 = vsel %vm959_vm6, %v1359_v17, %v1358_v28  ;;  %v1379_v17 = vperm.slane %v5228_v47, %v4510_v55  ;;  %v5387_v2 = vsel %vm7639_vm5, %v1617_v20, -inf  ;;  %vm7663_vm7 = vmmov %vm7641_vm11 }
 0x456   :  { %7640 = vst [vmem:[#allocation86_spill] sm:$0xff] %v5387_v2  ;;  %v1395_v10 = vsel %vm939_vm2, %v1394_v5, %v1393_v24  ;;  %v1400_v47 = vperm.slane %v5233_v31, %v4527_v14  ;;  %v1411_v20 = vperm.slane %v5247_v22, %v4513_v48  ;;  %v1369_v51 = vsel %vm7641_vm11, %v1368_v41, %v1367_v56  ;;  %v7644_v41 = vld [vmem:[#allocation52_spill] sm:$0xff]  ;;  %v7646_v24 = vld [vmem:[#allocation49_spill] sm:$0xff]  ;;  %vm7666_vm5 = vmmov %vm7663_vm7 }
 0x457   :  { %v5384_v28 = vmax.f32 %v1936_v43, %v1937_v9  ;;  %v5404_v9 = vsel %vm1554_vm3, 1.0, %v7481_v11  ;;  %v7642_v31 = vmax.f32 %v5078_v1, %v5083_v52  ;;  %v5417_v43 = vpop.xlane.xlu2 %1645  ;;  %v5420_v22 = vsel %vm1562_vm8, 1.0, %v7481_v11  ;;  %v7648_v1 = vld [vmem:[#allocation62_spill] sm:$0xff]  ;;  %vm7664_vm3 = vmmov %vm7649_vm1 }
 0x458   :  { %v5338_v35 = vpop.permute.xlu0 %1307  ;;  %7643 = vst [vmem:[#allocation87_spill] sm:$0xff] %v5417_v43  ;;  %v1380_v50 = vsel %vm939_vm2, %v1379_v17, %v1378_v57  ;;  %v1423_v56 = vperm.slane %v7644_v41, %v7408_v27  ;;  %v1396_v42 = vperm.slane %v7645_v13, %v4513_v48  ;;  %v1408_v45 = vperm.slane %v7646_v24, %v7408_v27  ;;  %v7650_v43 = vld [vmem:[#allocation29_spill] sm:$0xff]  ;;  %v7651_v17 = vld [vmem:[#allocation38_spill] sm:$0xff]  ;;  %vm7667_vm8 = vmmov %vm7659_vm0 }
 0x459   :  { %7638 = vst [vmem:[#allocation85_spill] sm:$0xff] %v5384_v28  ;;  %v5415_v5 = vmax.f32 %v7642_v31, %v5387_v2  ;;  %v1439_v52 = vperm.slane %v7648_v1, %v4510_v55  ;;  %v1371_v31 = vsel %vm7649_vm1, %v1370_v8, %v1369_v51  ;;  %vm1509_vm12 = vcmp.eq.s32.totalorder %v7650_v43, 9  ;;  %v7655_v1 = vld [vmem:[#allocation50_spill] sm:$0xff]  ;;  %v7656_v51 = vld [vmem:[#allocation59_spill] sm:$0xff]  ;;  %vm7669_vm11 = vmmov %vm7666_vm5 }
 0x45a   :  { %v5407_v4 = vpop.permute.xlu1 %1322  ;;  %v1572_v57 = vsel %vm1508_vm4, 1.0, %v7481_v11  ;;  %v1374_v41 = vperm.slane %v7651_v17, %v4561_v33  ;;  %v7652_v13 = vperm.slane %v5062_v53, %v4513_v48  ;;  %v1573_v24 = vsel %vm1509_vm12, 1.0, %v7481_v11  ;;  %v7658_v17 = vld [vmem:[#allocation83_spill] sm:$0xff]  ;;  %vm7670_vm4 = vmmov %vm7659_vm0 }
 0x45b   :  { %v5443_v23 = vsel %vm7654_vm15, %v1572_v57, -inf  ;;  %v1385_v8 = vperm.slane %v7655_v1, %v4527_v14  ;;  %v1424_v18 = vperm.slane %v7656_v51, %v4510_v55  ;;  %v5450_v61 = vsel %vm7657_vm14, %v1573_v24, -inf  ;;  %v7661_v1 = vld [vmem:[#allocation58_spill] sm:$0xff]  ;;  %v7662_v51 = vld [vmem:[#allocation35_spill] sm:$0xff]  ;;  %vm7678_vm15 = vmmov %vm7657_vm14 }
 0x45c   :  { %v1382_v2 = vsel %vm7653_vm10, %v7652_v13, %v1380_v50  ;;  %v1891_v28 = vmax.f32 %v7658_v17, %v5443_v23  ;;  %v1397_v53 = vsel %vm7659_vm0, %v1396_v42, %v1395_v10  ;;  %v1410_v50 = vsel %vm939_vm2, %v1409_v15, %v1408_v45  ;;  %v7660_v13 = vld [vmem:[#allocation55_spill] sm:$0xff]  ;;  %vm7676_vm10 = vmmov %vm7659_vm0 }
 0x45d   :  { %v1413_v57 = vperm.slane %v7660_v13, %v4534_v7  ;;  %v1441_v59 = vperm.slane %v5338_v35, %v4513_v48  ;;  %v1428_v63 = vperm.slane %v7661_v1, %v4534_v7  ;;  %v1361_v24 = vperm.slane %v7662_v51, %v4564_v32  ;;  %vm7681_vm14 = vmmov %vm7664_vm3 }
 0x45e   :  { %v1373_v16 = vsel %vm955_vm13, %v1372_v46, %v1371_v31  ;;  %v1892_v17 = vmax.f32 %v1891_v28, %v5450_v61  ;;  %v1440_v42 = vsel %vm939_vm2, %v1439_v52, %v1438_v12  ;;  %v1445_v45 = vperm.slane %v5326_v21, %v4527_v14  ;;  %v7668_v12 = vld [vmem:[#allocation44_spill] sm:$0xff]  ;;  %vm7683_vm0 = vmmov %vm7666_vm5 }
 0x45f   :  { %v1375_v15 = vsel %vm959_vm6, %v1374_v41, %v1373_v16  ;;  %v1384_v35 = vsel %vm7663_vm7, %v1383_v40, %v1382_v2  ;;  %v7665_v13 = vperm.slane %v5154_v60, %v4534_v7  ;;  %v1412_v46 = vsel %vm7667_vm8, %v1411_v20, %v1410_v50  ;;  %v7671_v2 = vld [vmem:[#allocation17_spill] sm:$0xff]  ;;  %v5483_v40 = vpop.xlane.xlu2 %1654  ;;  %v7673_v41 = vld [vmem:[#allocation40_spill] sm:$0xff]  ;;  %vm7684_vm7 = vmmov %vm7678_vm15 }
 0x460   :  { %v5397_v44 = vpop.permute.xlu0 %1316  ;;  %v1386_v10 = vsel %vm7664_vm3, %v1385_v8, %v1384_v35  ;;  %v1425_v28 = vsel %vm939_vm2, %v1424_v18, %v1423_v56  ;;  %v1402_v52 = vperm.slane %v7668_v12, %v4539_v3  ;;  %v1414_v21 = vsel %vm7669_vm11, %v1413_v57, %v1412_v46  ;;  %7672 = vst [vmem:[#allocation52_spill] sm:$0xff] %v5483_v40  ;;  %v7674_v8 = vld [vmem:[#allocation80_spill] sm:$0xff]  ;;  %v7677_v50 = vld [vmem:[#allocation61_spill] sm:$0xff]  ;;  %vm7690_vm8 = vmmov %vm7664_vm3 }
 0x461   :  { %v1399_v1 = vsel %vm7666_vm5, %v7665_v13, %v1397_v53  ;;  %v1442_v16 = vsel %vm7670_vm4, %v1441_v59, %v1440_v42  ;;  %vm1511_vm1 = vcmp.eq.s32.totalorder %v7671_v2, 9  ;;  %vm1512_vm12 = vcmp.eq.s32.totalorder %v7673_v41, 9  ;;  %vm7687_vm5 = vmmov %vm7683_vm0 }
 0x462   :  { %v1332_v31 = vpop.permute.xlu1 %1331  ;;  %v1575_v20 = vsel %vm1511_vm1, 1.0, %v7481_v11  ;;  %v1893_v18 = vmax.f32 %v1892_v17, %v7674_v8  ;;  %v7675_v56 = vperm.slane %v5237_v62, %v4513_v48  ;;  %v1430_v59 = vperm.slane %v7677_v50, %v4527_v14  ;;  %v7689_v8 = vld [vmem:[#allocation41_spill] sm:$0xff]  ;;  %vm7693_vm11 = vmmov %vm7664_vm3 }
 0x463   :  { %v1576_v57 = vsel %vm1512_vm12, 1.0, %v7481_v11  ;;  %v5497_v51 = vsel %vm7678_vm15, %v1575_v20, -inf  ;;  %v7680_v17 = vperm.slane %v5100_v36, %v4539_v3  ;;  %v1401_v35 = vsel %vm7681_vm14, %v1400_v47, %v1399_v1  ;;  %vm7697_vm12 = vmmov %vm7683_vm0 }
 0x464   :  { %v1427_v53 = vsel %vm7676_vm10, %v7675_v56, %v1425_v28  ;;  %v1894_v13 = vmax.f32 %v1893_v18, %v5497_v51  ;;  %v1403_v46 = vsel %vm955_vm13, %v1402_v52, %v1401_v35  ;;  %v7682_v28 = vperm.slane %v5255_v29, %v4534_v7  ;;  %v7698_v35 = vld [vmem:[#allocation60_spill] sm:$0xff]  ;;  %vm7705_vm15 = vmmov %vm7664_vm3 }
 0x465   :  { %v1388_v62 = vsel %vm955_vm13, %v7680_v17, %v1386_v10  ;;  %v7685_v36 = vperm.slane %v5217_v6, %v4527_v14  ;;  %v7686_v10 = vld [vmem:[#allocation57_spill] sm:$0xff]  ;;  %v1429_v52 = vsel %vm7687_vm5, %v1428_v63, %v1427_v53  ;;  %v7688_v29 = vperm.slane %v5269_v34, %v4510_v55  ;;  %v7696_v17 = vld [vmem:[#allocation64_spill] sm:$0xff]  ;;  %vm7706_vm14 = vmmov %vm7684_vm7 }
 0x466   :  { %v1444_v12 = vsel %vm7683_vm0, %v7682_v28, %v1442_v16  ;;  %v1419_v1 = vperm.slane %v7686_v10, %v4561_v33  ;;  %v1391_v18 = vperm.slane %v7689_v8, %v4564_v32  ;;  %v1431_v6 = vsel %vm7690_vm8, %v1430_v59, %v1429_v52 }
 0x467   :  { %v1416_v47 = vsel %vm7664_vm3, %v7685_v36, %v1414_v21  ;;  %v7691_v56 = vperm.slane %v5212_v39, %v4561_v33  ;;  %v7692_v34 = vperm.slane %v5183_v49, %v4561_v33  ;;  %v1446_v53 = vsel %vm7693_vm11, %v1445_v45, %v1444_v12  ;;  %vm7709_vm3 = vmmov %vm7706_vm14 }
 0x468   :  { %v1326_v43 = vpop.permute.xlu0 %1325  ;;  %v7694_v50 = vperm.slane %v5253_v26, %v4539_v3  ;;  %vm1514_vm1 = vcmp.eq.s32.totalorder %v4898_v19, 9  ;;  %v7695_v49 = vperm.slane %v5243_v58, %v4539_v3  ;;  %v1451_v28 = vperm.slane %v5407_v4, %v4564_v32  ;;  %v5567_v58 = vpop.xlane.xlu2 %1663  ;;  %vm7710_vm5 = vmmov %vm7709_vm3 }
 0x469   :  { %v1453_v60 = vperm.slane %v1326_v43, %v7408_v27  ;;  %v7679_v43 = vperm.slane %v5041_v0, %v4564_v32  ;;  %v1447_v0 = vperm.slane %v5397_v44, %v4539_v3  ;;  %v1456_v44 = vperm.slane %v1332_v31, %v4513_v48 }
 0x46a   :  { %v1390_v63 = vsel %vm959_vm6, %v7691_v56, %v1388_v62  ;;  %v1418_v59 = vsel %vm955_vm13, %v7694_v50, %v1416_v47  ;;  %v1433_v45 = vsel %vm955_vm13, %v7695_v49, %v1431_v6  ;;  %v1436_v62 = vperm.slane %v7696_v17, %v4564_v32  ;;  %v1341_v12 = vpop.permute.xlu1 %1340  ;;  %v7717_v49 = vld [vmem:[#allocation81_spill] sm:$0xff] }
 0x46b   :  { %v1377_v42 = vsel %vm7231_vm9, %v7679_v43, %v1375_v15  ;;  %v5517_v15 = vsel %vm7684_vm7, %v1576_v57, -inf  ;;  %v1455_v16 = vsel %vm939_vm2, %v7688_v29, %v1453_v60  ;;  %v1405_v60 = vsel %vm959_vm6, %v7692_v34, %v1403_v46  ;;  %v7718_v17 = vld [vmem:[#allocation33_spill] sm:$0xff] }
 0x46c   :  { %v1895_v31 = vmax.f32 %v1894_v13, %v5517_v15  ;;  %v1448_v57 = vsel %vm955_vm13, %v1447_v0, %v1446_v53  ;;  %v1457_v39 = vsel %vm7670_vm4, %v1456_v44, %v1455_v16  ;;  %v1420_v43 = vsel %vm959_vm6, %v1419_v1, %v1418_v59  ;;  %v7713_v59 = vld [vmem:[#allocation29_spill] sm:$0xff] }
 0x46d   :  { %v1434_v13 = vperm.slane %v7698_v35, %v4561_v33  ;;  %v1362_v46 = vsel %vm7231_vm9, %v1361_v24, %v5366_v30  ;;  %v1392_v0 = vsel %vm7231_vm9, %v1391_v18, %v1390_v63  ;;  %v7699_v36 = vperm.slane %v5241_v38, %v4564_v32  ;;  %v7701_v24 = vld [vmem:[#allocation77_spill] sm:$0xff] }
 0x46e   :  { %v7700_v10 = vperm.slane %v5263_v25, %v4561_v33  ;;  %v1578_v30 = vsel %vm1514_vm1, 1.0, %v7481_v11  ;;  %v1896_v52 = vmax.f32 %v1895_v31, %v7701_v24  ;;  %vm7702_vm10 = vcmask 1041409   ;;  %v7727_v24 = vld [vmem:[#allocation23_spill] sm:$0xff] }
 0x46f   :  { %v1407_v47 = vsel %vm7231_vm9, %v7699_v36, %v1405_v60  ;;  %v1468_v4 = vsel %vm7702_vm10, %v1377_v42, %v1362_v46  ;;  %v7703_v29 = vperm.slane %v5226_v54, %v4564_v32  ;;  %v1435_v38 = vsel %vm959_vm6, %v1434_v13, %v1433_v45 }
 0x470   :  { %v1335_v20 = vpop.permute.xlu0 %1334  ;;  %v1450_v1 = vsel %vm959_vm6, %v7700_v10, %v1448_v57  ;;  %v5591_v44 = vsel %vm7706_vm14, %v5404_v9, -inf  ;;  %v1462_v8 = vperm.slane %v1341_v12, %v4539_v3  ;;  %vm7707_vm0 = vcmask 1042434   ;;  %v7714_v57 = vld [vmem:[#allocation63_spill] sm:$0xff]  ;;  %vm7721_vm14 = vmmov %vm7709_vm3  ;;  %v7726_v10 = vld [vmem:[#allocation85_spill] sm:$0xff] }
 0x471   :  { %v1458_v21 = vperm.slane %v1335_v20, %v4534_v7  ;;  %v1422_v16 = vsel %vm7231_vm9, %v7703_v29, %v1420_v43  ;;  %v7704_v20 = vperm.slane %v5275_v37, %v4527_v14  ;;  %v1469_v42 = vsel %vm7707_vm0, %v1392_v0, %v1468_v4  ;;  %vm7722_vm0 = vmmov %vm7709_vm3  ;;  %v7723_v12 = vld [vmem:[#allocation67_spill] sm:$0xff]  ;;  %v7724_v0 = vld [vmem:[#allocation76_spill] sm:$0xff]  ;;  %v5641_v4 = vpop.xlane.xlu2 %1672 }
 0x472   :  { %v1437_v18 = vsel %vm7231_vm9, %v1436_v62, %v1435_v38  ;;  %vm7708_vm7 = vcmask 1043459   ;;  %v5600_v37 = vsel %vm7709_vm3, %v1578_v30, -inf  ;;  %v5604_v9 = vsel %vm7710_vm5, %v5420_v22, -inf  ;;  %v7729_v38 = vld [vmem:[#allocation78_spill] sm:$0xff]  ;;  %vm7730_vm5 = vmmov %vm7722_vm0 }
 0x473   :  { %v1459_v26 = vsel %vm7697_vm12, %v1458_v21, %v1457_v39  ;;  %v1470_v6 = vsel %vm7708_vm7, %v1407_v47, %v1469_v42  ;;  %v1452_v21 = vsel %vm7231_vm9, %v1451_v28, %v1450_v1  ;;  %vm7711_vm8 = vcmask 1044484  }
 0x474   :  { %v1461_v25 = vsel %vm7705_vm15, %v7704_v20, %v1459_v26  ;;  %v1471_v63 = vsel %vm7711_vm8, %v1422_v16, %v1470_v6  ;;  %v1897_v60 = vmax.f32 %v1896_v52, %v5600_v37  ;;  %v1962_v53 = vmax.f32 %v5415_v5, %v5591_v44  ;;  %vm7720_vm15 = vmmov %vm7709_vm3  ;;  %v7728_v16 = vld [vmem:[#allocation79_spill] sm:$0xff] }
 0x475   :  { %v1463_v34 = vsel %vm955_vm13, %v1462_v8, %v1461_v25  ;;  %vm7712_vm11 = vcmask 1045509   ;;  %vm1517_vm4 = vcmp.eq.s32.totalorder %v7713_v59, 10  ;;  %v7715_v39 = vperm.slane %v7714_v57, %v4564_v32  ;;  %vm7731_vm8 = vmmov %vm7722_vm0  ;;  %v3370_v57 = vld [vmem:[#allocation6 + $0x18] sm:$0xff] }
 0x476   :  { %v1472_v31 = vsel %vm7712_vm11, %v1437_v18, %v1471_v63  ;;  %vm7716_vm1 = vcmask 1046534   ;;  %vm1518_vm12 = vcmp.eq.s32.totalorder %v7717_v49, 10  ;;  %v1581_v45 = vsel %vm1517_vm4, 1.0, %v7481_v11  ;;  %v7733_v63 = vld [vmem:[#allocation15_spill] sm:$0xff] }
 0x477   :  { %v1473_v43 = vsel %vm7716_vm1, %v1452_v21, %v1472_v31  ;;  %v1975_v5 = vmax.f32 %v7718_v17, %v5604_v9  ;;  %vm7719_vm10 = vcmask 1047559   ;;  %v1582_v26 = vsel %vm1518_vm12, 1.0, %v7481_v11  ;;  %vm7735_vm12 = vmmov %vm7722_vm0 }
 0x478   :  { %v1344_v54 = vpop.permute.xlu0 %1343  ;;  %v5626_v35 = vsel %vm7720_vm15, %v1581_v45, -inf  ;;  %v1898_v46 = vrot.slane %v1897_v60, 4  ;;  %v5632_v28 = vsel %vm7722_vm0, %v1582_v26, -inf  ;;  %v7725_v36 = vmax.f32 %v7723_v12, %v7724_v0 }
 0x479   :  { %v1464_v56 = vperm.slane %v1344_v54, %v4561_v33  ;;  %v1939_v1 = vrot.slane %v7726_v10, 2  ;;  %v1950_v52 = vrot.slane %v7727_v24, 4  ;;  %vm1523_vm7 = vcmp.eq.s32.totalorder %v7728_v16, 11  ;;  %v5687_v16 = vpop.xlane.xlu2 %1681 }
 0x47a   :  { %v1905_v47 = vmax.f32 %v7725_v36, %v5626_v35  ;;  %vm1524_vm3 = vcmp.eq.s32.totalorder %v7729_v38, 11  ;;  %v1963_v20 = vrot.slane %v1962_v53, 4  ;;  %v1587_v8 = vsel %vm1523_vm7, 1.0, %v7481_v11 }
 0x47b   :  { %v1465_v50 = vsel %vm959_vm6, %v1464_v56, %v1463_v34  ;;  %v1588_v42 = vsel %vm1524_vm3, 1.0, %v7481_v11  ;;  %v1976_v18 = vrot.slane %v1975_v5, 4  ;;  %v1899_v54 = vmax.f32 %v1897_v60, %v1898_v46  ;;  %v7732_v56 = vld [vmem:[#allocation84_spill] sm:$0xff] }
 0x47c   :  { %v1467_v22 = vsel %vm7231_vm9, %v7715_v39, %v1465_v50  ;;  %v1906_v29 = vmax.f32 %v1905_v47, %v5632_v28  ;;  %v5651_v6 = vsel %vm7730_vm5, %v1587_v8, -inf  ;;  %v5654_v21 = vsel %vm7731_vm8, %v1588_v42, -inf  ;;  %v3371_v8 = vld [vmem:[#allocation6 + $0x30] sm:$0xff]  ;;  %vm7740_vm5 = vmmov %vm7722_vm0 }
 0x47d   :  { %v1474_v62 = vsel %vm7719_vm10, %v1467_v22, %v1473_v43  ;;  %vm1520_vm11 = vcmp.eq.s32.totalorder %v7673_v41, 10  ;;  %vm1521_vm4 = vcmp.eq.s32.totalorder %v7732_v56, 10  ;;  %v1917_v31 = vmax.f32 %v5651_v6, %v5654_v21  ;;  %v7734_v22 = vld [vmem:[#allocation47_spill] sm:$0xff]  ;;  %vm7736_vm10 = vmmov %vm7722_vm0 }
 0x47e   :  { %v5629_v13 = vsel %vm7721_vm14, %v1474_v62, 2147483648  ;;  %v1907_v34 = vmax.f32 %v1906_v29, %v7733_v63  ;;  %v1951_v50 = vmax.f32 %v7727_v24, %v1950_v52  ;;  %v1584_v60 = vsel %vm1520_vm11, 1.0, %v7481_v11  ;;  %v7737_v62 = vld [vmem:[#allocation30_spill] sm:$0xff]  ;;  %vm7738_vm14 = vmmov %vm7722_vm0 }
 0x47f   :  { %v1477_v30 = vshra.s32 %v5629_v13, 16  ;;  %v1585_v59 = vsel %vm1521_vm4, 1.0, %v7481_v11  ;;  %vm1526_vm1 = vcmp.eq.s32.totalorder %v3370_v57, 11  ;;  %v1964_v39 = vmax.f32 %v1962_v53, %v1963_v20  ;;  %vm7742_vm8 = vmmov %vm7722_vm0 }
 0x480   :  { %v1989_v43 = vrot.slane %v7734_v22, 4  ;;  %v5667_v41 = vsel %vm7735_vm12, %v1584_v60, -inf  ;;  %v5670_v49 = vsel %vm7736_vm10, %v1585_v59, -inf  ;;  %vm1527_vm15 = vcmp.eq.s32.totalorder %v7671_v2, 11 }
 0x481   :  { %v5646_v25 = vcvt.s32.f32 %v1477_v30  ;;  %v1908_v45 = vmax.f32 %v1907_v34, %v5667_v41  ;;  %v1590_v17 = vsel %vm1526_vm1, 1.0, %v7481_v11  ;;  %v1918_v26 = vmax.f32 %v1917_v31, %v7737_v62 }
 0x482   :  { %v1977_v46 = vmax.f32 %v1975_v5, %v1976_v18  ;;  %v1900_v0 = vrot.slane %v1899_v54, 2  ;;  %v1591_v53 = vsel %vm1527_vm15, 1.0, %v7481_v11  ;;  %v5678_v36 = vsel %vm7738_vm14, %v1590_v17, -inf  ;;  %v7739_v5 = vld [vmem:[#allocation34_spill] sm:$0xff] }
 0x483   :  { %1480 = vmax.xlane.f32.xlu1 %v5646_v25  ;;  %v1909_v47 = vmax.f32 %v1908_v45, %v5670_v49  ;;  %v5682_v30 = vsel %vm7722_vm0, %v1591_v53, -inf  ;;  %v1919_v24 = vmax.f32 %v1918_v26, %v5678_v36  ;;  %v1940_v2 = vmax.f32 %v7726_v10, %v1939_v1  ;;  %v7741_v1 = vld [vmem:[#allocation46_spill] sm:$0xff] }
 0x484   :  { %v1990_v52 = vmax.f32 %v7734_v22, %v1989_v43  ;;  %v1952_v29 = vrot.slane %v1951_v50, 2  ;;  %vm1529_vm7 = vcmp.eq.s32.totalorder %v3371_v8, 11  ;;  %v1965_v42 = vrot.slane %v1964_v39, 2 }
 0x485   :  { %v1910_v38 = vmax.f32 %v1909_v47, %v7739_v5  ;;  %v1920_v20 = vmax.f32 %v1919_v24, %v5682_v30  ;;  %v1978_v18 = vrot.slane %v1977_v46, 2  ;;  %v1901_v56 = vmax.f32 %v1899_v54, %v1900_v0 }
 0x486   :  { %v1593_v63 = vsel %vm1529_vm7, 1.0, %v7481_v11  ;;  %vm1530_vm3 = vcmp.eq.s32.totalorder %v4898_v19, 11  ;;  %v1991_v60 = vrot.slane %v1990_v52, 2  ;;  %v1953_v57 = vmax.f32 %v1951_v50, %v1952_v29  ;;  %v5707_v29 = vpop.xlane.xlu2 %1690 }
 0x487   :  { %v1911_v34 = vrot.slane %v1910_v38, 4  ;;  %v5695_v10 = vsel %vm7740_vm5, %v1593_v63, -inf  ;;  %v1921_v31 = vmax.f32 %v1920_v20, %v7741_v1  ;;  %v1594_v59 = vsel %vm1530_vm3, 1.0, %v7481_v11 }
 0x488   :  { %v5700_v43 = vsel %vm7742_vm8, %v1594_v59, -inf  ;;  %v1941_v54 = vrot.slane %v1940_v2, 1  ;;  %v1966_v45 = vmax.f32 %v1964_v39, %v1965_v42  ;;  %v1979_v17 = vmax.f32 %v1977_v46, %v1978_v18 }
 0x489   :  { %v1912_v22 = vmax.f32 %v1910_v38, %v1911_v34  ;;  %v1902_v62 = vrot.slane %v1901_v56, 1  ;;  %v1992_v0 = vmax.f32 %v1990_v52, %v1991_v60  ;;  %v1954_v53 = vrot.slane %v1953_v57, 1 }
 0x48a   :  { %v5704_v5 = vmax.f32 %v1940_v2, %v1941_v54  ;;  %v1967_v11 = vrot.slane %v1966_v45, 1  ;;  %v1980_v50 = vrot.slane %v1979_v17, 1  ;;  %vm7743_vm14 = vcmask 1041409  }
 0x48b   :  { %1639 = vmax.xlane.f32.xlu1 %v5443_v23  ;;  %v1922_v23 = vmax.f32 %v1921_v31, %v5695_v10  ;;  %v1913_v19 = vrot.slane %v1912_v22, 2  ;;  %v1903_v38 = vmax.f32 %v1901_v56, %v1902_v62  ;;  %v1993_v46 = vrot.slane %v1992_v0, 1  ;;  %vm7745_vm3 = vmmov %vm7743_vm14 }
 0x48c   :  { %v5709_v8 = vmax.f32 %v1953_v57, %v1954_v53  ;;  %vm1998_vm11 = vcmp.gt.f32.partialorder %v5704_v5, 0.0  ;;  %v5712_v52 = vmax.f32 %v1966_v45, %v1967_v11  ;;  %v5714_v2 = vmax.f32 %v1979_v17, %v1980_v50 }
 0x48d   :  { %v1923_v26 = vmax.f32 %v1922_v23, %v5700_v43  ;;  %v1914_v47 = vmax.f32 %v1912_v22, %v1913_v19  ;;  %vm1995_vm4 = vcmp.gt.f32.partialorder %v1903_v38, 0.0  ;;  %v5716_v63 = vmax.f32 %v1992_v0, %v1993_v46 }
 0x48e   :  { %v2003_v56 = vsel %vm1995_vm4, %v7408_v27, 129  ;;  %vm1999_vm12 = vcmp.gt.f32.partialorder %v5709_v8, 0.0  ;;  %v2043_v59 = vsel %vm1998_vm11, %v7408_v27, 4294967295  ;;  %vm2000_vm10 = vcmp.gt.f32.partialorder %v5712_v52, 0.0 }
 0x48f   :  { %v1924_v24 = vrot.slane %v1923_v26, 4  ;;  %v1915_v20 = vrot.slane %v1914_v47, 1  ;;  %vm2001_vm15 = vcmp.gt.f32.partialorder %v5714_v2, 0.0  ;;  %v2040_v22 = vsel %vm1995_vm4, %v7408_v27, 4294967295 }
 0x490   :  { %v2044_v45 = vsel %vm1999_vm12, %v7408_v27, 4294967295  ;;  %vm2002_vm0 = vcmp.gt.f32.partialorder %v5716_v63, 0.0  ;;  %v2052_v17 = vrot.slane %v2043_v59, 5  ;;  %v2045_v62 = vsel %vm2000_vm10, %v7408_v27, 4294967295 }
 0x491   :  { %v1925_v39 = vmax.f32 %v1923_v26, %v1924_v24  ;;  %v1916_v42 = vmax.f32 %v1914_v47, %v1915_v20  ;;  %v2046_v19 = vsel %vm2001_vm15, %v7408_v27, 4294967295  ;;  %v2054_v47 = vrot.slane %v2044_v45, 4 }
 0x492   :  { %v2047_v24 = vsel %vm2002_vm0, %v7408_v27, 4294967295  ;;  %v2056_v38 = vrot.slane %v2045_v62, 3  ;;  %v2058_v20 = vrot.slane %v2046_v19, 2  ;;  %vm7746_vm5 = vcmask 1042434   ;;  %v7762_v62 = vld [vmem:[#allocation66_spill] sm:$0xff]  ;;  %v7763_v19 = vld [vmem:[#allocation19_spill] sm:$0xff] }
 0x493   :  { %1648 = vmax.xlane.f32.xlu1 %v5497_v51  ;;  %v1926_v18 = vrot.slane %v1925_v39, 2  ;;  %vm1996_vm1 = vcmp.gt.f32.partialorder %v1916_v42, 0.0  ;;  %vm7747_vm8 = vmmov %vm7746_vm5  ;;  %v2060_v42 = vrot.slane %v2047_v24, 1  ;;  %vm7748_vm4 = vcmask 1043459  }
 0x494   :  { %v2004_v34 = vsel %vm1996_vm1, %v7408_v27, 129  ;;  %v2041_v1 = vsel %vm1996_vm1, %v7408_v27, 4294967295  ;;  %vm7749_vm1 = vcmask 1044484   ;;  %vm7754_vm9 = vcmask 523264  }
 0x495   :  { %v1927_v51 = vmax.f32 %v1925_v39, %v1926_v18  ;;  %v2011_v31 = vrot.slane %v2004_v34, 7  ;;  %v2048_v57 = vrot.slane %v2041_v1, 7 }
 0x497   :  { %v1928_v60 = vrot.slane %v1927_v51, 1  ;;  %v2012_v23 = vsel %vm7743_vm14, %v2011_v31, %v2003_v56  ;;  %v2049_v26 = vsel %vm7745_vm3, %v2048_v57, %v2040_v22  ;;  %vm7750_vm14 = vcmask 1045509  }
 0x498   :  { %vm7752_vm3 = vcmask 1047559  }
 0x499   :  { %v1929_v54 = vmax.f32 %v1927_v51, %v1928_v60 }
 0x49b   :  { %1657 = vmax.xlane.f32.xlu1 %v5600_v37  ;;  %v5737_v37 = vpop.xlane.xlu2 %1699  ;;  %vm1997_vm7 = vcmp.gt.f32.partialorder %v1929_v54, 0.0  ;;  %v7758_v54 = vld [vmem:[#allocation82_spill] sm:$0xff] }
 0x49c   :  { %7744 = vst [vmem:[#allocation53_spill] sm:$0xff] %v5737_v37  ;;  %v2005_v0 = vsel %vm1997_vm7, %v7408_v27, 129  ;;  %v2042_v53 = vsel %vm1997_vm7, %v7408_v27, 4294967295  ;;  %vm7751_vm7 = vcmask 1046534  }
 0x49d   :  { %v2013_v11 = vrot.slane %v2005_v0, 6  ;;  %v2050_v50 = vrot.slane %v2042_v53, 6  ;;  %v7767_v0 = vld [vmem:[#allocation54_spill] sm:$0xff] }
 0x49f   :  { %v5749_v39 = vsel %vm7746_vm5, %v2013_v11, %v2012_v23  ;;  %v2051_v46 = vsel %vm7747_vm8, %v2050_v50, %v2049_v26  ;;  %v7769_v50 = vld [vmem:[#allocation56_spill] sm:$0xff] }
 0x4a0   :  { %v2053_v18 = vsel %vm7748_vm4, %v2052_v17, %v2051_v46 }
 0x4a1   :  { %v2055_v51 = vsel %vm7749_vm1, %v2054_v47, %v2053_v18  ;;  %v7773_v18 = vld [vmem:[#allocation72_spill] sm:$0xff] }
 0x4a2   :  { %v2057_v56 = vsel %vm7750_vm14, %v2056_v38, %v2055_v51 }
 0x4a3   :  { %1666 = vmax.xlane.f32.xlu1 %v5626_v35  ;;  %v2059_v34 = vsel %vm7751_vm7, %v2058_v20, %v2057_v56  ;;  %v5758_v31 = vpop.xlane.xlu2 %1708  ;;  %v7770_v20 = vld [vmem:[#allocation65_spill] sm:$0xff]  ;;  %v2006_v56 = vsel %vm1998_vm11, %v7408_v27, 129 }
 0x4a4   :  { %v2061_v1 = vsel %vm7752_vm3, %v2060_v42, %v2059_v34  ;;  %7753 = vst [vmem:[#allocation49_spill] sm:$0xff] %v5758_v31  ;;  %v2008_v34 = vsel %vm2000_vm10, %v7408_v27, 129  ;;  %vm7778_vm10 = vmmov %vm7749_vm1 }
 0x4a5   :  { %v5761_v60 = vsel %vm7754_vm9, %v2061_v1, 2147483648  ;;  %v7774_v1 = vld [vmem:[#allocation26_spill] sm:$0xff]  ;;  %v2019_v8 = vrot.slane %v2008_v34, 3 }
 0x4a6   :  { %v2064_v59 = vshra.s32 %v5761_v60, 16 }
 0x4a8   :  { %v5765_v35 = vcvt.s32.f32 %v2064_v59  ;;  %v2015_v59 = vrot.slane %v2006_v56, 5 }
 0x4aa   :  { %2067 = vmax.xlane.f32.xlu2 %v5765_v35 }
 0x4ab   :  { %1675 = vmax.xlane.f32.xlu1 %v5667_v41  ;;  %v5768_v57 = vpop.xlane.xlu2 %1717  ;;  %v7760_v41 = vld [vmem:[#allocation37_spill] sm:$0xff] }
 0x4ac   :  { %7755 = vst [vmem:[#allocation62_spill] sm:$0xff] %v5768_v57 }
 0x4b3   :  { %1684 = vmax.xlane.f32.xlu1 %v5651_v6  ;;  %v5772_v22 = vpop.xlane.xlu2 %1726 }
 0x4b4   :  { %7756 = vst [vmem:[#allocation38_spill] sm:$0xff] %v5772_v22 }
 0x4bb   :  { %1693 = vmax.xlane.f32.xlu1 %v5678_v36  ;;  %v5775_v23 = vpop.xlane.xlu2 %1735  ;;  %v7765_v36 = vld [vmem:[#allocation22_spill] sm:$0xff] }
 0x4bc   :  { %7757 = vst [vmem:[#allocation50_spill] sm:$0xff] %v5775_v23 }
 0x4c3   :  { %1702 = vmax.xlane.f32.xlu1 %v5695_v10  ;;  %v5778_v45 = vpop.xlane.xlu2 %1744  ;;  %v1476_v10 = vand.u32 65535, %v5629_v13 }
 0x4c4   :  { %7759 = vst [vmem:[#allocation59_spill] sm:$0xff] %v5778_v45 }
 0x4c5   :  { %v1478_v47 = vcvt.s32.f32 %v1476_v10 }
 0x4cb   :  { %1711 = vmax.xlane.f32.xlu1 %v7758_v54  ;;  %v5781_v17 = vpop.xlane.xlu2 %1753  ;;  %v2009_v54 = vsel %vm2001_vm15, %v7408_v27, 129  ;;  %vm7779_vm15 = vmmov %vm7750_vm14 }
 0x4cc   :  { %7761 = vst [vmem:[#allocation83_spill] sm:$0xff] %v5781_v17 }
 0x4d3   :  { %1720 = vmax.xlane.f32.xlu1 %v7760_v41  ;;  %v5785_v6 = vpop.xlane.xlu2 %1762 }
 0x4d4   :  { %7764 = vst [vmem:[#allocation55_spill] sm:$0xff] %v5785_v6 }
 0x4db   :  { %1729 = vmax.xlane.f32.xlu1 %v7762_v62  ;;  %v5788_v26 = vpop.xlane.xlu2 %1771 }
 0x4dc   :  { %7766 = vst [vmem:[#allocation58_spill] sm:$0xff] %v5788_v26 }
 0x4e3   :  { %1738 = vmax.xlane.f32.xlu1 %v7763_v19  ;;  %v5796_v24 = vpop.xlane.xlu2 %1780  ;;  %v2021_v19 = vrot.slane %v2009_v54, 2 }
 0x4e4   :  { %7768 = vst [vmem:[#allocation35_spill] sm:$0xff] %v5796_v24 }
 0x4eb   :  { %1747 = vmax.xlane.f32.xlu1 %v7765_v36  ;;  %v5806_v46 = vpop.xlane.xlu2 %1789  ;;  %v7776_v36 = vld [vmem:[#allocation75_spill] sm:$0xff] }
 0x4ec   :  { %7771 = vst [vmem:[#allocation44_spill] sm:$0xff] %v5806_v46 }
 0x4f3   :  { %1756 = vmax.xlane.f32.xlu1 %v7767_v0  ;;  %v5829_v5 = vpop.xlane.xlu2 %1798 }
 0x4f4   :  { %7775 = vst [vmem:[#allocation17_spill] sm:$0xff] %v5829_v5 }
 0x4f6   :  { %v5792_v53 = vpop.xlane.xlu1 %1480 }
 0x4f7   :  { %vm1482_vm9 = vcmp.eq.f32.partialorder %v5646_v25, %v5792_v53  ;;  %v7772_v25 = vld [vmem:[#allocation86_spill] sm:$0xff] }
 0x4f8   :  { %v1483_v11 = vsel %vm1482_vm9, %v1478_v47, -inf  ;;  %v7780_v47 = vld [vmem:[#allocation28_spill] sm:$0xff] }
 0x4f9   :  { %1484 = vmax.xlane.f32.xlu0 %v1483_v11 }
 0x4fb   :  { %1765 = vmax.xlane.f32.xlu1 %v7769_v50 }
 0x4fe   :  { %v5799_v38 = vpop.xlane.xlu1 %1639 }
 0x4ff   :  { %vm1828_vm5 = vcmp.gt.f32.partialorder %v5799_v38, 0.0 }
 0x500   :  { %v2078_v13 = vsel %vm1828_vm5, %v7770_v20, 129 }
 0x501   :  { %2145 = vperm.xlu2 %3360, %v2078_v13   ;;  %1642 = vmax.xlane.f32.xlu0 %v5450_v61  ;;  %v2007_v61 = vsel %vm1999_vm12, %v7408_v27, 129  ;;  %vm7777_vm12 = vmmov %vm7748_vm4  ;;  %v5848_v13 = vpop.xlane.xlu2 %1807 }
 0x502   :  { %v2017_v41 = vrot.slane %v2007_v61, 4  ;;  %v2016_v2 = vsel %vm7777_vm12, %v2015_v59, %v5749_v39  ;;  %vm7782_vm4 = vmmov %vm7752_vm3  ;;  %7783 = vst [vmem:[#allocation40_spill] sm:$0xff] %v5848_v13  ;;  %v7785_v39 = vld [vmem:[#allocation71_spill] sm:$0xff]  ;;  %v7788_v61 = vld [vmem:[#allocation74_spill] sm:$0xff]  ;;  %vm7792_vm3 = vcmask 523264  }
 0x503   :  { %1774 = vmax.xlane.f32.xlu1 %v7772_v25 }
 0x504   :  { %v2018_v63 = vsel %vm7778_vm10, %v2017_v41, %v2016_v2  ;;  %v2063_v2 = vand.u32 65535, %v5761_v60 }
 0x505   :  { %v2020_v0 = vsel %vm7779_vm15, %v2019_v8, %v2018_v63 }
 0x506   :  { %v5809_v42 = vpop.xlane.xlu1 %1648  ;;  %v2065_v63 = vcvt.s32.f32 %v2063_v2  ;;  %v7806_v2 = vld [vmem:[#allocation48_spill] sm:$0xff] }
 0x507   :  { %vm1831_vm8 = vcmp.gt.f32.partialorder %v5809_v42, 0.0 }
 0x508   :  { %v2081_v51 = vsel %vm1831_vm8, %v7773_v18, 129 }
 0x509   :  { %2154 = vperm.xlu2 %3360, %v2081_v51   ;;  %1651 = vmax.xlane.f32.xlu0 %v5517_v15  ;;  %v2010_v15 = vsel %vm2002_vm0, %v7408_v27, 129  ;;  %vm7781_vm0 = vmmov %vm7751_vm7  ;;  %v5861_v56 = vpop.xlane.xlu2 %1816 }
 0x50a   :  { %v2023_v52 = vrot.slane %v2010_v15, 1  ;;  %v2022_v11 = vsel %vm7781_vm0, %v2021_v19, %v2020_v0  ;;  %7787 = vst [vmem:[#allocation57_spill] sm:$0xff] %v5861_v56  ;;  %v7794_v15 = vld [vmem:[#allocation16_spill] sm:$0xff] }
 0x50b   :  { %1783 = vmax.xlane.f32.xlu1 %v7774_v1  ;;  %v7789_v1 = vld [vmem:[#allocation39_spill] sm:$0xff] }
 0x50c   :  { %v2024_v50 = vsel %vm7782_vm4, %v2023_v52, %v2022_v11  ;;  %v7796_v52 = vld [vmem:[#allocation70_spill] sm:$0xff] }
 0x50d   :  { %v5875_v54 = vsel %vm7792_vm3, %v2024_v50, 2147483647  ;;  %v7800_v50 = vld [vmem:[#allocation32_spill] sm:$0xff] }
 0x50e   :  { %v5834_v62 = vpop.xlane.xlu1 %1657 }
 0x50f   :  { %vm1834_vm11 = vcmp.gt.f32.partialorder %v5834_v62, 0.0 }
 0x510   :  { %v2084_v10 = vsel %vm1834_vm11, %v7776_v36, 129 }
 0x511   :  { %2163 = vperm.xlu2 %3360, %v2084_v10   ;;  %1660 = vmax.xlane.f32.xlu0 %v7723_v12  ;;  %v5878_v41 = vpop.xlane.xlu2 %1825 }
 0x512   :  { %7793 = vst [vmem:[#allocation64_spill] sm:$0xff] %v5878_v41 }
 0x513   :  { %1792 = vmax.xlane.f32.xlu1 %v7780_v47  ;;  %v7798_v47 = vld [vmem:[#allocation73_spill] sm:$0xff] }
 0x516   :  { %v5850_v25 = vpop.xlane.xlu1 %1666 }
 0x517   :  { %7784 = vst [vmem:[#allocation80_spill] sm:$0xff] %v5850_v25  ;;  %vm7251_vm1 = vcmp.gt.f32.partialorder %v5850_v25, 0.0 }
 0x518   :  { %v2087_v12 = vsel %vm7251_vm1, %v7785_v39, 129 }
 0x519   :  { %2172 = vperm.xlu2 %3360, %v2087_v12   ;;  %1669 = vmax.xlane.f32.xlu0 %v5632_v28 }
 0x51b   :  { %1801 = vmax.xlane.f32.xlu1 %v5604_v9  ;;  %v7791_v9 = vld [vmem:[#allocation69_spill] sm:$0xff] }
 0x51e   :  { %v5858_v51 = vpop.xlane.xlu1 %1675 }
 0x51f   :  { %7786 = vst [vmem:[#allocation61_spill] sm:$0xff] %v5858_v51  ;;  %vm7247_vm14 = vcmp.gt.f32.partialorder %v5858_v51, 0.0 }
 0x520   :  { %v2090_v34 = vsel %vm7247_vm14, %v7788_v61, 129 }
 0x521   :  { %2181 = vperm.xlu2 %3360, %v2090_v34   ;;  %1678 = vmax.xlane.f32.xlu0 %v5670_v49  ;;  %v2027_v49 = vshra.s32 %v5875_v54, 16  ;;  %v7802_v34 = vld [vmem:[#allocation43_spill] sm:$0xff] }
 0x523   :  { %1810 = vmax.xlane.f32.xlu1 %v7789_v1  ;;  %v5885_v19 = vcvt.s32.f32 %v2027_v49 }
 0x526   :  { %v5868_v59 = vpop.xlane.xlu1 %1684 }
 0x527   :  { %7790 = vst [vmem:[#allocation41_spill] sm:$0xff] %v5868_v59  ;;  %vm7243_vm7 = vcmp.gt.f32.partialorder %v5868_v59, 0.0 }
 0x528   :  { %v2093_v28 = vsel %vm7243_vm7, %v7791_v9, 129 }
 0x529   :  { %2190 = vperm.xlu2 %3360, %v2093_v28   ;;  %1687 = vmax.xlane.f32.xlu0 %v5654_v21  ;;  %v5892_v21 = vpop.xlane.xlu2 %2067 }
 0x52a   :  { %vm2069_vm12 = vcmp.eq.f32.partialorder %v5765_v35, %v5892_v21 }
 0x52b   :  { %1819 = vmax.xlane.f32.xlu1 %v7794_v15  ;;  %v2070_v60 = vsel %vm2069_vm12, %v2065_v63, -inf  ;;  %v7804_v15 = vld [vmem:[#allocation18_spill] sm:$0xff] }
 0x52e   :  { %v5882_v8 = vpop.xlane.xlu1 %1693 }
 0x52f   :  { %7795 = vst [vmem:[#allocation60_spill] sm:$0xff] %v5882_v8  ;;  %vm7241_vm9 = vcmp.gt.f32.partialorder %v5882_v8, 0.0 }
 0x530   :  { %v2096_v10 = vsel %vm7241_vm9, %v7796_v52, 129 }
 0x531   :  { %2199 = vperm.xlu2 %3360, %v2096_v10   ;;  %1696 = vmax.xlane.f32.xlu0 %v5682_v30 }
 0x533   :  { %2030 = vmin.xlane.f32.xlu1 %v5885_v19 }
 0x536   :  { %v5897_v0 = vpop.xlane.xlu1 %1702 }
 0x537   :  { %7797 = vst [vmem:[#allocation77_spill] sm:$0xff] %v5897_v0  ;;  %vm7239_vm10 = vcmp.gt.f32.partialorder %v5897_v0, 0.0 }
 0x538   :  { %v2099_v11 = vsel %vm7239_vm10, %v7798_v47, 129 }
 0x539   :  { %2208 = vperm.xlu2 %3360, %v2099_v11   ;;  %1705 = vmax.xlane.f32.xlu0 %v5700_v43 }
 0x53b   :  { %2071 = vmax.xlane.f32.xlu1 %v2070_v60  ;;  %v7808_v60 = vld [vmem:[#allocation51_spill] sm:$0xff] }
 0x53e   :  { %v5904_v30 = vpop.xlane.xlu1 %1711 }
 0x53f   :  { %7799 = vst [vmem:[#allocation29_spill] sm:$0xff] %v5904_v30  ;;  %vm7238_vm15 = vcmp.gt.f32.partialorder %v5904_v30, 0.0 }
 0x540   :  { %v2102_v35 = vsel %vm7238_vm15, %v7770_v20, 129 }
 0x541   :  { %2217 = vperm.xlu2 %3360, %v2102_v35   ;;  %1714 = vmax.xlane.f32.xlu0 %v7800_v50 }
 0x546   :  { %v5911_v12 = vpop.xlane.xlu1 %1720 }
 0x547   :  { %7801 = vst [vmem:[#allocation63_spill] sm:$0xff] %v5911_v12  ;;  %vm7237_vm0 = vcmp.gt.f32.partialorder %v5911_v12, 0.0 }
 0x548   :  { %v2105_v43 = vsel %vm7237_vm0, %v7773_v18, 129  ;;  %vm7813_vm0 = vcmask 7168  }
 0x549   :  { %2226 = vperm.xlu2 %3360, %v2105_v43   ;;  %1723 = vmax.xlane.f32.xlu0 %v7802_v34  ;;  %v1487_v43 = vcvt.f32.s32 %v5792_v53  ;;  %v7810_v34 = vld [vmem:[#allocation24_spill] sm:$0xff] }
 0x54e   :  { %v5918_v1 = vpop.xlane.xlu1 %1729 }
 0x54f   :  { %7803 = vst [vmem:[#allocation81_spill] sm:$0xff] %v5918_v1  ;;  %vm7232_vm4 = vcmp.gt.f32.partialorder %v5918_v1, 0.0 }
 0x550   :  { %v2108_v28 = vsel %vm7232_vm4, %v7776_v36, 129 }
 0x551   :  { %2235 = vperm.xlu2 %3360, %v2108_v28   ;;  %1732 = vmax.xlane.f32.xlu0 %v7804_v15  ;;  %v1488_v15 = vshll.u32 %v1487_v43, 16 }
 0x556   :  { %v5925_v49 = vpop.xlane.xlu1 %1738 }
 0x557   :  { %7805 = vst [vmem:[#allocation33_spill] sm:$0xff] %v5925_v49  ;;  %vm7235_vm3 = vcmp.gt.f32.partialorder %v5925_v49, 0.0  ;;  %v7812_v49 = vld [vmem:[#allocation25_spill] sm:$0xff] }
 0x558   :  { %v2111_v10 = vsel %vm7235_vm3, %v7785_v39, 129 }
 0x559   :  { %2244 = vperm.xlu2 %3360, %v2111_v10   ;;  %1741 = vmax.xlane.f32.xlu0 %v7806_v2  ;;  %v1499_v2 = vld [vmem:[#allocation4] sm:$0xff] }
 0x55e   :  { %v5932_v63 = vpop.xlane.xlu1 %1747 }
 0x55f   :  { %7807 = vst [vmem:[#allocation67_spill] sm:$0xff] %v5932_v63  ;;  %vm7233_vm12 = vcmp.gt.f32.partialorder %v5932_v63, 0.0 }
 0x560   :  { %v2114_v11 = vsel %vm7233_vm12, %v7788_v61, 129 }
 0x561   :  { %2253 = vperm.xlu2 %3360, %v2114_v11   ;;  %1750 = vmax.xlane.f32.xlu0 %v7808_v60 }
 0x566   :  { %v5939_v35 = vpop.xlane.xlu1 %1756 }
 0x567   :  { %7809 = vst [vmem:[#allocation76_spill] sm:$0xff] %v5939_v35  ;;  %vm7263_vm4 = vcmp.gt.f32.partialorder %v5939_v35, 0.0 }
 0x568   :  { %v2117_v50 = vsel %vm7263_vm4, %v7791_v9, 129  ;;  %vm7832_vm4 = vcmask 7168  }
 0x569   :  { %2262 = vperm.xlu2 %3360, %v2117_v50   ;;  %1759 = vmax.xlane.f32.xlu0 %v7810_v34 }
 0x56c   :  { %v1485_v28 = vpop.xlane.xlu0 %1484 }
 0x56d   :  { %v1486_v10 = vcvt.f32.s32 %v1485_v28 }
 0x56e   :  { %v5947_v11 = vpop.xlane.xlu1 %1765 }
 0x56f   :  { %7811 = vst [vmem:[#allocation85_spill] sm:$0xff] %v5947_v11  ;;  %v1489_v60 = vadd.s32 %v1488_v15, %v1486_v10  ;;  %vm7258_vm12 = vcmp.gt.f32.partialorder %v5947_v11, 0.0 }
 0x570   :  { %v2120_v63 = vsel %vm7258_vm12, %v7796_v52, 129  ;;  %vm7264_vm12 = vcmp.gt.f32.partialorder %v5758_v31, 0.0 }
 0x571   :  { %vm1500_vm3 = vcmp.gt.s32.totalorder %v1499_v2, %v1489_v60  ;;  %2271 = vperm.xlu2 %3360, %v2120_v63   ;;  %1768 = vmax.xlane.f32.xlu0 %v7812_v49 }
 0x572   :  { %v1501_v53 = vsel %vm1500_vm3, %v1499_v2, %v1489_v60  ;;  %v7817_v2 = vld [vmem:[#allocation27_spill] sm:$0xff] }
 0x573   :  { %1502 = vst.msk [vmem:[#allocation4] sm:$0xff] %vm7813_vm0, %v1501_v53  ;;  %vm7252_vm0 = vcmp.gt.f32.partialorder %v5483_v40, 0.0 }
 0x574   :  { %v5955_v50 = vpop.xlane.xlu0 %1642  ;;  %v2083_v28 = vsel %vm7252_vm0, %v7798_v47, 129  ;;  %vm7265_vm0 = vcmp.gt.f32.partialorder %v5737_v37, 0.0 }
 0x575   :  { %vm1829_vm15 = vcmp.gt.f32.partialorder %v5955_v50, 0.0  ;;  %v2098_v30 = vsel %vm7265_vm0, %v7788_v61, 129  ;;  %vm7267_vm0 = vcmp.gt.f32.partialorder %v5772_v22, 0.0 }
 0x576   :  { %v2079_v43 = vsel %vm1829_vm15, %v7785_v39, 129  ;;  %v5961_v34 = vpop.xlane.xlu1 %1774 }
 0x577   :  { %7814 = vst [vmem:[#allocation23_spill] sm:$0xff] %v5961_v34  ;;  %vm7240_vm10 = vcmp.gt.f32.partialorder %v5961_v34, 0.0  ;;  %2148 = vperm.xlu1 %3361, %v2079_v43  }
 0x578   :  { %v2123_v49 = vsel %vm7240_vm10, %v7798_v47, 129  ;;  %vm1836_vm10 = vcmp.gt.f32.partialorder %v5567_v58, 0.0 }
 0x579   :  { %2280 = vperm.xlu2 %3360, %v2123_v49   ;;  %1777 = vmax.xlane.f32.xlu0 %v5591_v44  ;;  %v2086_v60 = vsel %vm1836_vm10, %v7770_v20, 129  ;;  %v7819_v49 = vld [vmem:[#allocation31_spill] sm:$0xff] }
 0x57c   :  { %v5969_v63 = vpop.xlane.xlu0 %1651 }
 0x57d   :  { %7815 = vst [vmem:[#allocation79_spill] sm:$0xff] %v5969_v63 }
 0x57e   :  { %v5974_v15 = vpop.xlane.xlu1 %1783 }
 0x57f   :  { %7816 = vst [vmem:[#allocation78_spill] sm:$0xff] %v5974_v15  ;;  %vm7242_vm3 = vcmp.gt.f32.partialorder %v5974_v15, 0.0  ;;  %2160 = vperm.xlu1 %3361, %v2083_v28  }
 0x580   :  { %v2126_v10 = vsel %vm7242_vm3, %v7770_v20, 129  ;;  %vm1839_vm3 = vcmp.gt.f32.partialorder %v5641_v4, 0.0 }
 0x581   :  { %2289 = vperm.xlu2 %3360, %v2126_v10   ;;  %1786 = vmax.xlane.f32.xlu0 %v7817_v2  ;;  %v2089_v10 = vsel %vm1839_vm3, %v7773_v18, 129 }
 0x584   :  { %v5982_v44 = vpop.xlane.xlu0 %1660 }
 0x586   :  { %v5987_v53 = vpop.xlane.xlu1 %1792 }
 0x587   :  { %7818 = vst [vmem:[#allocation84_spill] sm:$0xff] %v5987_v53  ;;  %vm7244_vm9 = vcmp.gt.f32.partialorder %v5987_v53, 0.0  ;;  %2169 = vperm.xlu1 %3361, %v2086_v60  }
 0x588   :  { %v2129_v43 = vsel %vm7244_vm9, %v7773_v18, 129  ;;  %vm7275_vm9 = vcmp.gt.f32.partialorder %v5687_v16, 0.0 }
 0x589   :  { %2298 = vperm.xlu2 %3360, %v2129_v43   ;;  %1795 = vmax.xlane.f32.xlu0 %v7819_v49  ;;  %v7822_v43 = vld [vmem:[#allocation36_spill] sm:$0xff]  ;;  %v2092_v34 = vsel %vm7275_vm9, %v7776_v36, 129  ;;  %vm7284_vm9 = vcmp.gt.f32.partialorder %v5788_v26, 0.0 }
 0x58c   :  { %v5995_v28 = vpop.xlane.xlu0 %1669 }
 0x58d   :  { %7820 = vst [vmem:[#allocation15_spill] sm:$0xff] %v5995_v28 }
 0x58e   :  { %v6000_v2 = vpop.xlane.xlu1 %1801 }
 0x58f   :  { %7821 = vst [vmem:[#allocation47_spill] sm:$0xff] %v6000_v2  ;;  %vm7248_vm7 = vcmp.gt.f32.partialorder %v6000_v2, 0.0  ;;  %2178 = vperm.xlu1 %3361, %v2089_v10  }
 0x590   :  { %v2132_v60 = vsel %vm7248_vm7, %v7776_v36, 129  ;;  %vm7269_vm7 = vcmp.gt.f32.partialorder %v5707_v29, 0.0 }
 0x591   :  { %2307 = vperm.xlu2 %3360, %v2132_v60   ;;  %1804 = vmax.xlane.f32.xlu0 %v7822_v43  ;;  %v7825_v60 = vld [vmem:[#allocation42_spill] sm:$0xff]  ;;  %v2095_v2 = vsel %vm7269_vm7, %v7785_v39, 129  ;;  %vm7274_vm7 = vcmp.gt.f32.partialorder %v5781_v17, 0.0 }
 0x594   :  { %v6008_v49 = vpop.xlane.xlu0 %1678 }
 0x595   :  { %7823 = vst [vmem:[#allocation30_spill] sm:$0xff] %v6008_v49 }
 0x596   :  { %v6013_v53 = vpop.xlane.xlu1 %1810 }
 0x597   :  { %7824 = vst [vmem:[#allocation34_spill] sm:$0xff] %v6013_v53  ;;  %vm7257_vm14 = vcmp.gt.f32.partialorder %v6013_v53, 0.0  ;;  %2187 = vperm.xlu1 %3361, %v2092_v34  }
 0x598   :  { %v2135_v10 = vsel %vm7257_vm14, %v7785_v39, 129 }
 0x599   :  { %2316 = vperm.xlu2 %3360, %v2135_v10   ;;  %1813 = vmax.xlane.f32.xlu0 %v7825_v60  ;;  %v2026_v10 = vand.u32 65535, %v5875_v54  ;;  %v7828_v60 = vld [vmem:[#allocation45_spill] sm:$0xff]  ;;  %v2074_v54 = vcvt.f32.s32 %v5892_v21 }
 0x59b   :  { %v2028_v12 = vcvt.s32.f32 %v2026_v10  ;;  %v2101_v10 = vsel %vm7264_vm12, %v7791_v9, 129  ;;  %v2075_v8 = vshll.u32 %v2074_v54, 16  ;;  %v7835_v54 = vld [vmem:[#allocation87_spill] sm:$0xff] }
 0x59c   :  { %v6021_v43 = vpop.xlane.xlu0 %1687 }
 0x59d   :  { %7826 = vst [vmem:[#allocation46_spill] sm:$0xff] %v6021_v43 }
 0x59e   :  { %v6026_v15 = vpop.xlane.xlu1 %1819 }
 0x59f   :  { %7827 = vst [vmem:[#allocation82_spill] sm:$0xff] %v6026_v15  ;;  %vm7262_vm1 = vcmp.gt.f32.partialorder %v6026_v15, 0.0  ;;  %2196 = vperm.xlu1 %3361, %v2095_v2  }
 0x5a0   :  { %v2138_v34 = vsel %vm7262_vm1, %v7788_v61, 129  ;;  %vm7266_vm1 = vcmp.gt.f32.partialorder %v5768_v57, 0.0 }
 0x5a1   :  { %2325 = vperm.xlu2 %3360, %v2138_v34   ;;  %1822 = vmax.xlane.f32.xlu0 %v7828_v60  ;;  %v2104_v21 = vsel %vm7266_vm1, %v7796_v52, 129  ;;  %vm7271_vm1 = vcmp.gt.f32.partialorder %v5969_v63, 0.0 }
 0x5a4   :  { %v6035_v1 = vpop.xlane.xlu0 %1696 }
 0x5a5   :  { %7829 = vst [vmem:[#allocation37_spill] sm:$0xff] %v6035_v1 }
 0x5a6   :  { %v6040_v0 = vpop.xlane.xlu1 %2030 }
 0x5a7   :  { %2205 = vperm.xlu1 %3361, %v2098_v30   ;;  %vm2032_vm14 = vcmp.eq.f32.partialorder %v5885_v19, %v6040_v0  ;;  %v2889_v30 = vld [vmem:[#allocation5 + $0x8] sm:$0xff] }
 0x5a8   :  { %v2033_v2 = vsel %vm2032_vm14, %v2028_v12, inf }
 0x5a9   :  { %2034 = vmin.xlane.f32.xlu0 %v2033_v2  ;;  %v7833_v2 = vld [vmem:[#allocation68_spill] sm:$0xff] }
 0x5aa   :  { %vm1827_vm12 = vcmp.gt.f32.partialorder %v7833_v2, 0.0 }
 0x5ac   :  { %v6046_v34 = vpop.xlane.xlu0 %1705 }
 0x5ad   :  { %7830 = vst [vmem:[#allocation66_spill] sm:$0xff] %v6046_v34 }
 0x5ae   :  { %v2072_v60 = vpop.xlane.xlu1 %2071 }
 0x5af   :  { %v2073_v59 = vcvt.f32.s32 %v2072_v60  ;;  %2214 = vperm.xlu1 %3361, %v2101_v10  }
 0x5b1   :  { %v2076_v51 = vadd.s32 %v2075_v8, %v2073_v59  ;;  %v2077_v59 = vsel %vm1827_vm12, %v7791_v9, 129 }
 0x5b3   :  { %vm2890_vm14 = vcmp.gt.s32.totalorder %v2889_v30, %v2076_v51 }
 0x5b4   :  { %v2891_v19 = vsel %vm2890_vm14, %v2889_v30, %v2076_v51  ;;  %v6052_v12 = vpop.xlane.xlu0 %1714  ;;  %v2107_v51 = vsel %vm7267_vm0, %v7798_v47, 129  ;;  %vm7268_vm14 = vcmp.gt.f32.partialorder %v5775_v23, 0.0  ;;  %vm7272_vm0 = vcmp.gt.f32.partialorder %v5778_v45, 0.0 }
 0x5b5   :  { %7831 = vst [vmem:[#allocation19_spill] sm:$0xff] %v6052_v12  ;;  %v2110_v30 = vsel %vm7268_vm14, %v7770_v20, 129  ;;  %vm1835_vm14 = vcmp.gt.f32.partialorder %v5982_v44, 0.0 }
 0x5b6   :  { %2892 = vst.msk [vmem:[#allocation5 + $0x8] sm:$0xff] %vm7832_vm4, %v2891_v19  ;;  %vm1830_vm4 = vcmp.gt.f32.partialorder %v7835_v54, 0.0  ;;  %v2082_v19 = vsel %vm7271_vm1, %v7788_v61, 129  ;;  %vm7279_vm1 = vcmp.gt.f32.partialorder %v5995_v28, 0.0 }
 0x5b7   :  { %2223 = vperm.xlu1 %3361, %v2104_v21   ;;  %v2080_v10 = vsel %vm1830_vm4, %v7796_v52, 129  ;;  %v2478_v50 = vsel %vm1830_vm4, %v7796_v52, 4294967295 }
 0x5bc   :  { %v6063_v8 = vpop.xlane.xlu0 %1723 }
 0x5bd   :  { %7834 = vst [vmem:[#allocation22_spill] sm:$0xff] %v6063_v8  ;;  %2142 = vperm.xlu0 %3359, %v2077_v59   ;;  %v2113_v59 = vsel %vm7272_vm0, %v7773_v18, 129  ;;  %vm7278_vm0 = vcmp.gt.f32.partialorder %v5785_v6, 0.0 }
 0x5bf   :  { %2232 = vperm.xlu1 %3361, %v2107_v51   ;;  %v6088_v51 = vpop.permute.xlu2 %2145 }
 0x5c0   :  { %v2334_v38 = vperm.slane %v6088_v51, %v4510_v55 }
 0x5c4   :  { %v6073_v60 = vpop.xlane.xlu0 %1732 }
 0x5c5   :  { %7836 = vst [vmem:[#allocation54_spill] sm:$0xff] %v6073_v60  ;;  %2151 = vperm.xlu0 %3359, %v2080_v10   ;;  %v2085_v10 = vsel %vm1835_vm14, %v7791_v9, 129 }
 0x5c7   :  { %2241 = vperm.xlu1 %3361, %v2110_v30   ;;  %v6100_v25 = vpop.permute.xlu2 %2154 }
 0x5cc   :  { %v6083_v21 = vpop.xlane.xlu0 %1741 }
 0x5cd   :  { %7837 = vst [vmem:[#allocation56_spill] sm:$0xff] %v6083_v21  ;;  %2157 = vperm.xlu0 %3359, %v2082_v19   ;;  %v2116_v19 = vsel %vm7274_vm7, %v7776_v36, 129  ;;  %vm7283_vm7 = vcmp.gt.f32.partialorder %v6008_v49, 0.0 }
 0x5ce   :  { %v2091_v53 = vsel %vm7283_vm7, %v7798_v47, 129  ;;  %vm7294_vm7 = vcmp.gt.f32.partialorder %v6035_v1, 0.0 }
 0x5cf   :  { %2250 = vperm.xlu1 %3361, %v2113_v59   ;;  %v2088_v59 = vsel %vm7279_vm1, %v7796_v52, 129  ;;  %vm7289_vm1 = vcmp.gt.f32.partialorder %v5796_v24, 0.0 }
 0x5d4   :  { %v6095_v30 = vpop.xlane.xlu0 %1750 }
 0x5d5   :  { %2166 = vperm.xlu0 %3359, %v2085_v10   ;;  %v2119_v10 = vsel %vm7278_vm0, %v7785_v39, 129  ;;  %vm7288_vm0 = vcmp.gt.f32.partialorder %v6021_v43, 0.0  ;;  %v2097_v43 = vsel %vm7294_vm7, %v7773_v18, 129  ;;  %vm7302_vm7 = vcmp.gt.f32.partialorder %v5848_v13, 0.0 }
 0x5d6   :  { %v2094_v6 = vsel %vm7288_vm0, %v7770_v20, 129  ;;  %vm7298_vm0 = vcmp.gt.f32.partialorder %v6046_v34, 0.0 }
 0x5d7   :  { %2259 = vperm.xlu1 %3361, %v2116_v19   ;;  %v6114_v19 = vpop.permute.xlu2 %2163  ;;  %v2100_v1 = vsel %vm7298_vm0, %v7776_v36, 129  ;;  %vm1887_vm0 = vcmp.gt.f32.partialorder %v5861_v56, 0.0 }
 0x5dc   :  { %v6107_v40 = vpop.xlane.xlu0 %1759 }
 0x5dd   :  { %2175 = vperm.xlu0 %3359, %v2088_v59   ;;  %v2122_v59 = vsel %vm7284_vm9, %v7788_v61, 129  ;;  %vm7293_vm9 = vcmp.gt.f32.partialorder %v5806_v46, 0.0 }
 0x5df   :  { %2268 = vperm.xlu1 %3361, %v2119_v10   ;;  %v6133_v28 = vpop.permute.xlu2 %2172 }
 0x5e4   :  { %v6119_v11 = vpop.xlane.xlu0 %1768 }
 0x5e5   :  { %2184 = vperm.xlu0 %3359, %v2091_v53   ;;  %v2125_v53 = vsel %vm7289_vm1, %v7791_v9, 129  ;;  %vm7297_vm1 = vcmp.gt.f32.partialorder %v5829_v5, 0.0 }
 0x5e7   :  { %2277 = vperm.xlu1 %3361, %v2122_v59   ;;  %v6150_v15 = vpop.permute.xlu2 %2181 }
 0x5e9   :  { %v6125_v10 = vpop.permute.xlu1 %2148 }
 0x5ea   :  { %v2336_v51 = vperm.slane %v6125_v10, %v4513_v48 }
 0x5ec   :  { %v6131_v49 = vpop.xlane.xlu0 %1777 }
 0x5ed   :  { %2193 = vperm.xlu0 %3359, %v2094_v6   ;;  %v2128_v6 = vsel %vm7293_vm9, %v7796_v52, 129  ;;  %vm7303_vm9 = vcmp.gt.f32.partialorder %v6052_v12, 0.0 }
 0x5ee   :  { %v2103_v34 = vsel %vm7303_vm9, %v7785_v39, 129  ;;  %vm7316_vm9 = vcmp.gt.f32.partialorder %v5878_v41, 0.0  ;;  %v2879_v41 = vld [vmem:[#allocation3 + $0x8] sm:$0xff] }
 0x5ef   :  { %2286 = vperm.xlu1 %3361, %v2125_v53   ;;  %v6164_v46 = vpop.permute.xlu2 %2190 }
 0x5f1   :  { %v6139_v59 = vpop.permute.xlu1 %2160 }
 0x5f4   :  { %v6145_v63 = vpop.xlane.xlu0 %1786 }
 0x5f5   :  { %2202 = vperm.xlu0 %3359, %v2097_v43   ;;  %v2131_v43 = vsel %vm7297_vm1, %v7798_v47, 129  ;;  %vm7307_vm1 = vcmp.gt.f32.partialorder %v6063_v8, 0.0  ;;  %vm1877_vm4 = vcmp.gt.f32.partialorder %v6145_v63, 0.0 }
 0x5f6   :  { %v2106_v12 = vsel %vm7307_vm1, %v7788_v61, 129  ;;  %vm7320_vm1 = vcmp.gt.f32.partialorder %v6083_v21, 0.0  ;;  %v2127_v42 = vsel %vm1877_vm4, %v7785_v39, 129 }
 0x5f7   :  { %2295 = vperm.xlu1 %3361, %v2128_v6   ;;  %v6182_v5 = vpop.permute.xlu2 %2199 }
 0x5f9   :  { %v6153_v53 = vpop.permute.xlu1 %2169 }
 0x5fc   :  { %v6159_v17 = vpop.xlane.xlu0 %1795 }
 0x5fd   :  { %2211 = vperm.xlu0 %3359, %v2100_v1   ;;  %v2134_v1 = vsel %vm7302_vm7, %v7770_v20, 129  ;;  %vm7315_vm7 = vcmp.gt.f32.partialorder %v6073_v60, 0.0  ;;  %v2112_v60 = vsel %vm7320_vm1, %v7796_v52, 129  ;;  %vm7838_vm1 = vcmask 7168  }
 0x5fe   :  { %v2109_v13 = vsel %vm7315_vm7, %v7791_v9, 129  ;;  %vm1865_vm7 = vcmp.gt.f32.partialorder %v6095_v30, 0.0 }
 0x5ff   :  { %2304 = vperm.xlu1 %3361, %v2131_v43   ;;  %v6201_v35 = vpop.permute.xlu2 %2208 }
 0x601   :  { %v6167_v6 = vpop.permute.xlu1 %2178 }
 0x604   :  { %v6173_v26 = vpop.xlane.xlu0 %1804 }
 0x605   :  { %2220 = vperm.xlu0 %3359, %v2103_v34   ;;  %v2137_v34 = vsel %vm1887_vm0, %v7773_v18, 129 }
 0x607   :  { %2313 = vperm.xlu1 %3361, %v2134_v1  }
 0x609   :  { %v6179_v43 = vpop.permute.xlu1 %2187 }
 0x60c   :  { %v6187_v24 = vpop.xlane.xlu0 %1813 }
 0x60d   :  { %2229 = vperm.xlu0 %3359, %v2106_v12   ;;  %v2140_v12 = vsel %vm7316_vm9, %v7776_v36, 129 }
 0x60f   :  { %2322 = vperm.xlu1 %3361, %v2137_v34   ;;  %v2037_v34 = vcvt.f32.s32 %v6040_v0 }
 0x611   :  { %v6193_v1 = vpop.permute.xlu1 %2196  ;;  %v2038_v23 = vshll.u32 %v2037_v34, 16 }
 0x614   :  { %v6199_v8 = vpop.xlane.xlu0 %1822 }
 0x615   :  { %2238 = vperm.xlu0 %3359, %v2109_v13   ;;  %v2475_v13 = vsel %vm1827_vm12, %v7791_v9, 4294967295  ;;  %vm7321_vm12 = vcmp.gt.f32.partialorder %v6107_v40, 0.0 }
 0x617   :  { %2331 = vperm.xlu1 %3361, %v2140_v12   ;;  %v2218_v12 = vpop.permute.xlu2 %2217 }
 0x618   :  { %v2379_v31 = vperm.slane %v2218_v12, %v4510_v55 }
 0x619   :  { %v6208_v56 = vpop.permute.xlu1 %2205 }
 0x61c   :  { %v2035_v45 = vpop.xlane.xlu0 %2034 }
 0x61d   :  { %v2036_v22 = vcvt.f32.s32 %v2035_v45  ;;  %2247 = vperm.xlu0 %3359, %v2112_v60   ;;  %v2115_v45 = vsel %vm1865_vm7, %v7798_v47, 129 }
 0x61f   :  { %v2039_v57 = vadd.s32 %v2038_v23, %v2036_v22  ;;  %2540 = vperm.xlu1 %3361, %v2475_v13   ;;  %v2476_v22 = vsel %vm1828_vm5, %v7770_v20, 4294967295  ;;  %v2118_v23 = vsel %vm7321_vm12, %v7770_v20, 129  ;;  %vm1871_vm5 = vcmp.gt.f32.partialorder %v6119_v11, 0.0 }
 0x620   :  { %v2121_v34 = vsel %vm1871_vm5, %v7773_v18, 129  ;;  %vm7841_vm12 = vcmask 326912  }
 0x621   :  { %vm2880_vm9 = vcmp.lt.s32.totalorder %v2879_v41, %v2039_v57  ;;  %v2215_v0 = vpop.permute.xlu1 %2214 }
 0x622   :  { %v2881_v21 = vsel %vm2880_vm9, %v2879_v41, %v2039_v57  ;;  %v2378_v37 = vperm.slane %v2215_v0, %v7408_v27  ;;  %v2340_v0 = vperm.slane %v6100_v25, %v4527_v14  ;;  %vm7839_vm9 = vcmask 195712  }
 0x623   :  { %2882 = vst.msk [vmem:[#allocation3 + $0x8] sm:$0xff] %vm7838_vm1, %v2881_v21  ;;  %vm1874_vm1 = vcmp.gt.f32.partialorder %v6131_v49, 0.0  ;;  %v7975_v49 = vld [vmem:[#allocation47_spill] sm:$0xff] }
 0x624   :  { %v6224_v2 = vsel %vm939_vm2, %v2379_v31, %v2378_v37  ;;  %v2477_v37 = vsel %vm1829_vm15, %v7785_v39, 4294967295  ;;  %vm7840_vm15 = vcmask 261312   ;;  %v2124_v10 = vsel %vm1874_vm1, %v7776_v36, 129 }
 0x625   :  { %2256 = vperm.xlu0 %3359, %v2115_v45  }
 0x627   :  { %2543 = vperm.xlu1 %3361, %v2476_v22  }
 0x629   :  { %v6230_v57 = vpop.permute.xlu1 %2223 }
 0x62d   :  { %2265 = vperm.xlu0 %3359, %v2118_v23  }
 0x62f   :  { %v2143_v31 = vpop.permute.xlu0 %2142  ;;  %2546 = vperm.xlu1 %3361, %v2477_v37   ;;  %v2479_v37 = vsel %vm1831_vm8, %v7773_v18, 4294967295  ;;  %vm7842_vm8 = vcmask 523712  }
 0x630   :  { %v2333_v41 = vperm.slane %v2143_v31, %v7408_v27 }
 0x631   :  { %v6242_v60 = vpop.permute.xlu1 %2232 }
 0x632   :  { %v2335_v21 = vsel %vm939_vm2, %v2334_v38, %v2333_v41  ;;  %v2344_v38 = vperm.slane %v6139_v59, %v4561_v33  ;;  %v2482_v59 = vsel %vm1834_vm11, %v7776_v36, 4294967295  ;;  %vm1883_vm11 = vcmp.gt.f32.partialorder %v6173_v26, 0.0  ;;  %v7965_v26 = vld [vmem:[#allocation84_spill] sm:$0xff] }
 0x633   :  { %v2337_v45 = vsel %vm7839_vm9, %v2336_v51, %v2335_v21  ;;  %v2346_v21 = vperm.slane %v6114_v19, %v4564_v32  ;;  %v2349_v19 = vperm.slane %v6153_v53, %v4510_v55  ;;  %v2483_v53 = vsel %vm1835_vm14, %v7791_v9, 4294967295 }
 0x634   :  { %v2133_v44 = vsel %vm1883_vm11, %v7791_v9, 129  ;;  %vm1886_vm14 = vcmp.gt.f32.partialorder %v6187_v24, 0.0 }
 0x635   :  { %2274 = vperm.xlu0 %3359, %v2121_v34   ;;  %v2136_v58 = vsel %vm1886_vm14, %v7796_v52, 129 }
 0x637   :  { %v2152_v13 = vpop.permute.xlu0 %2151  ;;  %2549 = vperm.xlu1 %3361, %v2478_v50  }
 0x638   :  { %v2338_v12 = vperm.slane %v2152_v13, %v4534_v7 }
 0x639   :  { %v6258_v22 = vpop.permute.xlu1 %2241 }
 0x63a   :  { %v2339_v23 = vsel %vm7840_vm15, %v2338_v12, %v2337_v45 }
 0x63b   :  { %v2341_v54 = vsel %vm7841_vm12, %v2340_v0, %v2339_v23  ;;  %v2351_v0 = vperm.slane %v6133_v28, %v4513_v48  ;;  %vm1880_vm12 = vcmp.gt.f32.partialorder %v6159_v17, 0.0 }
 0x63c   :  { %v2130_v62 = vsel %vm1880_vm12, %v7788_v61, 129 }
 0x63d   :  { %2283 = vperm.xlu0 %3359, %v2124_v10  }
 0x63f   :  { %v2158_v25 = vpop.permute.xlu0 %2157  ;;  %2552 = vperm.xlu1 %3361, %v2479_v37   ;;  %v2355_v37 = vperm.slane %v6167_v6, %v4527_v14  ;;  %v2484_v6 = vsel %vm1836_vm10, %v7770_v20, 4294967295  ;;  %vm7845_vm10 = vcmask 1041409  }
 0x640   :  { %v2342_v31 = vperm.slane %v2158_v25, %v4539_v3 }
 0x641   :  { %v6272_v41 = vpop.permute.xlu1 %2250 }
 0x642   :  { %v2343_v34 = vsel %vm955_vm13, %v2342_v31, %v2341_v54  ;;  %v2357_v31 = vperm.slane %v6150_v15, %v4539_v3  ;;  %v2361_v15 = vperm.slane %v6179_v43, %v4564_v32 }
 0x643   :  { %v2345_v50 = vsel %vm959_vm6, %v2344_v38, %v2343_v34 }
 0x644   :  { %v2347_v51 = vsel %vm7842_vm8, %v2346_v21, %v2345_v50  ;;  %vm7843_vm8 = vcmask 326912  }
 0x645   :  { %2292 = vperm.xlu0 %3359, %v2127_v42  }
 0x647   :  { %v2167_v13 = vpop.permute.xlu0 %2166  ;;  %2561 = vperm.xlu1 %3361, %v2482_v59  }
 0x648   :  { %v2348_v12 = vperm.slane %v2167_v13, %v7408_v27 }
 0x649   :  { %v6291_v45 = vpop.permute.xlu1 %2259 }
 0x64a   :  { %v2350_v23 = vsel %vm939_vm2, %v2349_v19, %v2348_v12 }
 0x64b   :  { %v2352_v54 = vsel %vm7839_vm9, %v2351_v0, %v2350_v23  ;;  %vm7844_vm9 = vcmask 523712   ;;  %v2487_v0 = vsel %vm1839_vm3, %v7773_v18, 4294967295  ;;  %v2363_v23 = vperm.slane %v6164_v46, %v7408_v27 }
 0x64c   :  { %vm7846_vm3 = vcmask 195712  }
 0x64d   :  { %2301 = vperm.xlu0 %3359, %v2130_v62   ;;  %v2366_v62 = vperm.slane %v6193_v1, %v4513_v48 }
 0x64f   :  { %v2176_v10 = vpop.permute.xlu0 %2175  ;;  %2564 = vperm.xlu1 %3361, %v2483_v53  }
 0x650   :  { %v2353_v28 = vperm.slane %v2176_v10, %v4534_v7 }
 0x651   :  { %v6305_v25 = vpop.permute.xlu1 %2268 }
 0x652   :  { %v2354_v38 = vsel %vm7840_vm15, %v2353_v28, %v2352_v54  ;;  %vm1889_vm15 = vcmp.gt.f32.partialorder %v6199_v8, 0.0  ;;  %v7948_v8 = vld [vmem:[#allocation29_spill] sm:$0xff] }
 0x653   :  { %v2356_v21 = vsel %vm7843_vm8, %v2355_v37, %v2354_v38  ;;  %v2139_v46 = vsel %vm1889_vm15, %v7798_v47, 129  ;;  %vm7847_vm8 = vcmask 261312   ;;  %v2227_v37 = vpop.permute.xlu2 %2226  ;;  %v2372_v38 = vperm.slane %v6208_v56, %v4539_v3 }
 0x654   :  { %v2358_v34 = vsel %vm955_vm13, %v2357_v31, %v2356_v21 }
 0x655   :  { %2310 = vperm.xlu0 %3359, %v2133_v44   ;;  %v2374_v44 = vperm.slane %v6201_v35, %v4561_v33 }
 0x657   :  { %v2185_v50 = vpop.permute.xlu0 %2184  ;;  %2567 = vperm.xlu1 %3361, %v2484_v6  }
 0x658   :  { %v2359_v42 = vperm.slane %v2185_v50, %v4561_v33 }
 0x659   :  { %v6322_v59 = vpop.permute.xlu1 %2277 }
 0x65a   :  { %v2360_v13 = vsel %vm959_vm6, %v2359_v42, %v2358_v34 }
 0x65b   :  { %v2362_v19 = vsel %vm7844_vm9, %v2361_v15, %v2360_v13  ;;  %vm7848_vm9 = vcmp.gt.f32.partialorder %v5687_v16, 0.0  ;;  %v2236_v15 = vpop.permute.xlu2 %2235 }
 0x65c   :  { %v2453_v12 = vsel %vm7845_vm10, %v2362_v19, %v2347_v51  ;;  %v2368_v51 = vperm.slane %v6182_v5, %v4534_v7  ;;  %v2490_v1 = vsel %vm7848_vm9, %v7776_v36, 4294967295  ;;  %vm7849_vm10 = vcmask 326912  }
 0x65d   :  { %2319 = vperm.xlu0 %3359, %v2136_v58   ;;  %vm7852_vm9 = vcmask 1042434   ;;  %v7853_v58 = vld [vmem:[#allocation53_spill] sm:$0xff] }
 0x65f   :  { %v2194_v43 = vpop.permute.xlu0 %2193  ;;  %2576 = vperm.xlu1 %3361, %v2487_v0  }
 0x660   :  { %v2364_v54 = vperm.slane %v2194_v43, %v4510_v55 }
 0x661   :  { %v6339_v53 = vpop.permute.xlu1 %2286 }
 0x662   :  { %v2365_v4 = vsel %vm939_vm2, %v2364_v54, %v2363_v23  ;;  %v2383_v23 = vperm.slane %v6230_v57, %v4534_v7  ;;  %v2423_v63 = vperm.slane %v6339_v53, %v7408_v27 }
 0x663   :  { %v2367_v10 = vsel %vm7846_vm3, %v2366_v62, %v2365_v4  ;;  %vm7850_vm3 = vcmp.gt.f32.partialorder %v5707_v29, 0.0  ;;  %v2385_v62 = vperm.slane %v2227_v37, %v4527_v14 }
 0x664   :  { %v2369_v28 = vsel %vm7847_vm8, %v2368_v51, %v2367_v10  ;;  %v2493_v50 = vsel %vm7850_vm3, %v7785_v39, 4294967295  ;;  %vm7851_vm8 = vcmask 523712   ;;  %v2245_v51 = vpop.permute.xlu2 %2244  ;;  %vm7855_vm3 = vcmask 195712  }
 0x665   :  { %2328 = vperm.xlu0 %3359, %v2139_v46   ;;  %v7858_v46 = vld [vmem:[#allocation49_spill] sm:$0xff] }
 0x667   :  { %v2203_v31 = vpop.permute.xlu0 %2202  ;;  %2585 = vperm.xlu1 %3361, %v2490_v1  }
 0x668   :  { %v2370_v5 = vperm.slane %v2203_v31, %v4527_v14  ;;  %v2389_v31 = vperm.slane %v6242_v60, %v4561_v33  ;;  %v2394_v60 = vperm.slane %v6258_v22, %v4510_v55 }
 0x669   :  { %v6355_v21 = vpop.permute.xlu1 %2295 }
 0x66a   :  { %v2371_v34 = vsel %vm7849_vm10, %v2370_v5, %v2369_v28  ;;  %vm7854_vm10 = vcmp.gt.f32.partialorder %v7853_v58, 0.0  ;;  %v2391_v5 = vperm.slane %v2236_v15, %v4564_v32 }
 0x66b   :  { %v2373_v6 = vsel %vm955_vm13, %v2372_v38, %v2371_v34  ;;  %v2496_v0 = vsel %vm7854_vm10, %v7788_v61, 4294967295  ;;  %vm7859_vm10 = vcmp.gt.f32.partialorder %v7858_v46, 0.0 }
 0x66c   :  { %v2375_v16 = vsel %vm959_vm6, %v2374_v44, %v2373_v6  ;;  %v2499_v28 = vsel %vm7859_vm10, %v7791_v9, 4294967295  ;;  %v2254_v44 = vpop.permute.xlu2 %2253  ;;  %vm7864_vm10 = vcmask 195712  }
 0x66f   :  { %v2212_v42 = vpop.permute.xlu0 %2211  ;;  %2594 = vperm.xlu1 %3361, %v2493_v50  }
 0x670   :  { %v2376_v56 = vperm.slane %v2212_v42, %v4564_v32 }
 0x671   :  { %v6366_v13 = vpop.permute.xlu1 %2304 }
 0x672   :  { %v2377_v19 = vsel %vm7851_vm8, %v2376_v56, %v2375_v16  ;;  %vm7856_vm8 = vcmask 261312   ;;  %v7862_v16 = vld [vmem:[#allocation62_spill] sm:$0xff]  ;;  %v2396_v56 = vperm.slane %v2245_v51, %v4513_v48 }
 0x673   :  { %v2454_v35 = vsel %vm7852_vm9, %v2377_v19, %v2453_v12  ;;  %vm7857_vm9 = vcmask 326912  }
 0x677   :  { %v2221_v43 = vpop.permute.xlu0 %2220  ;;  %2603 = vperm.xlu1 %3361, %v2496_v0  }
 0x678   :  { %v2381_v29 = vperm.slane %v2221_v43, %v4513_v48 }
 0x679   :  { %v6376_v54 = vpop.permute.xlu1 %2313 }
 0x67a   :  { %v2382_v4 = vsel %vm7855_vm3, %v2381_v29, %v6224_v2  ;;  %vm7860_vm3 = vcmask 523712   ;;  %v6410_v29 = vpop.permute.xlu2 %2262 }
 0x67b   :  { %v2384_v12 = vsel %vm7856_vm8, %v2383_v23, %v2382_v4  ;;  %vm7861_vm8 = vcmask 1043459  }
 0x67c   :  { %v2386_v10 = vsel %vm7857_vm9, %v2385_v62, %v2384_v12  ;;  %vm7863_vm9 = vcmp.gt.f32.partialorder %v7862_v16, 0.0  ;;  %v2400_v62 = vperm.slane %v6272_v41, %v4527_v14  ;;  %v2406_v41 = vperm.slane %v6291_v45, %v4564_v32 }
 0x67d   :  { %v2502_v50 = vsel %vm7863_vm9, %v7796_v52, 4294967295  ;;  %vm7868_vm9 = vcmask 326912  }
 0x67f   :  { %v2230_v1 = vpop.permute.xlu0 %2229  ;;  %2612 = vperm.xlu1 %3361, %v2499_v28   ;;  %v2402_v28 = vperm.slane %v2254_v44, %v4539_v3 }
 0x680   :  { %v2387_v57 = vperm.slane %v2230_v1, %v4539_v3 }
 0x681   :  { %v6389_v37 = vpop.permute.xlu1 %2322 }
 0x682   :  { %v2388_v2 = vsel %vm955_vm13, %v2387_v57, %v2386_v10  ;;  %v7869_v10 = vld [vmem:[#allocation50_spill] sm:$0xff]  ;;  %v6421_v57 = vpop.permute.xlu2 %2271 }
 0x683   :  { %v2390_v38 = vsel %vm959_vm6, %v2389_v31, %v2388_v2 }
 0x684   :  { %v2392_v34 = vsel %vm7860_vm3, %v2391_v5, %v2390_v38 }
 0x685   :  { %v2455_v6 = vsel %vm7861_vm8, %v2392_v34, %v2454_v35  ;;  %v7865_v35 = vld [vmem:[#allocation38_spill] sm:$0xff]  ;;  %vm7867_vm8 = vcmask 261312  }
 0x686   :  { %vm7866_vm3 = vcmp.gt.f32.partialorder %v7865_v35, 0.0 }
 0x687   :  { %v2239_v42 = vpop.permute.xlu0 %2238  ;;  %2621 = vperm.xlu1 %3361, %v2502_v50   ;;  %v2505_v43 = vsel %vm7866_vm3, %v7798_v47, 4294967295  ;;  %vm7871_vm3 = vcmask 523712  }
 0x688   :  { %v2393_v15 = vperm.slane %v2239_v42, %v7408_v27 }
 0x689   :  { %v6403_v19 = vpop.permute.xlu1 %2331 }
 0x68a   :  { %v2395_v58 = vsel %vm939_vm2, %v2394_v60, %v2393_v15  ;;  %v7873_v60 = vld [vmem:[#allocation59_spill] sm:$0xff] }
 0x68b   :  { %v2397_v0 = vsel %vm7864_vm10, %v2396_v56, %v2395_v58  ;;  %vm7870_vm10 = vcmp.gt.f32.partialorder %v7869_v10, 0.0  ;;  %v6438_v58 = vpop.permute.xlu2 %2280 }
 0x68c   :  { %v2508_v46 = vsel %vm7870_vm10, %v7770_v20, 4294967295  ;;  %vm7875_vm10 = vcmask 195712  }
 0x68f   :  { %v2248_v23 = vpop.permute.xlu0 %2247  ;;  %2630 = vperm.xlu1 %3361, %v2505_v43   ;;  %v7876_v43 = vld [vmem:[#allocation76_spill] sm:$0xff] }
 0x690   :  { %v2398_v22 = vperm.slane %v2248_v23, %v4534_v7 }
 0x691   :  { %v2541_v51 = vpop.permute.xlu1 %2540 }
 0x692   :  { %v2399_v4 = vsel %vm7867_vm8, %v2398_v22, %v2397_v0  ;;  %v2731_v38 = vperm.slane %v2541_v51, %v7408_v27  ;;  %vm7872_vm8 = vcmask 1044484  }
 0x693   :  { %v2401_v12 = vsel %vm7868_vm9, %v2400_v62, %v2399_v4  ;;  %vm7874_vm9 = vcmp.gt.f32.partialorder %v7873_v60, 0.0  ;;  %v2290_v51 = vpop.permute.xlu2 %2289 }
 0x694   :  { %v2403_v5 = vsel %vm955_vm13, %v2402_v28, %v2401_v12  ;;  %v2511_v45 = vsel %vm7874_vm9, %v7773_v18, 4294967295  ;;  %v7879_v12 = vld [vmem:[#allocation35_spill] sm:$0xff] }
 0x695   :  { %vm7880_vm9 = vcmp.gt.f32.partialorder %v7879_v12, 0.0 }
 0x696   :  { %v2523_v10 = vsel %vm7880_vm9, %v7791_v9, 4294967295  ;;  %vm7888_vm9 = vcmask 261312  }
 0x697   :  { %v2257_v1 = vpop.permute.xlu0 %2256  ;;  %2639 = vperm.xlu1 %3361, %v2508_v46  }
 0x698   :  { %v2404_v31 = vperm.slane %v2257_v1, %v4561_v33 }
 0x699   :  { %v2544_v2 = vpop.permute.xlu1 %2543 }
 0x69a   :  { %v2405_v34 = vsel %vm959_vm6, %v2404_v31, %v2403_v5  ;;  %v2732_v16 = vperm.slane %v2544_v2, %v4510_v55  ;;  %v2525_v5 = vsel %vm1877_vm4, %v7785_v39, 4294967295 }
 0x69b   :  { %v2407_v44 = vsel %vm7871_vm3, %v2406_v41, %v2405_v34  ;;  %vm7877_vm3 = vcmp.gt.f32.partialorder %v7876_v43, 0.0  ;;  %v2299_v41 = vpop.permute.xlu2 %2298  ;;  %v2519_v34 = vsel %vm1871_vm5, %v7773_v18, 4294967295  ;;  %v2424_v43 = vperm.slane %v2290_v51, %v4510_v55 }
 0x69c   :  { %v2733_v50 = vsel %vm939_vm2, %v2732_v16, %v2731_v38  ;;  %v6433_v42 = vsel %vm7872_vm8, %v2407_v44, %v2455_v6  ;;  %v2515_v23 = vsel %vm7877_vm3, %v7791_v9, 4294967295  ;;  %vm7878_vm8 = vcmask 261312  }
 0x69d   :  { %vm7884_vm5 = vcmask 195712   ;;  %v2428_v51 = vperm.slane %v6355_v21, %v4534_v7 }
 0x69e   :  { %vm7885_vm4 = vmmov %vm7884_vm5 }
 0x69f   :  { %v2266_v15 = vpop.permute.xlu0 %2265  ;;  %2648 = vperm.xlu1 %3361, %v2511_v45   ;;  %v7882_v45 = vld [vmem:[#allocation58_spill] sm:$0xff] }
 0x6a0   :  { %v2409_v60 = vperm.slane %v2266_v15, %v4510_v55  ;;  %vm7883_vm3 = vcmp.gt.f32.partialorder %v7882_v45, 0.0  ;;  %v2430_v45 = vperm.slane %v2299_v41, %v4527_v14 }
 0x6a1   :  { %v2547_v56 = vpop.permute.xlu1 %2546 }
 0x6a2   :  { %v2734_v0 = vperm.slane %v2547_v56, %v4513_v48  ;;  %v2520_v56 = vsel %vm7883_vm3, %v7788_v61, 4294967295  ;;  %vm7890_vm3 = vcmask 326912  }
 0x6a3   :  { %v2308_v44 = vpop.permute.xlu2 %2307 }
 0x6a4   :  { %v2735_v35 = vsel %vm7875_vm10, %v2734_v0, %v2733_v50  ;;  %vm7881_vm10 = vcmask 326912   ;;  %v2408_v0 = vperm.slane %v6410_v29, %v7408_v27 }
 0x6a7   :  { %v2275_v22 = vpop.permute.xlu0 %2274  ;;  %2660 = vperm.xlu1 %3361, %v2515_v23   ;;  %v2410_v23 = vsel %vm939_vm2, %v2409_v60, %v2408_v0 }
 0x6a9   :  { %v2550_v6 = vpop.permute.xlu1 %2549 }
 0x6aa   :  { %v2736_v62 = vperm.slane %v2550_v6, %v4534_v7 }
 0x6ab   :  { %v2317_v15 = vpop.permute.xlu2 %2316 }
 0x6ac   :  { %v2737_v4 = vsel %vm7878_vm8, %v2736_v62, %v2735_v35  ;;  %v2411_v62 = vperm.slane %v6305_v25, %v4513_v48  ;;  %v2413_v25 = vperm.slane %v6421_v57, %v4534_v7  ;;  %v2441_v57 = vperm.slane %v2317_v15, %v4513_v48 }
 0x6af   :  { %v6450_v46 = vpop.permute.xlu0 %2283  ;;  %2684 = vperm.xlu1 %3361, %v2523_v10  }
 0x6b1   :  { %v2553_v28 = vpop.permute.xlu1 %2552 }
 0x6b2   :  { %v2738_v1 = vperm.slane %v2553_v28, %v4527_v14  ;;  %v2412_v28 = vsel %vm7885_vm4, %v2411_v62, %v2410_v23  ;;  %v2419_v62 = vperm.slane %v6438_v58, %v4561_v33 }
 0x6b4   :  { %v6454_v31 = vsel %vm7881_vm10, %v2738_v1, %v2737_v4  ;;  %v2425_v4 = vsel %vm939_vm2, %v2424_v43, %v2423_v63  ;;  %v2415_v1 = vperm.slane %v2275_v22, %v4527_v14  ;;  %vm7889_vm10 = vmmov %vm7888_vm9  ;;  %v2434_v43 = vperm.slane %v6366_v13, %v4561_v33 }
 0x6b5   :  { %v2414_v22 = vsel %vm7889_vm10, %v2413_v25, %v2412_v28  ;;  %v2535_v13 = vsel %vm1887_vm0, %v7773_v18, 4294967295  ;;  %vm7895_vm10 = vcmask 523712   ;;  %v2451_v25 = vperm.slane %v6403_v19, %v4564_v32 }
 0x6b6   :  { %vm7897_vm0 = vcmask 1045509  }
 0x6b7   :  { %v2293_v2 = vpop.permute.xlu0 %2292  ;;  %2690 = vperm.xlu1 %3361, %v2525_v5  }
 0x6b8   :  { %v2426_v35 = vperm.slane %v2293_v2, %v4513_v48  ;;  %v2439_v2 = vperm.slane %v6376_v54, %v4510_v55  ;;  %v2416_v54 = vsel %vm7890_vm3, %v2415_v1, %v2414_v22  ;;  %v7902_v22 = vld [vmem:[#allocation82_spill] sm:$0xff] }
 0x6b9   :  { %v6459_v38 = vpop.permute.xlu1 %2561 }
 0x6ba   :  { %v2427_v29 = vsel %vm7884_vm5, %v2426_v35, %v2425_v4  ;;  %v2417_v35 = vperm.slane %v6322_v59, %v4539_v3  ;;  %vm7891_vm5 = vmmov %vm7890_vm3  ;;  %v2326_v59 = vpop.permute.xlu2 %2325  ;;  %v2445_v4 = vperm.slane %v6389_v37, %v4527_v14 }
 0x6bb   :  { %v2429_v60 = vsel %vm7888_vm9, %v2428_v51, %v2427_v29  ;;  %v2436_v29 = vperm.slane %v2308_v44, %v4564_v32  ;;  %v2447_v51 = vperm.slane %v2326_v59, %v4539_v3  ;;  %v7916_v59 = vld [vmem:[#allocation66_spill] sm:$0xff] }
 0x6bc   :  { %v2418_v23 = vsel %vm955_vm13, %v2417_v35, %v2416_v54  ;;  %v6546_v54 = vld [vmem:[#allocation4] sm:$0xff] }
 0x6bf   :  { %v2302_v16 = vpop.permute.xlu0 %2301  ;;  %2672 = vperm.xlu1 %3361, %v2519_v34   ;;  %v7886_v34 = vld [vmem:[#allocation83_spill] sm:$0xff] }
 0x6c0   :  { %vm7887_vm8 = vcmp.gt.f32.partialorder %v7886_v34, 0.0  ;;  %v2432_v21 = vperm.slane %v2302_v16, %v4539_v3 }
 0x6c1   :  { %v2565_v50 = vpop.permute.xlu1 %2564 }
 0x6c2   :  { %v2746_v53 = vperm.slane %v2565_v50, %v7408_v27  ;;  %v2514_v50 = vsel %vm7887_vm8, %v7776_v36, 4294967295  ;;  %vm7892_vm8 = vmmov %vm7888_vm9 }
 0x6c3   :  { %vm7894_vm9 = vmmov %vm7890_vm3 }
 0x6c4   :  { %vm7896_vm3 = vmmov %vm7895_vm10 }
 0x6c7   :  { %v2311_v11 = vpop.permute.xlu0 %2310  ;;  %2675 = vperm.xlu1 %3361, %v2520_v56  }
 0x6c8   :  { %v2438_v10 = vperm.slane %v2311_v11, %v7408_v27  ;;  %v2431_v11 = vsel %vm7891_vm5, %v2430_v45, %v2429_v60  ;;  %vm7898_vm5 = vmmov %vm7896_vm3 }
 0x6c9   :  { %v2568_v6 = vpop.permute.xlu1 %2567  ;;  %v2433_v16 = vsel %vm955_vm13, %v2432_v21, %v2431_v11  ;;  %v7908_v11 = vld [vmem:[#allocation15_spill] sm:$0xff] }
 0x6ca   :  { %v2747_v12 = vperm.slane %v2568_v6, %v4510_v55  ;;  %v2440_v56 = vsel %vm939_vm2, %v2439_v2, %v2438_v10  ;;  %v2421_v6 = vperm.slane %v6450_v46, %v4564_v32  ;;  %v2420_v10 = vsel %vm959_vm6, %v2419_v62, %v2418_v23  ;;  %v7912_v23 = vld [vmem:[#allocation46_spill] sm:$0xff] }
 0x6cb   :  { %v2442_v41 = vsel %vm7885_vm4, %v2441_v57, %v2440_v56  ;;  %vm7899_vm4 = vcmask 1046534  }
 0x6cc   :  { %v6487_v5 = vsel %vm939_vm2, %v2747_v12, %v2746_v53  ;;  %v2435_v53 = vsel %vm959_vm6, %v2434_v43, %v2433_v16  ;;  %v2422_v58 = vsel %vm7895_vm10, %v2421_v6, %v2420_v10  ;;  %vm7903_vm10 = vcmp.gt.f32.partialorder %v7902_v22, 0.0  ;;  %v7922_v10 = vld [vmem:[#allocation54_spill] sm:$0xff] }
 0x6cd   :  { %v2437_v37 = vsel %vm7896_vm3, %v2436_v29, %v2435_v53  ;;  %v2457_v44 = vsel %vm7897_vm0, %v2422_v58, %v6433_v42  ;;  %v2536_v56 = vsel %vm7903_vm10, %v7788_v61, 4294967295  ;;  %v7904_v42 = vld [vmem:[#allocation64_spill] sm:$0xff]  ;;  %vm7917_vm10 = vcmp.gt.f32.partialorder %v7916_v59, 0.0  ;;  %v7918_v53 = vld [vmem:[#allocation19_spill] sm:$0xff]  ;;  %v7938_v59 = vld [vmem:[#allocation61_spill] sm:$0xff] }
 0x6ce   :  { %v2458_v60 = vsel %vm7899_vm4, %v2437_v37, %v2457_v44  ;;  %vm7905_vm3 = vcmp.gt.f32.partialorder %v7904_v42, 0.0  ;;  %v7926_v37 = vld [vmem:[#allocation55_spill] sm:$0xff] }
 0x6cf   :  { %v2320_v63 = vpop.permute.xlu0 %2319  ;;  %2657 = vperm.xlu1 %3361, %v2514_v50   ;;  %v2538_v57 = vsel %vm7905_vm3, %v7776_v36, 4294967295  ;;  %vm7919_vm3 = vcmp.gt.f32.partialorder %v7918_v53, 0.0 }
 0x6d0   :  { %v2443_v0 = vperm.slane %v2320_v63, %v4534_v7  ;;  %v2501_v12 = vsel %vm7919_vm3, %v7785_v39, 4294967295 }
 0x6d2   :  { %v2444_v15 = vsel %vm7892_vm8, %v2443_v0, %v2442_v41  ;;  %vm7900_vm8 = vcmask 1047559   ;;  %v7906_v0 = vld [vmem:[#allocation79_spill] sm:$0xff]  ;;  %v7910_v41 = vld [vmem:[#allocation30_spill] sm:$0xff] }
 0x6d3   :  { %v2446_v46 = vsel %vm7894_vm9, %v2445_v4, %v2444_v15  ;;  %vm7901_vm9 = vcmask 523264   ;;  %vm7907_vm0 = vcmp.gt.f32.partialorder %v7906_v0, 0.0  ;;  %vm7911_vm4 = vcmp.gt.f32.partialorder %v7910_v41, 0.0  ;;  %v7914_v15 = vld [vmem:[#allocation37_spill] sm:$0xff] }
 0x6d4   :  { %v2448_v2 = vsel %vm955_vm13, %v2447_v51, %v2446_v46  ;;  %v2480_v35 = vsel %vm7907_vm0, %v7788_v61, 4294967295  ;;  %v2489_v43 = vsel %vm7911_vm4, %v7798_v47, 4294967295  ;;  %v2498_v4 = vsel %vm7917_vm10, %v7776_v36, 4294967295  ;;  %v7924_v51 = vld [vmem:[#allocation56_spill] sm:$0xff] }
 0x6d5   :  { %vm7925_vm4 = vcmp.gt.f32.partialorder %v7924_v51, 0.0  ;;  %v2534_v41 = vsel %vm1886_vm14, %v7796_v52, 4294967295  ;;  %v2537_v51 = vsel %vm1889_vm15, %v7798_v47, 4294967295  ;;  %vm7949_vm15 = vcmp.gt.f32.partialorder %v7948_v8, 0.0 }
 0x6d6   :  { %v2510_v58 = vsel %vm7925_vm4, %v7796_v52, 4294967295  ;;  %vm7939_vm4 = vcmp.gt.f32.partialorder %v7938_v59, 0.0 }
 0x6d7   :  { %v2329_v28 = vpop.permute.xlu0 %2328  ;;  %2720 = vperm.xlu1 %3361, %v2535_v13   ;;  %v7920_v13 = vld [vmem:[#allocation22_spill] sm:$0xff]  ;;  %v2488_v24 = vsel %vm7939_vm4, %v7788_v61, 4294967295 }
 0x6d8   :  { %v2449_v1 = vperm.slane %v2329_v28, %v4561_v33  ;;  %vm7921_vm0 = vcmp.gt.f32.partialorder %v7920_v13, 0.0  ;;  %v2513_v28 = vsel %vm1865_vm7, %v7798_v47, 4294967295 }
 0x6d9   :  { %v2504_v29 = vsel %vm7921_vm0, %v7788_v61, 4294967295 }
 0x6da   :  { %v2450_v34 = vsel %vm959_vm6, %v2449_v1, %v2448_v2  ;;  %v6585_v2 = vpop.permute.xlu1 %2576 }
 0x6db   :  { %v2452_v50 = vsel %vm7898_vm5, %v2451_v25, %v2450_v34  ;;  %vm7909_vm5 = vcmp.gt.f32.partialorder %v7908_v11, 0.0  ;;  %v7934_v11 = vld [vmem:[#allocation52_spill] sm:$0xff] }
 0x6dc   :  { %v2459_v21 = vsel %vm7900_vm8, %v2452_v50, %v2458_v60  ;;  %v2486_v16 = vsel %vm7909_vm5, %v7796_v52, 4294967295  ;;  %vm7913_vm8 = vcmp.gt.f32.partialorder %v7912_v23, 0.0  ;;  %vm7923_vm5 = vcmp.gt.f32.partialorder %v7922_v10, 0.0  ;;  %v7928_v60 = vld [vmem:[#allocation85_spill] sm:$0xff] }
 0x6dd   :  { %v2460_v45 = vsel %vm7901_vm9, %v2459_v21, 2147483647  ;;  %v2492_v6 = vsel %vm7913_vm8, %v7770_v20, 4294967295  ;;  %vm7915_vm9 = vcmp.gt.f32.partialorder %v7914_v15, 0.0  ;;  %v2507_v46 = vsel %vm7923_vm5, %v7791_v9, 4294967295 }
 0x6de   :  { %v2462_v19 = vshra.s32 %v2460_v45, 16  ;;  %v2495_v62 = vsel %vm7915_vm9, %v7773_v18, 4294967295  ;;  %vm7927_vm8 = vcmp.gt.f32.partialorder %v7926_v37, 0.0  ;;  %v2461_v25 = vand.u32 65535, %v2460_v45 }
 0x6df   :  { %2723 = vperm.xlu1 %3361, %v2536_v56   ;;  %v2517_v1 = vsel %vm7927_vm8, %v7785_v39, 4294967295  ;;  %vm7929_vm10 = vcmp.gt.f32.partialorder %v7928_v60, 0.0  ;;  %vm7935_vm0 = vcmp.gt.f32.partialorder %v7934_v11, 0.0  ;;  %v2500_v60 = vsel %vm7949_vm15, %v7770_v20, 4294967295  ;;  %v7952_v11 = vld [vmem:[#allocation81_spill] sm:$0xff] }
 0x6e0   :  { %v2464_v63 = vcvt.s32.f32 %v2462_v19  ;;  %v2463_v34 = vcvt.s32.f32 %v2461_v25  ;;  %v2518_v30 = vsel %vm7929_vm10, %v7796_v52, 4294967295  ;;  %v7930_v19 = vld [vmem:[#allocation40_spill] sm:$0xff]  ;;  %v7946_v25 = vld [vmem:[#allocation77_spill] sm:$0xff]  ;;  %vm7967_vm15 = vcmask 195712  }
 0x6e1   :  { %vm7931_vm7 = vcmp.gt.f32.partialorder %v7930_v19, 0.0 }
 0x6e2   :  { %2465 = vmin.xlane.f32.xlu2 %v2464_v63  ;;  %v6594_v56 = vpop.permute.xlu1 %2585 }
 0x6e7   :  { %2729 = vperm.xlu1 %3361, %v2538_v57   ;;  %v7932_v57 = vld [vmem:[#allocation34_spill] sm:$0xff] }
 0x6e8   :  { %vm7933_vm3 = vcmp.gt.f32.partialorder %v7932_v57, 0.0  ;;  %v7950_v57 = vld [vmem:[#allocation63_spill] sm:$0xff] }
 0x6e9   :  { %v2533_v0 = vsel %vm7933_vm3, %v7785_v39, 4294967295  ;;  %vm7951_vm10 = vcmp.gt.f32.partialorder %v7950_v57, 0.0 }
 0x6ef   :  { %2922 = vperm.xlu1 %3361, %v6546_v54  }
 0x6fa   :  { %2555 = vperm.xlu2 %3360, %v2480_v35   ;;  %v6608_v35 = vpop.permute.xlu1 %2594 }
 0x702   :  { %2573 = vperm.xlu2 %3360, %v2486_v16   ;;  %v2481_v16 = vsel %vm7935_vm0, %v7798_v47, 4294967295 }
 0x70a   :  { %2582 = vperm.xlu2 %3360, %v2489_v43   ;;  %v7936_v43 = vld [vmem:[#allocation80_spill] sm:$0xff] }
 0x70b   :  { %vm7937_vm5 = vcmp.gt.f32.partialorder %v7936_v43, 0.0 }
 0x70c   :  { %v2485_v23 = vsel %vm7937_vm5, %v7785_v39, 4294967295  ;;  %vm7958_vm5 = vcmp.gt.f32.partialorder %v6107_v40, 0.0  ;;  %v2531_v40 = vsel %vm1883_vm11, %v7791_v9, 4294967295  ;;  %vm7966_vm11 = vcmp.gt.f32.partialorder %v7965_v26, 0.0 }
 0x70d   :  { %v2516_v59 = vsel %vm7958_vm5, %v7770_v20, 4294967295  ;;  %vm7973_vm5 = vcmask 1041409  }
 0x712   :  { %2591 = vperm.xlu2 %3360, %v2492_v6   ;;  %v6621_v6 = vpop.permute.xlu1 %2603 }
 0x71a   :  { %2600 = vperm.xlu2 %3360, %v2495_v62   ;;  %v2528_v62 = vsel %vm1880_vm12, %v7788_v61, 4294967295 }
 0x722   :  { %2609 = vperm.xlu2 %3360, %v2498_v4   ;;  %v6631_v4 = vpop.permute.xlu1 %2612 }
 0x72a   :  { %2618 = vperm.xlu2 %3360, %v2501_v12   ;;  %v7940_v12 = vld [vmem:[#allocation17_spill] sm:$0xff] }
 0x72b   :  { %vm7941_vm14 = vcmp.gt.f32.partialorder %v7940_v12, 0.0  ;;  %v7959_v12 = vld [vmem:[#allocation78_spill] sm:$0xff] }
 0x72c   :  { %v2529_v13 = vsel %vm7941_vm14, %v7798_v47, 4294967295  ;;  %vm7960_vm4 = vcmp.gt.f32.partialorder %v7959_v12, 0.0 }
 0x732   :  { %2627 = vperm.xlu2 %3360, %v2504_v29   ;;  %v7942_v29 = vld [vmem:[#allocation41_spill] sm:$0xff] }
 0x733   :  { %vm7943_vm8 = vcmp.gt.f32.partialorder %v7942_v29, 0.0 }
 0x734   :  { %v2491_v17 = vsel %vm7943_vm8, %v7791_v9, 4294967295  ;;  %vm7961_vm8 = vcmask 7168   ;;  %v2527_v9 = vsel %vm7966_vm11, %v7773_v18, 4294967295 }
 0x73a   :  { %2636 = vperm.xlu2 %3360, %v2507_v46   ;;  %v6643_v46 = vpop.permute.xlu1 %2621 }
 0x742   :  { %2645 = vperm.xlu2 %3360, %v2510_v58   ;;  %v7944_v58 = vld [vmem:[#allocation60_spill] sm:$0xff] }
 0x743   :  { %vm7945_vm12 = vcmp.gt.f32.partialorder %v7944_v58, 0.0 }
 0x74a   :  { %2654 = vperm.xlu2 %3360, %v2513_v28   ;;  %v2494_v28 = vsel %vm7945_vm12, %v7796_v52, 4294967295 }
 0x752   :  { %2666 = vperm.xlu2 %3360, %v2517_v1   ;;  %v6653_v1 = vpop.permute.xlu1 %2630 }
 0x755   :  { %v6587_v44 = vpop.xlane.xlu2 %2465 }
 0x756   :  { %vm2467_vm9 = vcmp.eq.f32.partialorder %v2464_v63, %v6587_v44  ;;  %v2532_v63 = vsel %vm7931_vm7, %v7770_v20, 4294967295  ;;  %vm7953_vm7 = vcmp.gt.f32.partialorder %v7952_v11, 0.0 }
 0x757   :  { %v2468_v50 = vsel %vm2467_vm9, %v2463_v34, inf  ;;  %vm7947_vm9 = vcmp.gt.f32.partialorder %v7946_v25, 0.0 }
 0x758   :  { %2469 = vmin.xlane.f32.xlu0 %v2468_v50  ;;  %v2497_v34 = vsel %vm7947_vm9, %v7798_v47, 4294967295  ;;  %vm7964_vm9 = vcmask 523712  }
 0x75a   :  { %2669 = vperm.xlu2 %3360, %v2518_v30   ;;  %v2640_v30 = vpop.permute.xlu1 %2639 }
 0x75d   :  { %v2556_v21 = vpop.permute.xlu2 %2555 }
 0x75e   :  { %v2740_v22 = vperm.slane %v2556_v21, %v4539_v3 }
 0x760   :  { %v6598_v45 = vsel %vm955_vm13, %v2740_v22, %v6454_v31  ;;  %v2792_v22 = vperm.slane %v2640_v30, %v4510_v55 }
 0x762   :  { %2711 = vperm.xlu2 %3360, %v2532_v63  }
 0x765   :  { %v6603_v42 = vpop.permute.xlu2 %2573 }
 0x76a   :  { %2714 = vperm.xlu2 %3360, %v2533_v0   ;;  %v2503_v0 = vsel %vm7951_vm10, %v7773_v18, 4294967295  ;;  %vm7968_vm10 = vcmask 261312  }
 0x76c   :  { %2558 = vperm.xlu0 %3359, %v2481_v16   ;;  %v2506_v16 = vsel %vm7953_vm7, %v7776_v36, 4294967295 }
 0x76d   :  { %v6613_v31 = vpop.permute.xlu2 %2582 }
 0x772   :  { %2717 = vperm.xlu2 %3360, %v2534_v41   ;;  %v7954_v41 = vld [vmem:[#allocation33_spill] sm:$0xff] }
 0x773   :  { %vm7955_vm3 = vcmp.gt.f32.partialorder %v7954_v41, 0.0 }
 0x774   :  { %2570 = vperm.xlu0 %3359, %v2485_v23   ;;  %v2509_v43 = vsel %vm7955_vm3, %v7785_v39, 4294967295  ;;  %v7956_v23 = vld [vmem:[#allocation67_spill] sm:$0xff]  ;;  %vm7971_vm3 = vcmask 326912  }
 0x775   :  { %v6623_v15 = vpop.permute.xlu2 %2591  ;;  %vm7957_vm0 = vcmp.gt.f32.partialorder %v7956_v23, 0.0 }
 0x77a   :  { %2699 = vperm.xlu2 %3360, %v2528_v62   ;;  %v2512_v62 = vsel %vm7957_vm0, %v7788_v61, 4294967295  ;;  %vm7972_vm0 = vmmov %vm7964_vm9 }
 0x77c   :  { %2579 = vperm.xlu0 %3359, %v2488_v24   ;;  %v2472_v24 = vcvt.f32.s32 %v6587_v44  ;;  %v7962_v44 = vld [vmem:[#allocation44_spill] sm:$0xff] }
 0x77d   :  { %v6633_v53 = vpop.permute.xlu2 %2600  ;;  %vm7963_vm12 = vcmp.gt.f32.partialorder %v7962_v44, 0.0 }
 0x782   :  { %2702 = vperm.xlu2 %3360, %v2529_v13   ;;  %v2524_v13 = vsel %vm7960_vm4, %v7770_v20, 4294967295  ;;  %vm7974_vm4 = vmmov %vm7967_vm15 }
 0x783   :  { %vm7981_vm11 = vmmov %vm7974_vm4 }
 0x784   :  { %2588 = vperm.xlu0 %3359, %v2491_v17   ;;  %v2473_v17 = vshll.u32 %v2472_v24, 16 }
 0x785   :  { %v6641_v10 = vpop.permute.xlu2 %2609 }
 0x78a   :  { %2726 = vperm.xlu2 %3360, %v2537_v51   ;;  %v2874_v51 = vld [vmem:[#allocation2 + $0x8] sm:$0xff] }
 0x78c   :  { %2597 = vperm.xlu0 %3359, %v2494_v28   ;;  %v2526_v28 = vsel %vm7963_vm12, %v7796_v52, 4294967295  ;;  %vm7979_vm12 = vmmov %vm7972_vm0 }
 0x78d   :  { %v6651_v37 = vpop.permute.xlu2 %2618 }
 0x78e   :  { %v2779_v26 = vperm.slane %v6651_v37, %v4513_v48 }
 0x794   :  { %2606 = vperm.xlu0 %3359, %v2497_v34   ;;  %v2744_v34 = vperm.slane %v6459_v38, %v4564_v32 }
 0x795   :  { %v6658_v50 = vpop.permute.xlu2 %2627 }
 0x79c   :  { %2615 = vperm.xlu0 %3359, %v2500_v60  }
 0x79d   :  { %v2637_v21 = vpop.permute.xlu2 %2636 }
 0x79e   :  { %v2791_v19 = vperm.slane %v2637_v21, %v7408_v27  ;;  %v2751_v21 = vperm.slane %v6603_v42, %v4534_v7  ;;  %v2757_v42 = vperm.slane %v6613_v31, %v4561_v33  ;;  %v2762_v31 = vperm.slane %v6623_v15, %v4510_v55 }
 0x79f   :  { %v2768_v15 = vperm.slane %v6633_v53, %v4527_v14 }
 0x7a0   :  { %v6666_v63 = vsel %vm939_vm2, %v2792_v22, %v2791_v19  ;;  %v2753_v22 = vperm.slane %v6585_v2, %v4527_v14  ;;  %v7969_v19 = vld [vmem:[#allocation23_spill] sm:$0xff]  ;;  %v2759_v2 = vperm.slane %v6594_v56, %v4564_v32 }
 0x7a1   :  { %vm7970_vm7 = vcmp.gt.f32.partialorder %v7969_v19, 0.0 }
 0x7a2   :  { %v2521_v57 = vsel %vm7970_vm7, %v7798_v47, 4294967295  ;;  %v2522_v47 = vsel %vm1874_vm1, %v7776_v36, 4294967295  ;;  %vm7976_vm1 = vcmp.gt.f32.partialorder %v7975_v49, 0.0  ;;  %vm7984_vm7 = vmmov %vm7972_vm0 }
 0x7a4   :  { %2624 = vperm.xlu0 %3359, %v2503_v0  }
 0x7ac   :  { %2633 = vperm.xlu0 %3359, %v2506_v16   ;;  %v6720_v16 = vpop.permute.xlu1 %2648 }
 0x7b4   :  { %2642 = vperm.xlu0 %3359, %v2509_v43  }
 0x7bc   :  { %2651 = vperm.xlu0 %3359, %v2512_v62  }
 0x7c4   :  { %2663 = vperm.xlu0 %3359, %v2516_v59   ;;  %v2764_v59 = vperm.slane %v6608_v35, %v4513_v48  ;;  %v2770_v35 = vperm.slane %v6621_v6, %v4539_v3 }
 0x7cb   :  { %v2470_v29 = vpop.xlane.xlu0 %2469 }
 0x7cc   :  { %v2471_v39 = vcvt.f32.s32 %v2470_v29  ;;  %2687 = vperm.xlu0 %3359, %v2524_v13   ;;  %v2530_v13 = vsel %vm7976_vm1, %v7776_v36, 4294967295  ;;  %v6739_v29 = vpop.permute.xlu1 %2660 }
 0x7ce   :  { %v2474_v58 = vadd.s32 %v2473_v17, %v2471_v39 }
 0x7d0   :  { %vm2875_vm14 = vcmp.lt.s32.totalorder %v2874_v51, %v2474_v58 }
 0x7d1   :  { %v2876_v61 = vsel %vm2875_vm14, %v2874_v51, %v2474_v58  ;;  %vm7977_vm14 = vmmov %vm7968_vm10 }
 0x7d2   :  { %2877 = vst.msk [vmem:[#allocation2 + $0x8] sm:$0xff] %vm7961_vm8, %v2876_v61  ;;  %vm7978_vm8 = vmmov %vm7971_vm3 }
 0x7d4   :  { %2708 = vperm.xlu0 %3359, %v2531_v40   ;;  %v6749_v40 = vpop.permute.xlu1 %2684 }
 0x7dc   :  { %2693 = vperm.xlu0 %3359, %v2526_v28   ;;  %v2774_v28 = vperm.slane %v6641_v10, %v4564_v32  ;;  %v2781_v10 = vperm.slane %v6643_v46, %v4534_v7 }
 0x7de   :  { %v2559_v20 = vpop.permute.xlu0 %2558 }
 0x7df   :  { %v2742_v25 = vperm.slane %v2559_v20, %v4561_v33 }
 0x7e1   :  { %v2743_v8 = vsel %vm959_vm6, %v2742_v25, %v6598_v45 }
 0x7e2   :  { %v2745_v60 = vsel %vm7964_vm9, %v2744_v34, %v2743_v8  ;;  %vm7980_vm9 = vcmask 1042434   ;;  %v2776_v34 = vperm.slane %v6631_v4, %v7408_v27  ;;  %v6759_v8 = vpop.permute.xlu1 %2690 }
 0x7e4   :  { %2696 = vperm.xlu0 %3359, %v2527_v9   ;;  %v2646_v9 = vpop.permute.xlu2 %2645 }
 0x7e6   :  { %v2571_v30 = vpop.permute.xlu0 %2570 }
 0x7e7   :  { %v2749_v52 = vperm.slane %v2571_v30, %v4513_v48 }
 0x7e9   :  { %v2750_v38 = vsel %vm7967_vm15, %v2749_v52, %v6487_v5  ;;  %vm7982_vm15 = vmmov %vm7968_vm10 }
 0x7ea   :  { %v2752_v45 = vsel %vm7968_vm10, %v2751_v21, %v2750_v38  ;;  %v2785_v38 = vperm.slane %v6658_v50, %v4539_v3  ;;  %v6774_v37 = vpop.permute.xlu1 %2672  ;;  %vm7983_vm10 = vmmov %vm7971_vm3 }
 0x7eb   :  { %v2754_v18 = vsel %vm7971_vm3, %v2753_v22, %v2752_v45  ;;  %v2787_v45 = vperm.slane %v6653_v1, %v4561_v33  ;;  %vm7985_vm3 = vcmask 1043459  }
 0x7ec   :  { %2678 = vperm.xlu0 %3359, %v2521_v57   ;;  %v2655_v46 = vpop.permute.xlu2 %2654 }
 0x7ee   :  { %v2580_v0 = vpop.permute.xlu0 %2579 }
 0x7ef   :  { %v2755_v11 = vperm.slane %v2580_v0, %v4539_v3  ;;  %v6779_v0 = vld [vmem:[#allocation2] sm:$0xff] }
 0x7f1   :  { %v2756_v5 = vsel %vm955_vm13, %v2755_v11, %v2754_v18 }
 0x7f2   :  { %v2758_v41 = vsel %vm959_vm6, %v2757_v42, %v2756_v5  ;;  %v6787_v5 = vpop.permute.xlu1 %2675 }
 0x7f3   :  { %v2760_v43 = vsel %vm7972_vm0, %v2759_v2, %v2758_v41  ;;  %v6783_v2 = vmul.u32 32, %v6779_v0  ;;  %v6789_v41 = vld [vmem:[#allocation3 + $0x8] sm:$0xff]  ;;  %vm7986_vm0 = vmmov %vm7974_vm4 }
 0x7f4   :  { %2681 = vperm.xlu0 %3359, %v2522_v47   ;;  %v2851_v23 = vsel %vm7973_vm5, %v2760_v43, %v2745_v60  ;;  %v6791_v47 = vpop.permute.xlu2 %2666  ;;  %vm7987_vm5 = vmmov %vm7977_vm14 }
 0x7f5   :  { %v3014_v43 = vcvt.s32.f32 %v6783_v2 }
 0x7f6   :  { %v2589_v62 = vpop.permute.xlu0 %2588 }
 0x7f7   :  { %v2761_v56 = vperm.slane %v2589_v62, %v7408_v27 }
 0x7f9   :  { %v2763_v24 = vsel %vm939_vm2, %v2762_v31, %v2761_v56  ;;  %v6796_v31 = vmul.u32 32, %v6789_v41  ;;  %v2796_v56 = vperm.slane %v2646_v9, %v4534_v7 }
 0x7fa   :  { %v2765_v12 = vsel %vm7974_vm4, %v2764_v59, %v2763_v24  ;;  %v3016_v59 = vmul.f32 0.015625, %v3014_v43  ;;  %v2798_v24 = vperm.slane %v6720_v16, %v4527_v14  ;;  %vm7988_vm4 = vmmov %vm7978_vm8  ;;  %v2802_v16 = vperm.slane %v2655_v46, %v4561_v33 }
 0x7fc   :  { %2705 = vperm.xlu0 %3359, %v2530_v13   ;;  %vm3312_vm1 = vcmp.lt.s32.totalorder %v3016_v59, 0 }
 0x7fe   :  { %v2598_v17 = vpop.permute.xlu0 %2597 }
 0x7ff   :  { %v2766_v39 = vperm.slane %v2598_v17, %v4534_v7  ;;  %v3087_v17 = vcvt.s32.f32 %v6796_v31 }
 0x801   :  { %v2767_v51 = vsel %vm7977_vm14, %v2766_v39, %v2765_v12  ;;  %v3313_v39 = vceil.f32 %v3016_v59  ;;  %vm7989_vm14 = vmmov %vm7984_vm7 }
 0x802   :  { %v2769_v58 = vsel %vm7978_vm8, %v2768_v15, %v2767_v51  ;;  %v3314_v15 = vfloor.f32 %v3016_v59  ;;  %v6806_v51 = vpop.permute.xlu2 %2669  ;;  %vm7990_vm8 = vcmask 1044484  }
 0x803   :  { %v2771_v61 = vsel %vm955_vm13, %v2770_v35, %v2769_v58  ;;  %v2658_v35 = vpop.permute.xlu1 %2657 }
 0x806   :  { %v2607_v36 = vpop.permute.xlu0 %2606 }
 0x807   :  { %v2772_v44 = vperm.slane %v2607_v36, %v4561_v33  ;;  %v3089_v36 = vmul.f32 0.015625, %v3087_v17 }
 0x809   :  { %v2773_v20 = vsel %vm959_vm6, %v2772_v44, %v2771_v61  ;;  %v3315_v44 = vsel %vm3312_vm1, %v3313_v39, %v3314_v15  ;;  %vm7993_vm1 = vcmask 261312  }
 0x80a   :  { %v2775_v53 = vsel %vm7979_vm12, %v2774_v28, %v2773_v20  ;;  %vm3327_vm12 = vcmp.lt.s32.totalorder %v3089_v36, 0 }
 0x80b   :  { %v2852_v6 = vsel %vm7980_vm9, %v2775_v53, %v2851_v23  ;;  %v2721_v17 = vpop.permute.xlu1 %2720 }
 0x80e   :  { %v2616_v25 = vpop.permute.xlu0 %2615 }
 0x80f   :  { %v2777_v60 = vperm.slane %v2616_v25, %v4510_v55  ;;  %v3328_v25 = vceil.f32 %v3089_v36 }
 0x811   :  { %v2778_v30 = vsel %vm939_vm2, %v2777_v60, %v2776_v34  ;;  %v3329_v34 = vfloor.f32 %v3089_v36 }
 0x812   :  { %v2780_v52 = vsel %vm7981_vm11, %v2779_v26, %v2778_v30  ;;  %v2712_v30 = vpop.permute.xlu2 %2711 }
 0x813   :  { %v2782_v21 = vsel %vm7982_vm15, %v2781_v10, %v2780_v52  ;;  %v3330_v10 = vsel %vm3327_vm12, %v3328_v25, %v3329_v34  ;;  %v2809_v25 = vperm.slane %v6791_v47, %v4513_v48  ;;  %vm7996_vm12 = vcmask 326912  }
 0x816   :  { %v2625_v22 = vpop.permute.xlu0 %2624 }
 0x817   :  { %v2783_v4 = vperm.slane %v2625_v22, %v4527_v14 }
 0x819   :  { %v2784_v19 = vsel %vm7983_vm10, %v2783_v4, %v2782_v21  ;;  %v3331_v21 = vcvt.f32.s32 %v3330_v10 }
 0x81a   :  { %v2786_v57 = vsel %vm955_vm13, %v2785_v38, %v2784_v19  ;;  %v2715_v46 = vpop.permute.xlu2 %2714 }
 0x81b   :  { %v2788_v18 = vsel %vm959_vm6, %v2787_v45, %v2786_v57  ;;  %v3093_v38 = vmul.u32 64, %v3331_v21  ;;  %v3297_v19 = vadd.s32 4294967295, %v3331_v21  ;;  %v2839_v34 = vperm.slane %v2715_v46, %v4513_v48 }
 0x81d   :  { %vm3095_vm11 = vcmp.gt.s32.totalorder %v3093_v38, %v6796_v31 }
 0x81e   :  { %v2634_v11 = vpop.permute.xlu0 %2633 }
 0x81f   :  { %v2789_v42 = vperm.slane %v2634_v11, %v4564_v32 }
 0x821   :  { %v2790_v50 = vsel %vm7984_vm7, %v2789_v42, %v2788_v18  ;;  %v3099_v18 = vsel %vm3095_vm11, %v3297_v19, %v3331_v21  ;;  %vm7998_vm11 = vmmov %vm7996_vm12 }
 0x822   :  { %v2853_v1 = vsel %vm7985_vm3, %v2790_v50, %v2852_v6  ;;  %v3316_v6 = vcvt.f32.s32 %v3315_v44  ;;  %v3101_v42 = vadd.s32 1, %v3099_v18  ;;  %v2718_v50 = vpop.permute.xlu2 %2717  ;;  %v2837_v44 = vperm.slane %v2712_v30, %v4510_v55 }
 0x823   :  { %v2841_v21 = vperm.slane %v2718_v50, %v4534_v7 }
 0x824   :  { %v3020_v9 = vmul.u32 64, %v3316_v6  ;;  %v3288_v52 = vadd.s32 4294967295, %v3316_v6  ;;  %v3103_v43 = vmul.u32 64, %v3101_v42 }
 0x826   :  { %v2643_v23 = vpop.permute.xlu0 %2642  ;;  %vm3022_vm9 = vcmp.gt.s32.totalorder %v3020_v9, %v6783_v2  ;;  %vm3105_vm10 = vcmp.le.s32.totalorder %v3103_v43, %v6796_v31  ;;  %v2724_v9 = vpop.permute.xlu1 %2723 }
 0x827   :  { %v2794_v62 = vperm.slane %v2643_v23, %v4513_v48  ;;  %v3026_v4 = vsel %vm3022_vm9, %v3288_v52, %v3316_v6  ;;  %v3107_v59 = vsel %vm3105_vm10, %v3101_v42, %v3099_v18  ;;  %v2811_v52 = vperm.slane %v6806_v51, %v4534_v7  ;;  %vm7997_vm9 = vmmov %vm7993_vm1 }
 0x828   :  { %v3028_v45 = vadd.s32 1, %v3026_v4  ;;  %v3299_v15 = vadd.s32 4294967295, %v3107_v59  ;;  %v2813_v51 = vperm.slane %v6774_v37, %v4527_v14  ;;  %v2845_v37 = vperm.slane %v2724_v9, %v4539_v3 }
 0x829   :  { %v2795_v12 = vsel %vm7986_vm0, %v2794_v62, %v6666_v63  ;;  %v2804_v63 = vperm.slane %v2658_v35, %v4564_v32 }
 0x82a   :  { %v2797_v49 = vsel %vm7987_vm5, %v2796_v56, %v2795_v12  ;;  %v3030_v57 = vmul.u32 64, %v3028_v45  ;;  %vm7991_vm5 = vcmask 195712  }
 0x82b   :  { %v2799_v13 = vsel %vm7988_vm4, %v2798_v24, %v2797_v49  ;;  %v2700_v24 = vpop.permute.xlu2 %2699  ;;  %vm7992_vm4 = vmmov %vm7991_vm5 }
 0x82c   :  { %vm3032_vm15 = vcmp.le.s32.totalorder %v3030_v57, %v6783_v2  ;;  %v2843_v57 = vperm.slane %v2721_v17, %v4527_v14 }
 0x82e   :  { %v2652_v58 = vpop.permute.xlu0 %2651 }
 0x82f   :  { %v2800_v61 = vperm.slane %v2652_v58, %v4539_v3 }
 0x831   :  { %v2801_v28 = vsel %vm955_vm13, %v2800_v61, %v2799_v13  ;;  %v3109_v13 = vmul.u32 64, %v3107_v59 }
 0x832   :  { %v2803_v20 = vsel %vm959_vm6, %v2802_v16, %v2801_v28  ;;  %v2806_v16 = vperm.slane %v6739_v29, %v7408_v27  ;;  %v2821_v29 = vperm.slane %v6749_v40, %v7408_v27 }
 0x833   :  { %v2805_v53 = vsel %vm7989_vm14, %v2804_v63, %v2803_v20  ;;  %vm3111_vm3 = vcmp.gt.s32.totalorder %v3109_v13, %v6796_v31  ;;  %v2703_v28 = vpop.permute.xlu2 %2702  ;;  %vm7994_vm14 = vmmov %vm7993_vm1 }
 0x834   :  { %v6815_v60 = vsel %vm7990_vm8, %v2805_v53, %v2853_v1  ;;  %v3034_v1 = vsel %vm3032_vm15, %v3028_v45, %v3026_v4  ;;  %v3115_v36 = vsel %vm3111_vm3, %v3299_v15, %v3107_v59  ;;  %vm7995_vm8 = vmmov %vm7992_vm4  ;;  %vm8001_vm3 = vcmask 1045509  }
 0x835   :  { %v3036_v62 = vmul.u32 64, %v3034_v1  ;;  %v3290_v56 = vadd.s32 4294967295, %v3034_v1  ;;  %v3117_v6 = vadd.s32 1, %v3115_v36  ;;  %vm7999_vm15 = vmmov %vm7998_vm11 }
 0x836   :  { %v2664_v26 = vpop.permute.xlu0 %2663 }
 0x837   :  { %vm3038_vm7 = vcmp.gt.s32.totalorder %v3036_v62, %v6783_v2  ;;  %v2807_v35 = vperm.slane %v2664_v26, %v4510_v55  ;;  %v3119_v4 = vmul.u32 64, %v3117_v6  ;;  %v2830_v62 = vperm.slane %v2700_v24, %v4539_v3 }
 0x838   :  { %v3042_v49 = vsel %vm3038_vm7, %v3290_v56, %v3034_v1  ;;  %v2815_v1 = vperm.slane %v6787_v5, %v4539_v3  ;;  %vm8000_vm7 = vcmask 523712  }
 0x839   :  { %v3044_v39 = vadd.s32 1, %v3042_v49  ;;  %v2808_v20 = vsel %vm939_vm2, %v2807_v35, %v2806_v16 }
 0x83a   :  { %v2810_v10 = vsel %vm7991_vm5, %v2809_v25, %v2808_v20  ;;  %vm8004_vm5 = vmmov %vm8000_vm7 }
 0x83b   :  { %v3046_v61 = vmul.u32 64, %v3044_v39  ;;  %v2812_v40 = vsel %vm7993_vm1, %v2811_v52, %v2810_v10 }
 0x83d   :  { %vm3048_vm0 = vcmp.le.s32.totalorder %v3046_v61, %v6783_v2 }
 0x83e   :  { %v2688_v22 = vpop.permute.xlu0 %2687  ;;  %v3050_v47 = vsel %vm3048_vm0, %v3044_v39, %v3042_v49  ;;  %v2730_v49 = vpop.permute.xlu1 %2729  ;;  %v2832_v39 = vperm.slane %v2703_v28, %v4561_v33  ;;  %vm8003_vm0 = vcmask 1046534  }
 0x83f   :  { %v2822_v26 = vperm.slane %v2688_v22, %v4510_v55  ;;  %v2824_v22 = vperm.slane %v6759_v8, %v4513_v48  ;;  %v3052_v18 = vmul.u32 64, %v3050_v47  ;;  %v3292_v42 = vadd.s32 4294967295, %v3050_v47 }
 0x840   :  { %v2814_v8 = vsel %vm7998_vm11, %v2813_v51, %v2812_v40 }
 0x841   :  { %v2823_v38 = vsel %vm939_vm2, %v2822_v26, %v2821_v29  ;;  %vm3054_vm10 = vcmp.gt.s32.totalorder %v3052_v18, %v6783_v2  ;;  %v2816_v56 = vsel %vm955_vm13, %v2815_v1, %v2814_v8 }
 0x842   :  { %v3058_v3 = vsel %vm3054_vm10, %v3292_v42, %v3050_v47  ;;  %vm2929_vm10 = vcmask 130048  }
 0x843   :  { %v3060_v20 = vadd.s32 1, %v3058_v3 }
 0x846   :  { %v2709_v11 = vpop.permute.xlu0 %2708 }
 0x847   :  { %v2836_v58 = vperm.slane %v2709_v11, %v7408_v27  ;;  %v2825_v11 = vsel %vm7995_vm8, %v2824_v22, %v2823_v38  ;;  %v6888_v22 = vld [vmem:[#allocation3] sm:$0xff] }
 0x849   :  { %v2838_v53 = vsel %vm939_vm2, %v2837_v44, %v2836_v58  ;;  %vm3121_vm2 = vcmp.le.s32.totalorder %v3119_v4, %v6796_v31 }
 0x84a   :  { %v2840_v30 = vsel %vm7992_vm4, %v2839_v34, %v2838_v53  ;;  %vm8005_vm4 = vcmask 1047559   ;;  %v3062_v34 = vmul.u32 64, %v3060_v20 }
 0x84b   :  { %v2842_v45 = vsel %vm7994_vm14, %v2841_v21, %v2840_v30  ;;  %vm8006_vm14 = vcmask 523264  }
 0x84c   :  { %v2844_v48 = vsel %vm7996_vm12, %v2843_v57, %v2842_v45 }
 0x84d   :  { %v2846_v59 = vsel %vm955_vm13, %v2845_v37, %v2844_v48 }
 0x84e   :  { %v2694_v23 = vpop.permute.xlu0 %2693 }
 0x84f   :  { %v2826_v55 = vperm.slane %v2694_v23, %v4534_v7 }
 0x851   :  { %v2827_v7 = vsel %vm7997_vm9, %v2826_v55, %v2825_v11 }
 0x856   :  { %v2697_v12 = vpop.permute.xlu0 %2696 }
 0x857   :  { %v2828_v19 = vperm.slane %v2697_v12, %v4527_v14  ;;  %v2727_v14 = vpop.permute.xlu2 %2726  ;;  %v3123_v12 = vsel %vm3121_vm2, %v3117_v6, %v3115_v36  ;;  %v2849_v36 = vperm.slane %v2730_v49, %v4564_v32 }
 0x858   :  { %v2847_v13 = vperm.slane %v2727_v14, %v4561_v33  ;;  %v3125_v61 = vmul.u32 64, %v3123_v12  ;;  %v3301_v53 = vadd.s32 4294967295, %v3123_v12 }
 0x859   :  { %v2829_v43 = vsel %vm7999_vm15, %v2828_v19, %v2827_v7 }
 0x85a   :  { %v2831_v5 = vsel %vm955_vm13, %v2830_v62, %v2829_v43  ;;  %v2848_v58 = vsel %vm959_vm6, %v2847_v13, %v2846_v59  ;;  %vm8002_vm13 = vmmov %vm8000_vm7  ;;  %vm3127_vm1 = vcmp.gt.s32.totalorder %v3125_v61, %v6796_v31 }
 0x85b   :  { %v2833_v16 = vsel %vm959_vm6, %v2832_v39, %v2831_v5  ;;  %v2850_v28 = vsel %vm8004_vm5, %v2849_v36, %v2848_v58  ;;  %v3131_v26 = vsel %vm3127_vm1, %v3301_v53, %v3123_v12  ;;  %v6905_v5 = vmul.u32 32, %v6888_v22 }
 0x85d   :  { %v3086_v39 = vcvt.s32.f32 %v6905_v5 }
 0x85e   :  { %v2679_v63 = vpop.permute.xlu0 %2678 }
 0x85f   :  { %v2817_v50 = vperm.slane %v2679_v63, %v4561_v33 }
 0x861   :  { %v2818_v17 = vsel %vm959_vm6, %v2817_v50, %v2816_v56  ;;  %vm3064_vm6 = vcmp.le.s32.totalorder %v3062_v34, %v6783_v2 }
 0x862   :  { %v3066_v9 = vsel %vm3064_vm6, %v3060_v20, %v3058_v3 }
 0x863   :  { %v3068_v30 = vmul.u32 64, %v3066_v9  ;;  %v3294_v52 = vadd.s32 4294967295, %v3066_v9 }
 0x865   :  { %vm3070_vm2 = vcmp.gt.s32.totalorder %v3068_v30, %v6783_v2 }
 0x866   :  { %v2682_v46 = vpop.permute.xlu0 %2681  ;;  %v3074_v47 = vsel %vm3070_vm2, %v3294_v52, %v3066_v9 }
 0x867   :  { %v2819_v23 = vperm.slane %v2682_v46, %v4564_v32  ;;  %v3076_v38 = vadd.s32 1, %v3074_v47 }
 0x869   :  { %v2820_v15 = vsel %vm8000_vm7, %v2819_v23, %v2818_v17  ;;  %v3078_v40 = vmul.u32 64, %v3076_v38 }
 0x86a   :  { %v2855_v44 = vsel %vm8001_vm3, %v2820_v15, %v6815_v60  ;;  %v3133_v60 = vadd.s32 1, %v3131_v26 }
 0x86b   :  { %vm3080_vm9 = vcmp.le.s32.totalorder %v3078_v40, %v6783_v2  ;;  %v6896_v2 = vld [vmem:[#allocation2 + $0x8] sm:$0xff] }
 0x86c   :  { %v3135_v10 = vmul.u32 64, %v3133_v60  ;;  %v3082_v46 = vsel %vm3080_vm9, %v3076_v38, %v3074_v47  ;;  %v6899_v50 = vmul.u32 32, %v6896_v2  ;;  %vm8007_vm9 = vcmask 7168  }
 0x86e   :  { %v2706_v35 = vpop.permute.xlu0 %2705  ;;  %vm3137_vm8 = vcmp.le.s32.totalorder %v3135_v10, %v6796_v31  ;;  %v3015_v1 = vcvt.s32.f32 %v6899_v50 }
 0x86f   :  { %v2834_v24 = vperm.slane %v2706_v35, %v4564_v32  ;;  %v3139_v21 = vsel %vm3137_vm8, %v3133_v60, %v3131_v26  ;;  %v3088_v35 = vmul.f32 0.015625, %v3086_v39 }
 0x870   :  { %v3141_v4 = vmul.u32 64, %v3139_v21  ;;  %v3303_v55 = vadd.s32 4294967295, %v3139_v21  ;;  %v3017_v37 = vmul.f32 0.015625, %v3015_v1 }
 0x871   :  { %v2835_v63 = vsel %vm8002_vm13, %v2834_v24, %v2833_v16  ;;  %v3323_v24 = vceil.f32 %v3088_v35  ;;  %v3324_v58 = vfloor.f32 %v3088_v35  ;;  %vm3322_vm5 = vcmp.lt.s32.totalorder %v3088_v35, 0 }
 0x872   :  { %v2856_v33 = vsel %vm8003_vm0, %v2835_v63, %v2855_v44  ;;  %vm3143_vm12 = vcmp.gt.s32.totalorder %v3141_v4, %v6796_v31  ;;  %v3318_v14 = vceil.f32 %v3017_v37  ;;  %v3319_v43 = vfloor.f32 %v3017_v37  ;;  %v2884_v4 = vld [vmem:[#allocation4 + $0x8] sm:$0xff] }
 0x873   :  { %v2857_v6 = vsel %vm8005_vm4, %v2850_v28, %v2856_v33  ;;  %v3147_v45 = vsel %vm3143_vm12, %v3303_v55, %v3139_v21  ;;  %vm3317_vm7 = vcmp.lt.s32.totalorder %v3017_v37, 0  ;;  %v3325_v16 = vsel %vm3322_vm5, %v3323_v24, %v3324_v58 }
 0x874   :  { %v2858_v25 = vsel %vm8006_vm14, %v2857_v6, 2147483648  ;;  %v3149_v19 = vadd.s32 1, %v3147_v45  ;;  %v3320_v23 = vsel %vm3317_vm7, %v3318_v14, %v3319_v43  ;;  %v3326_v44 = vcvt.f32.s32 %v3325_v16 }
 0x875   :  { %v2860_v32 = vshra.s32 %v2858_v25, 16  ;;  %v2859_v18 = vand.u32 65535, %v2858_v25  ;;  %v3321_v62 = vcvt.f32.s32 %v3320_v23  ;;  %v8008_v14 = vmov 0   ;;  %v2902_v23 = vld [vmem:[#allocation5] sm:$0xff] }
 0x876   :  { %v3151_v51 = vmul.u32 64, %v3149_v19  ;;  %v3092_v20 = vmul.u32 64, %v3326_v44  ;;  %v3296_v33 = vadd.s32 4294967295, %v3326_v44 }
 0x877   :  { %v2862_v29 = vcvt.s32.f32 %v2860_v32  ;;  %v2861_v42 = vcvt.s32.f32 %v2859_v18  ;;  %v3021_v56 = vmul.u32 64, %v3321_v62  ;;  %v3289_v59 = vadd.s32 4294967295, %v3321_v62 }
 0x878   :  { %vm3153_vm11 = vcmp.le.s32.totalorder %v3151_v51, %v6796_v31  ;;  %vm3094_vm1 = vcmp.gt.s32.totalorder %v3092_v20, %v6905_v5  ;;  %v2923_v20 = vpop.permute.xlu1 %2922 }
 0x879   :  { %2863 = vmax.xlane.f32.xlu0 %v2862_v29  ;;  %v3155_v57 = vsel %vm3153_vm11, %v3149_v19, %v3147_v45  ;;  %vm3023_vm3 = vcmp.gt.s32.totalorder %v3021_v56, %v6899_v50  ;;  %v3098_v6 = vsel %vm3094_vm1, %v3296_v33, %v3326_v44  ;;  %vm2904_vm1 = vcmp.ge.s32.totalorder %v6546_v54, 0 }
 0x87a   :  { %v3027_v12 = vsel %vm3023_vm3, %v3289_v59, %v3321_v62  ;;  %v3100_v32 = vadd.s32 1, %v3098_v6  ;;  %v2908_v59 = vsub.s32 %v6546_v54, %v6779_v0 }
 0x87b   :  { %v3029_v49 = vadd.s32 1, %v3027_v12 }
 0x87c   :  { %v3102_v26 = vmul.u32 64, %v3100_v32 }
 0x87d   :  { %v3031_v13 = vmul.u32 64, %v3029_v49 }
 0x87e   :  { %vm3104_vm6 = vcmp.le.s32.totalorder %v3102_v26, %v6905_v5 }
 0x87f   :  { %vm3033_vm13 = vcmp.le.s32.totalorder %v3031_v13, %v6899_v50  ;;  %v3106_v10 = vsel %vm3104_vm6, %v3100_v32, %v3098_v6 }
 0x880   :  { %v3035_v17 = vsel %vm3033_vm13, %v3029_v49, %v3027_v12  ;;  %v3108_v47 = vmul.u32 64, %v3106_v10  ;;  %v3298_v55 = vadd.s32 4294967295, %v3106_v10  ;;  %v2906_v49 = vsub.s32 %v2902_v23, %v6888_v22 }
 0x881   :  { %v3037_v15 = vmul.u32 64, %v3035_v17  ;;  %v3291_v3 = vadd.s32 4294967295, %v3035_v17 }
 0x882   :  { %vm3110_vm12 = vcmp.gt.s32.totalorder %v3108_v47, %v6905_v5  ;;  %v2910_v13 = vmul.u32 %v2908_v59, %v2906_v49 }
 0x883   :  { %vm3039_vm0 = vcmp.gt.s32.totalorder %v3037_v15, %v6899_v50 }
 0x884   :  { %v3043_v61 = vsel %vm3039_vm0, %v3291_v3, %v3035_v17 }
 0x885   :  { %v3045_v36 = vadd.s32 1, %v3043_v61 }
 0x887   :  { %v3047_v63 = vmul.u32 64, %v3045_v36 }
 0x889   :  { %vm3049_vm4 = vcmp.le.s32.totalorder %v3047_v63, %v6899_v50 }
 0x88a   :  { %v3051_v28 = vsel %vm3049_vm4, %v3045_v36, %v3043_v61  ;;  %vm2912_vm4 = vcmp.ge.s32.totalorder %v2910_v13, 1 }
 0x88b   :  { %v3053_v53 = vmul.u32 64, %v3051_v28  ;;  %v3293_v25 = vadd.s32 4294967295, %v3051_v28 }
 0x88d   :  { %2977 = vperm.xlu0 %3359, %v6888_v22   ;;  %vm3055_vm14 = vcmp.gt.s32.totalorder %v3053_v53, %v6899_v50 }
 0x88e   :  { %v3059_v34 = vsel %vm3055_vm14, %v3293_v25, %v3051_v28  ;;  %vm2914_vm14 = vmand %vm2904_vm1, %vm2912_vm4 }
 0x88f   :  { %v2956_v3 = vsel %vm2914_vm14, 1, %v8008_v14 }
 0x895   :  { %3229 = vperm.xlu0 %3359, %v3082_v46   ;;  %v3114_v46 = vsel %vm3110_vm12, %v3298_v55, %v3106_v10 }
 0x89d   :  { %3240 = vperm.xlu0 %3359, %v3155_v57   ;;  %v3116_v57 = vadd.s32 1, %v3114_v46 }
 0x8ec   :  { %v2864_v11 = vpop.xlane.xlu0 %2863 }
 0x8ed   :  { %vm2865_vm15 = vcmp.eq.f32.partialorder %v2862_v29, %v2864_v11  ;;  %v3061_v29 = vadd.s32 1, %v3059_v34  ;;  %v2870_v60 = vcvt.f32.s32 %v2864_v11  ;;  %v2903_v11 = vld [vmem:[#allocation5 + $0x8] sm:$0xff] }
 0x8ee   :  { %v2866_v48 = vsel %vm2865_vm15, %v2861_v42, -inf }
 0x8ef   :  { %2867 = vmax.xlane.f32.xlu2 %v2866_v48  ;;  %v3063_v9 = vmul.u32 64, %v3061_v29  ;;  %v2871_v52 = vshll.u32 %v2870_v60, 16  ;;  %v2907_v48 = vsub.s32 %v2903_v11, %v6789_v41 }
 0x8f1   :  { %vm3065_vm8 = vcmp.le.s32.totalorder %v3063_v9, %v6899_v50 }
 0x8f2   :  { %v3067_v40 = vsel %vm3065_vm8, %v3061_v29, %v3059_v34 }
 0x8f3   :  { %v3069_v19 = vmul.u32 64, %v3067_v40  ;;  %v3295_v51 = vadd.s32 4294967295, %v3067_v40 }
 0x8f5   :  { %vm3071_vm11 = vcmp.gt.s32.totalorder %v3069_v19, %v6899_v50 }
 0x8ff   :  { %v6893_v7 = vpop.permute.xlu0 %2977 }
 0x907   :  { %v3230_v8 = vpop.permute.xlu0 %3229 }
 0x908   :  { %3234 = vst.msk [vmem:[#allocation9] sm:$0xff] %vm2929_vm10, %v3230_v8  ;;  %v3075_v8 = vsel %vm3071_vm11, %v3295_v51, %v3067_v40 }
 0x909   :  { %v3077_v37 = vadd.s32 1, %v3075_v8 }
 0x90b   :  { %v3079_v62 = vmul.u32 64, %v3077_v37 }
 0x90d   :  { %vm3081_vm0 = vcmp.le.s32.totalorder %v3079_v62, %v6899_v50 }
 0x90e   :  { %v3083_v39 = vsel %vm3081_vm0, %v3077_v37, %v3075_v8 }
 0x90f   :  { %v3241_v31 = vpop.permute.xlu0 %3240 }
 0x910   :  { %3244 = vst.msk [vmem:[#allocation9 + $0x18] sm:$0xff] %vm2929_vm10, %v3241_v31  ;;  %v3118_v31 = vmul.u32 64, %v3116_v57 }
 0x912   :  { %vm3120_vm3 = vcmp.le.s32.totalorder %v3118_v31, %v6905_v5 }
 0x913   :  { %v3122_v56 = vsel %vm3120_vm3, %v3116_v57, %v3114_v46 }
 0x914   :  { %v3124_v12 = vmul.u32 64, %v3122_v56  ;;  %v3300_v17 = vadd.s32 4294967295, %v3122_v56 }
 0x916   :  { %vm3126_vm5 = vcmp.gt.s32.totalorder %v3124_v12, %v6905_v5 }
 0x917   :  { %v3130_v15 = vsel %vm3126_vm5, %v3300_v17, %v3122_v56 }
 0x918   :  { %v3132_v35 = vadd.s32 1, %v3130_v15 }
 0x91a   :  { %v3134_v24 = vmul.u32 64, %v3132_v35 }
 0x91c   :  { %vm3136_vm6 = vcmp.le.s32.totalorder %v3134_v24, %v6905_v5 }
 0x91d   :  { %v3138_v22 = vsel %vm3136_vm6, %v3132_v35, %v3130_v15 }
 0x91e   :  { %v3140_v50 = vmul.u32 64, %v3138_v22  ;;  %v3302_v58 = vadd.s32 4294967295, %v3138_v22 }
 0x920   :  { %vm3142_vm8 = vcmp.gt.s32.totalorder %v3140_v50, %v6905_v5 }
 0x921   :  { %v3146_v61 = vsel %vm3142_vm8, %v3302_v58, %v3138_v22 }
 0x922   :  { %v3148_v36 = vadd.s32 1, %v3146_v61 }
 0x924   :  { %v3150_v54 = vmul.u32 64, %v3148_v36 }
 0x962   :  { %v2868_v30 = vpop.xlane.xlu2 %2867 }
 0x963   :  { %v2869_v21 = vcvt.f32.s32 %v2868_v30 }
 0x965   :  { %v2872_v38 = vadd.s32 %v2871_v52, %v2869_v21 }
 0x967   :  { %vm2885_vm2 = vcmp.gt.s32.totalorder %v2884_v4, %v2872_v38 }
 0x968   :  { %v2886_v45 = vsel %vm2885_vm2, %v2884_v4, %v2872_v38  ;;  %vm3152_vm2 = vcmp.le.s32.totalorder %v3150_v54, %v6905_v5 }
 0x969   :  { %2887 = vst.msk [vmem:[#allocation4 + $0x8] sm:$0xff] %vm8007_vm9, %v2886_v45  ;;  %v3154_v16 = vsel %vm3152_vm2, %v3148_v36, %v3146_v61 }
 0x970   :  { %v2901_v18 = vld [vmem:[#allocation4 + $0x8] sm:$0xff] }
 0x971   :  { %2925 = vperm.xlu1 %3361, %v2901_v18   ;;  %v2909_v42 = vsub.s32 %v2901_v18, %v6896_v2  ;;  %vm2905_vm15 = vcmp.ge.s32.totalorder %v2901_v18, 0 }
 0x973   :  { %v2911_v1 = vmul.u32 %v2909_v42, %v2907_v48 }
 0x975   :  { %vm2913_vm7 = vcmp.ge.s32.totalorder %v2911_v1, 1 }
 0x976   :  { %vm2915_vm13 = vmand %vm2905_vm15, %vm2913_vm7 }
 0x977   :  { %v2957_v43 = vsel %vm2915_vm13, 1, %v8008_v14 }
 0x978   :  { %2962 = vperm.xlu2 %3360, %v2957_v43  }
 0x979   :  { %2940 = vperm.xlu1 %3361, %v2902_v23  }
 0x980   :  { %3232 = vperm.xlu2 %3360, %v3083_v39  }
 0x981   :  { %2943 = vperm.xlu1 %3361, %v2903_v11  }
 0x989   :  { %2959 = vperm.xlu1 %3361, %v2956_v3  }
 0x991   :  { %2980 = vperm.xlu1 %3361, %v6789_v41   ;;  %v8009_v41 = vld [vmem:[#allocation20_spill] sm:$0xff] }
 0x992   :  { %vm2919_vm12 = vcmp.eq.s32.totalorder %v8009_v41, %v7408_v27  ;;  %vm2994_vm13 = vcmp.lt.s32.totalorder %v8009_v41, %v7408_v27 }
 0x999   :  { %2985 = vperm.xlu1 %3361, %v6779_v0   ;;  %v2927_v0 = vsel %vm2919_vm12, %v2923_v20, 0 }
 0x99a   :  { %v2930_v28 = vsel %vm2929_vm10, %v2927_v0, 0 }
 0x9a1   :  { %2988 = vperm.xlu1 %3361, %v6896_v2   ;;  %v8010_v2 = vld [vmem:[#allocation21_spill] sm:$0xff] }
 0x9a2   :  { %vm2920_vm9 = vcmp.eq.s32.totalorder %v8010_v2, %v7408_v27 }
 0x9a9   :  { %3237 = vperm.xlu1 %3361, %v3154_v16  }
 0x9d2   :  { %v6935_v44 = vpop.permute.xlu2 %2962 }
 0x9d3   :  { %v2965_v19 = vsel %vm2920_vm9, %v6935_v44, 0 }
 0x9d4   :  { %v2967_v8 = vsel %vm2929_vm10, %v2965_v19, 0 }
 0x9da   :  { %v3233_v63 = vpop.permute.xlu2 %3232 }
 0x9db   :  { %3235 = vst.msk [vmem:[#allocation9 + $0x8] sm:$0xff] %vm2929_vm10, %v3233_v63 }
 0x9e3   :  { %v2926_v33 = vpop.permute.xlu1 %2925 }
 0x9e4   :  { %v2928_v5 = vsel %vm2920_vm9, %v2926_v33, 0 }
 0x9e5   :  { %v2931_v53 = vsel %vm2929_vm10, %v2928_v5, 0 }
 0x9e6   :  { %v2932_v6 = vadd.s32 %v2931_v53, %v2930_v28 }
 0x9e8   :  { %v2933_v25 = vrot.slane %v2932_v6, 4 }
 0x9ea   :  { %v2934_v32 = vadd.s32 %v2933_v25, %v2932_v6 }
 0x9eb   :  { %v2941_v34 = vpop.permute.xlu1 %2940 }
 0x9ec   :  { %v2935_v26 = vrot.slane %v2934_v32, 2  ;;  %v2945_v9 = vsel %vm2919_vm12, %v2941_v34, 0 }
 0x9ed   :  { %v2947_v47 = vsel %vm2929_vm10, %v2945_v9, 0 }
 0x9ee   :  { %v2936_v29 = vadd.s32 %v2935_v26, %v2934_v32 }
 0x9f0   :  { %v2937_v60 = vrot.slane %v2936_v29, 1 }
 0x9f2   :  { %v6953_v10 = vadd.s32 %v2937_v60, %v2936_v29 }
 0x9f3   :  { %v2944_v30 = vpop.permute.xlu1 %2943 }
 0x9f4   :  { %v2946_v52 = vsel %vm2920_vm9, %v2944_v30, 0  ;;  %v6959_v21 = vmul.u32 32, %v6953_v10  ;;  %vm2995_vm9 = vcmp.lt.s32.totalorder %v8010_v2, %v7408_v27 }
 0x9f5   :  { %v2948_v4 = vsel %vm2929_vm10, %v2946_v52, 0 }
 0x9f6   :  { %v2949_v38 = vadd.s32 %v2948_v4, %v2947_v47  ;;  %v3157_v55 = vcvt.s32.f32 %v6959_v21 }
 0x9f8   :  { %v2950_v40 = vrot.slane %v2949_v38, 4  ;;  %v3158_v45 = vmul.f32 0.015625, %v3157_v55 }
 0x9fa   :  { %v2951_v46 = vadd.s32 %v2950_v40, %v2949_v38  ;;  %v3333_v51 = vceil.f32 %v3158_v45  ;;  %v3334_v57 = vfloor.f32 %v3158_v45  ;;  %vm3332_vm11 = vcmp.lt.s32.totalorder %v3158_v45, 0 }
 0x9fb   :  { %v2960_v18 = vpop.permute.xlu1 %2959 }
 0x9fc   :  { %v2952_v11 = vrot.slane %v2951_v46, 2  ;;  %v2964_v42 = vsel %vm2919_vm12, %v2960_v18, 0  ;;  %v3335_v48 = vsel %vm3332_vm11, %v3333_v51, %v3334_v57  ;;  %vm2996_vm0 = vcmp.eq.s32.totalorder %v2960_v18, 1 }
 0x9fd   :  { %v2966_v31 = vsel %vm2929_vm10, %v2964_v42, 0  ;;  %v3336_v1 = vcvt.f32.s32 %v3335_v48  ;;  %vm2998_vm1 = vmand %vm2994_vm13, %vm2996_vm0  ;;  %vm2997_vm11 = vcmp.eq.s32.totalorder %v6935_v44, 1 }
 0x9fe   :  { %v2953_v37 = vadd.s32 %v2952_v11, %v2951_v46  ;;  %v2968_v43 = vadd.s32 %v2967_v8, %v2966_v31 }
 0x9ff   :  { %v3160_v23 = vmul.u32 64, %v3336_v1  ;;  %v3304_v62 = vadd.s32 4294967295, %v3336_v1 }
 0xa00   :  { %v2969_v56 = vrot.slane %v2968_v43, 4  ;;  %v2954_v59 = vrot.slane %v2953_v37, 1 }
 0xa01   :  { %vm3161_vm15 = vcmp.gt.s32.totalorder %v3160_v23, %v6959_v21 }
 0xa02   :  { %v2970_v12 = vadd.s32 %v2969_v56, %v2968_v43  ;;  %v2955_v49 = vadd.s32 %v2954_v59, %v2953_v37  ;;  %v3163_v13 = vsel %vm3161_vm15, %v3304_v62, %v3336_v1 }
 0xa03   :  { %v2981_v17 = vpop.permute.xlu1 %2980  ;;  %v3164_v39 = vadd.s32 1, %v3163_v13 }
 0xa04   :  { %v2971_v15 = vrot.slane %v2970_v12, 2  ;;  %v6974_v35 = vmul.u32 32, %v2955_v49  ;;  %v2982_v33 = vsub.s32 %v2955_v49, %v6893_v7  ;;  %v2983_v4 = vsub.s32 %v2955_v49, %v2981_v17 }
 0xa05   :  { %v3165_v3 = vmul.u32 64, %v3164_v39 }
 0xa06   :  { %v2972_v24 = vadd.s32 %v2971_v15, %v2970_v12  ;;  %v3193_v22 = vcvt.s32.f32 %v6974_v35 }
 0xa07   :  { %vm3166_vm7 = vcmp.le.s32.totalorder %v3165_v3, %v6959_v21 }
 0xa08   :  { %v2973_v50 = vrot.slane %v2972_v24, 1  ;;  %v3194_v58 = vmul.f32 0.015625, %v3193_v22  ;;  %v3167_v61 = vsel %vm3166_vm7, %v3164_v39, %v3163_v13  ;;  %vm2999_vm7 = vmand %vm2995_vm9, %vm2997_vm11 }
 0xa09   :  { %v3168_v36 = vmul.u32 64, %v3167_v61  ;;  %v3305_v54 = vadd.s32 4294967295, %v3167_v61 }
 0xa0a   :  { %v2974_v16 = vadd.s32 %v2973_v50, %v2972_v24  ;;  %v3338_v63 = vceil.f32 %v3194_v58  ;;  %v3339_v20 = vfloor.f32 %v3194_v58  ;;  %vm3337_vm3 = vcmp.lt.s32.totalorder %v3194_v58, 0 }
 0xa0b   :  { %v2986_v0 = vpop.permute.xlu1 %2985  ;;  %vm3169_vm5 = vcmp.gt.s32.totalorder %v3168_v36, %v6959_v21 }
 0xa0c   :  { %v2990_v5 = vsub.s32 %v6953_v10, %v2986_v0  ;;  %v3171_v28 = vsel %vm3169_vm5, %v3305_v54, %v3167_v61  ;;  %v3340_v53 = vsel %vm3337_vm3, %v3338_v63, %v3339_v20  ;;  %vm2975_vm4 = vcmp.gt.s32.totalorder %v2974_v16, 0 }
 0xa0d   :  { %v3172_v6 = vadd.s32 1, %v3171_v28  ;;  %v3341_v25 = vcvt.f32.s32 %v3340_v53  ;;  %vm3002_vm14 = vmand %vm2998_vm1, %vm2975_vm4 }
 0xa0e   :  { %v2992_v32 = vmul.u32 %v2990_v5, %v2982_v33  ;;  %vm3003_vm13 = vmand %vm2999_vm7, %vm2975_vm4 }
 0xa0f   :  { %v3173_v34 = vmul.u32 64, %v3172_v6  ;;  %v3196_v26 = vmul.u32 64, %v3341_v25  ;;  %v3308_v29 = vadd.s32 4294967295, %v3341_v25 }
 0xa10   :  { %vm3004_vm6 = vcmp.ge.s32.totalorder %v2992_v32, 64 }
 0xa11   :  { %vm3006_vm8 = vmand %vm3002_vm14, %vm3004_vm6  ;;  %vm3174_vm2 = vcmp.le.s32.totalorder %v3173_v34, %v6959_v21  ;;  %vm3197_vm12 = vcmp.gt.s32.totalorder %v3196_v26, %v6974_v35 }
 0xa12   :  { %v3008_v7 = vsel %vm3006_vm8, 1, %v8008_v14  ;;  %v3175_v41 = vsel %vm3174_vm2, %v3172_v6, %v3171_v28  ;;  %v3199_v60 = vsel %vm3197_vm12, %v3308_v29, %v3341_v25 }
 0xa13   :  { %3010 = vst.msk [vmem:[#allocation10] sm:$0xff] %vm2929_vm10, %v3008_v7  ;;  %v2989_v9 = vpop.permute.xlu1 %2988  ;;  %v3176_v30 = vmul.u32 64, %v3175_v41  ;;  %v3306_v52 = vadd.s32 4294967295, %v3175_v41  ;;  %v3200_v47 = vadd.s32 1, %v3199_v60 }
 0xa14   :  { %v2991_v38 = vsub.s32 %v6953_v10, %v2989_v9 }
 0xa15   :  { %vm3177_vm15 = vcmp.gt.s32.totalorder %v3176_v30, %v6959_v21  ;;  %v3201_v55 = vmul.u32 64, %v3200_v47 }
 0xa16   :  { %v2993_v40 = vmul.u32 %v2991_v38, %v2983_v4  ;;  %v3179_v45 = vsel %vm3177_vm15, %v3306_v52, %v3175_v41 }
 0xa17   :  { %v3180_v19 = vadd.s32 1, %v3179_v45  ;;  %vm3202_vm3 = vcmp.le.s32.totalorder %v3201_v55, %v6974_v35 }
 0xa18   :  { %vm3005_vm0 = vcmp.ge.s32.totalorder %v2993_v40, 64  ;;  %v3203_v27 = vsel %vm3202_vm3, %v3200_v47, %v3199_v60 }
 0xa19   :  { %vm3007_vm5 = vmand %vm3003_vm13, %vm3005_vm0  ;;  %v3181_v44 = vmul.u32 64, %v3180_v19  ;;  %v3204_v2 = vmul.u32 64, %v3203_v27  ;;  %v3309_v10 = vadd.s32 4294967295, %v3203_v27 }
 0xa1a   :  { %v3009_v46 = vsel %vm3007_vm5, 1, %v8008_v14 }
 0xa1b   :  { %3011 = vst.msk [vmem:[#allocation10 + $0x8] sm:$0xff] %vm2929_vm10, %v3009_v46  ;;  %v3238_v51 = vpop.permute.xlu1 %3237  ;;  %vm3182_vm1 = vcmp.le.s32.totalorder %v3181_v44, %v6959_v21  ;;  %vm3205_vm14 = vcmp.gt.s32.totalorder %v3204_v2, %v6974_v35 }
 0xa1c   :  { %3243 = vst.msk [vmem:[#allocation9 + $0x10] sm:$0xff] %vm2929_vm10, %v3238_v51  ;;  %v3183_v57 = vsel %vm3182_vm1, %v3180_v19, %v3179_v45  ;;  %v3207_v18 = vsel %vm3205_vm14, %v3309_v10, %v3203_v27  ;;  %3276 = dma.vmem_to_hbm [thread:$0]  %s3269_s16, 256, %s3271_s19, [#allocation11], %s3451_s14, %s3451_s14, %s3452_s15  }
 0xa1d   :  { %v3184_v11 = vmul.u32 64, %v3183_v57  ;;  %v3307_v42 = vadd.s32 4294967295, %v3183_v57  ;;  %v3208_v48 = vadd.s32 1, %v3207_v18 }
 0xa1f   :  { %vm3185_vm4 = vcmp.gt.s32.totalorder %v3184_v11, %v6959_v21  ;;  %v3209_v14 = vmul.u32 64, %v3208_v48 }
 0xa20   :  { %v3187_v8 = vsel %vm3185_vm4, %v3307_v42, %v3183_v57 }
 0xa21   :  { %v3188_v31 = vadd.s32 1, %v3187_v8  ;;  %vm3210_vm6 = vcmp.le.s32.totalorder %v3209_v14, %v6974_v35 }
 0xa22   :  { %v3211_v1 = vsel %vm3210_vm6, %v3208_v48, %v3207_v18 }
 0xa23   :  { %v3189_v37 = vmul.u32 64, %v3188_v31  ;;  %v3212_v43 = vmul.u32 64, %v3211_v1  ;;  %v3310_v23 = vadd.s32 4294967295, %v3211_v1 }
 0xa25   :  { %vm3190_vm8 = vcmp.le.s32.totalorder %v3189_v37, %v6959_v21  ;;  %vm3213_vm2 = vcmp.gt.s32.totalorder %v3212_v43, %v6974_v35 }
 0xa26   :  { %v3191_v62 = vsel %vm3190_vm8, %v3188_v31, %v3187_v8  ;;  %v3215_v56 = vsel %vm3213_vm2, %v3310_v23, %v3211_v1 }
 0xa27   :  { %v3216_v59 = vadd.s32 1, %v3215_v56  ;;  %3246 = vst.msk [vmem:[#allocation9 + $0x20] sm:$0xff] %vm2929_vm10, %v3191_v62 }
 0xa28   :  { %3247 = vst.msk [vmem:[#allocation9 + $0x28] sm:$0xff] %vm2929_vm10, %v3191_v62 }
 0xa29   :  { %v3217_v12 = vmul.u32 64, %v3216_v59 }
 0xa2b   :  { %vm3218_vm12 = vcmp.le.s32.totalorder %v3217_v12, %v6974_v35 }
 0xa2c   :  { %v3219_v49 = vsel %vm3218_vm12, %v3216_v59, %v3215_v56 }
 0xa2d   :  { %v3220_v13 = vmul.u32 64, %v3219_v49  ;;  %v3311_v17 = vadd.s32 4294967295, %v3219_v49 }
 0xa2f   :  { %vm3221_vm9 = vcmp.gt.s32.totalorder %v3220_v13, %v6974_v35 }
 0xa30   :  { %v3223_v39 = vsel %vm3221_vm9, %v3311_v17, %v3219_v49 }
 0xa31   :  { %v3224_v15 = vadd.s32 1, %v3223_v39 }
 0xa33   :  { %v3225_v21 = vmul.u32 64, %v3224_v15 }
 0xa35   :  { %vm3226_vm11 = vcmp.le.s32.totalorder %v3225_v21, %v6974_v35 }
 0xa36   :  { %v3227_v3 = vsel %vm3226_vm11, %v3224_v15, %v3223_v39 }
 0xa37   :  { %3249 = vst.msk [vmem:[#allocation9 + $0x30] sm:$0xff] %vm2929_vm10, %v3227_v3 }
 0xa38   :  { %3250 = vst.msk [vmem:[#allocation9 + $0x38] sm:$0xff] %vm2929_vm10, %v3227_v3 }
 0xa39   :  { %3263 = dma.vmem_to_hbm [thread:$0]  %s3256_s20, 1024, %s3258_s23, [#allocation8], %s3451_s14, %s3451_s14, %s3452_s15  }
 0xa3a   :  { %3446 = dma.done.wait [#allocation8], 1024  }
 0xa3b   :  { %3447 = vsyncadd [#allocation8], 4294966272 }
 0xa3c   :  { %3448 = dma.done.wait [#allocation11], 256  }
 0xa3d   :  { %3449 = vsyncadd [#allocation11], 4294967040 }
 0xa3e   :  { %3285 = vsyncpa [#allocation7], 1 }
 0xa3f   :  { %3286 = vsyncpa [#allocation8], 1 }
 0xa40   :  { %3287 = vsyncpa [#allocation11], 1 }

</bundles_post_ra>
